<compile_context>
chip_gen: v7x
topology: tpu7x:2x2x1
jax: 0.10.0
libtpu: 0.0.40
codegen_flags: <defaults>
</compile_context>

<pallas_src>
import numpy as np
import jax
import jax.numpy as jnp
from jax.experimental import pallas as pl
from jax.experimental.pallas import tpu as pltpu

# ---- model dimensions (version 74: nb_vect=56, vect_dim=7) ----
B = 2            # batch
C = 56           # nb_vect (channels)
L = 7            # vect_dim (positions)
E = 159          # expanded channels in InvertedResidual1d
S = 40           # squeeze channels = _make_divisible(159 // 4, 8)
A = 81           # action_size (Splendor, 2 players)
P = 2            # num_players
NEG = -100000000.0   # self.lowvalue

# ---- padded (TPU-aligned) dimensions ----
LP = 8               # positions padded to a sublane tile
BLP = B * LP         # 16 activation rows
CP = 128             # channels padded to a full lane tile
EP = 256             # expanded channels padded
SP = 128             # squeeze channels padded
AP = 128             # action logits padded
PP = 128             # value outputs padded
CP2 = 2 * CP         # fused (PI|V) feature lanes
EP2 = 2 * EP         # fused (PI|V) expanded lanes
SP2 = 2 * SP         # fused (PI|V) squeeze lanes
OUT2 = AP + PP       # fused head-tail output lanes
CP2_SHIFT = 8
assert (1 << CP2_SHIFT) == CP2


def _relu(x):
    return jnp.maximum(x, 0.0)


def _hardswish(x):
    return x * jnp.clip(x + 3.0, 0.0, 6.0) / 6.0


def _hardsigmoid(x):
    return jnp.clip(x / 6.0 + 0.5, 0.0, 1.0)


def splendor_kernel(x_ref, valid_ref,
                    fw_ref, we0_ref, dwm_ref, sew1_0_ref, sew2_0_ref, wp0_ref,
                    we_h_ref, sew1_h_ref, sew2_h_ref, wp_h_ref,
                    w1t_ref, w2t_ref, vecs_ref,
                    logpi_ref, v_ref):
    f32 = jnp.float32

    def vrow(i, w):
        # packed bias / BN-affine vectors, row i, first w lanes -> (1, w)
        return vecs_ref[i:i + 1, 0:w]

    def mask_pad_rows(x, fill):
        # rows with (row % 8) == 7 are L-padding; replace them by `fill`
        rows, width = x.shape
        ridx = jax.lax.broadcasted_iota(jnp.int32, (rows, width), 0)
        return jnp.where((ridx & (LP - 1)) == (LP - 1), fill, x)

    def pool_rows(x, reducer):
        # (BLP, W) -> (B, W): reduce each batch group of LP rows
        parts = [reducer(x[b * LP:(b + 1) * LP, :]) for b in range(B)]
        return jnp.concatenate(parts, axis=0)

    def bcast_rows(s, width):
        # (B, W) -> (BLP, W): broadcast each batch row over its LP positions
        parts = [jnp.broadcast_to(s[b:b + 1, :], (LP, width)) for b in range(B)]
        return jnp.concatenate(parts, axis=0)

    x = x_ref[...]                                                      # (BLP, CP)

    # ---- first_layer: LinearNormActivation(56, 56, None), BN folded ----
    h = jnp.dot(x, fw_ref[...], preferred_element_type=f32) + vrow(0, CP)

    # ---- trunk: InvertedResidual1d(56, 159, 56, 7, ReLU, SE avg) ----
    # expand (BN scale folded into weight columns) + ReLU
    r = _relu(jnp.dot(h, we0_ref[...], preferred_element_type=f32) + vrow(1, EP))
    # depthwise: row mixing along L (kron(I_B, Wd) padded to 16x16) + BN + ReLU
    r = jnp.dot(dwm_ref[0], r, preferred_element_type=f32)
    r = _relu(r * vrow(2, EP) + vrow(3, EP))
    # squeeze-excitation, fully batched (avg pool over the 7 real positions)
    rz = mask_pad_rows(r, 0.0)
    pooled = pool_rows(rz, lambda g: jnp.sum(g, axis=0, keepdims=True)) * (1.0 / L)
    s = _relu(jnp.dot(pooled, sew1_0_ref[...], preferred_element_type=f32) + vrow(4, SP))
    s = _hardsigmoid(jnp.dot(s, sew2_0_ref[...], preferred_element_type=f32) + vrow(5, EP))
    r = r * bcast_rows(s, EP)
    # project (BN folded) + residual; dropout is identity in eval mode
    r = jnp.dot(r, wp0_ref[...], preferred_element_type=f32) + vrow(6, CP)
    t = r + h                                                           # (BLP, CP)

    # ---- fused PI|V heads: two InvertedResidual1d(HS, SE max), lane-stacked ----
    # expand: one matmul with the lane-concatenated [We_pi | We_v] weight
    r = _hardswish(jnp.dot(t, we_h_ref[...], preferred_element_type=f32) + vrow(7, EP2))
    # depthwise: different L-mixing per head -> one small matmul per lane half
    r = jnp.concatenate(
        [jnp.dot(dwm_ref[1], r[:, 0:EP], preferred_element_type=f32),
         jnp.dot(dwm_ref[2], r[:, EP:EP2], preferred_element_type=f32)], axis=1)
    r = _hardswish(r * vrow(8, EP2) + vrow(9, EP2))
    # squeeze-excitation (max pool); per-head FC weights are block-diagonal
    rm = mask_pad_rows(r, -1e9)
    pooled = pool_rows(rm, lambda g: jnp.max(g, axis=0, keepdims=True))   # (B, EP2)
    s = _relu(jnp.dot(pooled, sew1_h_ref[...], preferred_element_type=f32) + vrow(10, SP2))
    s = _hardsigmoid(jnp.dot(s, sew2_h_ref[...], preferred_element_type=f32) + vrow(11, EP2))
    r = r * bcast_rows(s, EP2)
    # project (block-diagonal, BN folded) + residual
    f2 = jnp.dot(r, wp_h_ref[...], preferred_element_type=f32) + vrow(12, CP2)
    f2 = f2 + jnp.concatenate([t, t], axis=1)                           # (BLP, CP2)

    # ---- head tails: Flatten(1) + Linear + ReLU + Linear, both heads at once ----
    # torch flat index c*L + l is realised as a block-selected matmul:
    #   replicate f2 over LP lane blocks, keep only block l == row % LP,
    #   multiply by the pre-packed (LP*CP2, OUT2) weight, then sum rows per batch.
    fpt = jnp.concatenate([f2] * LP, axis=1)                            # (BLP, LP*CP2)
    lblk = jax.lax.broadcasted_iota(jnp.int32, (BLP, LP * CP2), 1) >> CP2_SHIFT
    lrow = jax.lax.broadcasted_iota(jnp.int32, (BLP, LP * CP2), 0) & (LP - 1)
    fpt = jnp.where(lblk == lrow, fpt, 0.0)
    U = jnp.dot(fpt, w1t_ref[...], preferred_element_type=f32)          # (BLP, OUT2)
    y = pool_rows(U, lambda g: jnp.sum(g, axis=0, keepdims=True))       # (B, OUT2)
    y = _relu(y + vrow(13, OUT2))
    out = jnp.dot(y, w2t_ref[...], preferred_element_type=f32) + vrow(14, OUT2)

    # PI: mask invalid actions + log_softmax (padded lanes carry NEG), V: tanh
    pi = jnp.where(valid_ref[...] != 0, out[:, 0:AP], NEG)
    m = jnp.max(pi, axis=1, keepdims=True)
    z = pi - m
    logpi_ref[...] = z - jnp.log(jnp.sum(jnp.exp(z), axis=1, keepdims=True))
    v_ref[...] = jnp.tanh(out[:, AP:OUT2])


PARAM_ORDER = ['fw', 'we0', 'dwm', 'sew1_0', 'sew2_0', 'wp0',
               'we_h', 'sew1_h', 'sew2_h', 'wp_h', 'w1t', 'w2t', 'vecs']


def splendor_forward(input_data, valid_actions, kparams):
    """input_data: (B, 56, 7) float32; valid_actions: (B, A) bool."""
    x_bcl = input_data.reshape(-1, C, L).astype(jnp.float32)
    assert x_bcl.shape[0] == B
    # (B, C, L) -> (B, L, C) -> pad (L->LP, C->CP) -> (B*LP, CP)
    x = jnp.transpose(x_bcl, (0, 2, 1))
    x = jnp.pad(x, ((0, 0), (0, LP - L), (0, CP - C))).reshape(BLP, CP)
    valid = jnp.pad(valid_actions.astype(jnp.int32), ((0, 0), (0, AP - A)))

    args = [x, valid] + [kparams[k] for k in PARAM_ORDER]
    vmem = lambda: pl.BlockSpec(memory_space=pltpu.MemorySpace.VMEM)
    out_shape = (jax.ShapeDtypeStruct((B, AP), jnp.float32),
                 jax.ShapeDtypeStruct((B, PP), jnp.float32))
    logpi_p, v_p = pl.pallas_call(
        splendor_kernel,
        out_shape=out_shape,
        in_specs=[vmem() for _ in args],
        out_specs=(vmem(), vmem()),
    )(*args)
    return logpi_p[:, :A], v_p[:, :P]


# ---------------- deterministic synthetic parameters ----------------
def make_raw_params(key):
    ks = iter(jax.random.split(key, 48))

    def lin(out_f, in_f):                                  # nn.Linear weight (out, in)
        bound = (1.0 / in_f) ** 0.5
        return jax.random.uniform(next(ks), (out_f, in_f), jnp.float32, -bound, bound)

    def vec(n, scale=0.05):                                # bias vector
        return scale * jax.random.normal(next(ks), (n,), jnp.float32)

    def bn_sb(c):                                          # folded eval-mode BN affine
        k1, k2, k3, k4 = jax.random.split(next(ks), 4)
        gamma = jax.random.uniform(k1, (c,), jnp.float32, 0.8, 1.2)
        beta = 0.1 * jax.random.normal(k2, (c,), jnp.float32)
        mean = 0.1 * jax.random.normal(k3, (c,), jnp.float32)
        var = jax.random.uniform(k4, (c,), jnp.float32, 0.5, 1.5)
        scale = gamma / jnp.sqrt(var + 1e-5)
        bias = beta - mean * scale
        return jnp.stack([scale, bias], axis=0).astype(jnp.float32)

    def ir_block():
        return dict(we=lin(E, C), e_sb=bn_sb(E),            # expand
                    wd=lin(L, L), d_sb=bn_sb(E),            # depthwise
                    w1=lin(S, E), b1=vec(S),                # SE fc1
                    w2=lin(E, S), b2=vec(E),                # SE fc2
                    wp=lin(C, E), p_sb=bn_sb(C))            # project

    return dict(first_w=lin(C, C), first_sb=bn_sb(C),
                ir=[ir_block(), ir_block(), ir_block()],    # trunk, head_PI, head_V
                pi_w1=lin(A, C * L), pi_b1=vec(A), pi_w2=lin(A, A), pi_b2=vec(A),
                v_w1=lin(P, C * L), v_b1=vec(P), v_w2=lin(P, P), v_b2=vec(P))


# ---------------- weight packing: fold BN, fuse heads, pad to TPU tiles ----------------
def pack_kernel_params(raw):
    asnp = lambda x: np.asarray(x, dtype=np.float32)

    def pad2(m, shape):
        out = np.zeros(shape, np.float32)
        out[:m.shape[0], :m.shape[1]] = m
        return out

    def blockdiag(a, b):
        out = np.zeros((a.shape[0] + b.shape[0], a.shape[1] + b.shape[1]), np.float32)
        out[:a.shape[0], :a.shape[1]] = a
        out[a.shape[0]:, a.shape[1]:] = b
        return out

    def fold_w(w, sb):             # torch (out,in) weight + folded BN scale -> (in,out)
        return asnp(w).T * asnp(sb)[0][None, :]

    ir0, ir1, ir2 = raw['ir']

    # depthwise L-mixing matrices, padded to 8x8, block-diagonal over batch
    dwm = np.stack([np.kron(np.eye(B, dtype=np.float32), pad2(asnp(blk['wd']), (LP, LP)))
                    for blk in (ir0, ir1, ir2)], axis=0)                # (3, BLP, BLP)

    def flat_w(w, n_out):          # torch (n_out, C*L) -> (L, C, n_out)
        return asnp(w).reshape(n_out, C, L).transpose(2, 1, 0)

    # head-tail first linear: row index l*CP2 + ch (ch<CP -> PI feature, ch>=CP -> V)
    w1t3 = np.zeros((LP, CP2, OUT2), np.float32)
    w1t3[:L, :C, :A] = flat_w(raw['pi_w1'], A)
    w1t3[:L, CP:CP + C, AP:AP + P] = flat_w(raw['v_w1'], P)
    w1t = w1t3.reshape(LP * CP2, OUT2)

    # head-tail second linear: block diagonal (PI block | V block)
    w2t = np.zeros((OUT2, OUT2), np.float32)
    w2t[:A, :A] = asnp(raw['pi_w2']).T
    w2t[AP:AP + P, AP:AP + P] = asnp(raw['v_w2']).T

    # packed bias / BN-affine vectors (one DMA instead of 15 tiny ones)
    vecs = np.zeros((16, EP2), np.float32)
    vecs[0, :C] = asnp(raw['first_sb'])[1]
    vecs[1, :E] = asnp(ir0['e_sb'])[1]
    vecs[2, :E] = asnp(ir0['d_sb'])[0]
    vecs[3, :E] = asnp(ir0['d_sb'])[1]
    vecs[4, :S] = asnp(ir0['b1'])
    vecs[5, :E] = asnp(ir0['b2'])
    vecs[6, :C] = asnp(ir0['p_sb'])[1]
    vecs[7, :E] = asnp(ir1['e_sb'])[1];  vecs[7, EP:EP + E] = asnp(ir2['e_sb'])[1]
    vecs[8, :E] = asnp(ir1['d_sb'])[0];  vecs[8, EP:EP + E] = asnp(ir2['d_sb'])[0]
    vecs[9, :E] = asnp(ir1['d_sb'])[1];  vecs[9, EP:EP + E] = asnp(ir2['d_sb'])[1]
    vecs[10, :S] = asnp(ir1['b1']);      vecs[10, SP:SP + S] = asnp(ir2['b1'])
    vecs[11, :E] = asnp(ir1['b2']);      vecs[11, EP:EP + E] = asnp(ir2['b2'])
    vecs[12, :C] = asnp(ir1['p_sb'])[1]; vecs[12, CP:CP + C] = asnp(ir2['p_sb'])[1]
    vecs[13, :A] = asnp(raw['pi_b1']);   vecs[13, AP:AP + P] = asnp(raw['v_b1'])
    vecs[14, :A] = asnp(raw['pi_b2']);   vecs[14, AP:AP + P] = asnp(raw['v_b2'])

    kp = dict(
        fw=pad2(fold_w(raw['first_w'], raw['first_sb']), (CP, CP)),
        we0=pad2(fold_w(ir0['we'], ir0['e_sb']), (CP, EP)),
        dwm=dwm,
        sew1_0=pad2(asnp(ir0['w1']).T, (EP, SP)),
        sew2_0=pad2(asnp(ir0['w2']).T, (SP, EP)),
        wp0=pad2(fold_w(ir0['wp'], ir0['p_sb']), (EP, CP)),
        we_h=np.concatenate([pad2(fold_w(ir1['we'], ir1['e_sb']), (CP, EP)),
                             pad2(fold_w(ir2['we'], ir2['e_sb']), (CP, EP))], axis=1),
        sew1_h=blockdiag(pad2(asnp(ir1['w1']).T, (EP, SP)),
                         pad2(asnp(ir2['w1']).T, (EP, SP))),
        sew2_h=blockdiag(pad2(asnp(ir1['w2']).T, (SP, EP)),
                         pad2(asnp(ir2['w2']).T, (SP, EP))),
        wp_h=blockdiag(pad2(fold_w(ir1['wp'], ir1['p_sb']), (EP, CP)),
                       pad2(fold_w(ir2['wp'], ir2['p_sb']), (EP, CP))),
        w1t=w1t,
        w2t=w2t,
        vecs=vecs,
    )
    return {k: jnp.asarray(v) for k, v in kp.items()}


# ---------------- pure-JAX reference (mirrors the PyTorch module) ----------------
def ref_forward(raw, x_bcl, valid):
    relu = lambda x: jnp.maximum(x, 0.0)
    hswish = lambda x: x * jnp.clip(x + 3.0, 0.0, 6.0) / 6.0
    hsig = lambda x: jnp.clip(x / 6.0 + 0.5, 0.0, 1.0)

    def lin_ch(x, W):                              # x (B, Cin, L), W (O, Cin)
        return jnp.einsum('oc,bcl->bol', W, x)

    def bn(x, sb):                                 # channel dim 1
        return x * sb[0][None, :, None] + sb[1][None, :, None]

    h = bn(lin_ch(x_bcl, raw['first_w']), raw['first_sb'])

    def ir(x, p, act, pool):
        r = act(bn(lin_ch(x, p['we']), p['e_sb']))
        r = jnp.einsum('lm,bem->bel', p['wd'], r)
        r = act(bn(r, p['d_sb']))
        pooled = jnp.max(r, axis=2) if pool == 'max' else jnp.mean(r, axis=2)
        s = relu(pooled @ p['w1'].T + p['b1'])
        s = hsig(s @ p['w2'].T + p['b2'])
        r = r * s[:, :, None]
        r = bn(lin_ch(r, p['wp']), p['p_sb'])
        return r + x

    t = ir(h, raw['ir'][0], relu, 'avg')           # dropout = identity (eval)

    def head(x, p, hw1, hb1, hw2, hb2):
        f = ir(x, p, hswish, 'max')
        flat = f.reshape(f.shape[0], -1)           # torch Flatten(1): index c*L + l
        y = relu(flat @ hw1.T + hb1)
        return y @ hw2.T + hb2

    pi = head(t, raw['ir'][1], raw['pi_w1'], raw['pi_b1'], raw['pi_w2'], raw['pi_b2'])
    v = head(t, raw['ir'][2], raw['v_w1'], raw['v_b1'], raw['v_w2'], raw['v_b2'])
    pi = jnp.where(valid, pi, NEG)
    return jax.nn.log_softmax(pi, axis=1), jnp.tanh(v)


if __name__ == "__main__":
    key = jax.random.PRNGKey(0)
    kx, kv, kp = jax.random.split(key, 3)

    raw = make_raw_params(kp)
    kparams = pack_kernel_params(raw)

    input_data = jax.random.normal(kx, (B, C, L), jnp.float32)   # (batch, nb_vect, vect_dim)
    valid_actions = jax.random.uniform(kv, (B, A)) < 0.7

    logpi, v = splendor_forward(input_data, valid_actions, kparams)
    jax.block_until_ready((logpi, v))

    ref_logpi, ref_v = ref_forward(raw, input_data.reshape(-1, C, L), valid_actions)
    np.testing.assert_allclose(np.asarray(logpi), np.asarray(ref_logpi), rtol=2e-2, atol=2e-2)
    np.testing.assert_allclose(np.asarray(v), np.asarray(ref_v), rtol=2e-2, atol=2e-2)

    print("KERNEL_OK")
</pallas_src>

<mosaic_0001>
module attributes {stable_mosaic.version = 11 : i64} {
  func.func @splendor_kernel(%arg0: memref<16x128xf32, #tpu.memory_space<vmem>>, %arg1: memref<2x128xi32, #tpu.memory_space<vmem>>, %arg2: memref<128x128xf32, #tpu.memory_space<vmem>>, %arg3: memref<128x256xf32, #tpu.memory_space<vmem>>, %arg4: memref<3x16x16xf32, #tpu.memory_space<vmem>>, %arg5: memref<256x128xf32, #tpu.memory_space<vmem>>, %arg6: memref<128x256xf32, #tpu.memory_space<vmem>>, %arg7: memref<256x128xf32, #tpu.memory_space<vmem>>, %arg8: memref<128x512xf32, #tpu.memory_space<vmem>>, %arg9: memref<512x256xf32, #tpu.memory_space<vmem>>, %arg10: memref<256x512xf32, #tpu.memory_space<vmem>>, %arg11: memref<512x256xf32, #tpu.memory_space<vmem>>, %arg12: memref<2048x256xf32, #tpu.memory_space<vmem>>, %arg13: memref<256x256xf32, #tpu.memory_space<vmem>>, %arg14: memref<16x512xf32, #tpu.memory_space<vmem>>, %arg15: memref<2x128xf32, #tpu.memory_space<vmem>>, %arg16: memref<2x128xf32, #tpu.memory_space<vmem>>) attributes {dimension_semantics = [], scalar_prefetch = 0 : i64, scratch_operands = 0 : i64, tpu.core_type = #tpu.core_type<tc>} {
    %c0 = arith.constant 0 : index
    %c0_0 = arith.constant 0 : index
    %0 = vector.load %arg0[%c0, %c0_0] : memref<16x128xf32, #tpu.memory_space<vmem>>, vector<16x128xf32>
    %c0_1 = arith.constant 0 : index
    %c0_2 = arith.constant 0 : index
    %1 = vector.load %arg2[%c0_1, %c0_2] : memref<128x128xf32, #tpu.memory_space<vmem>>, vector<128x128xf32>
    %cst = arith.constant dense<0.000000e+00> : vector<16x128xf32>
    %2 = tpu.matmul %0, %1, %cst {dimension_numbers = #tpu.dot_dimension_numbers<[1], [0], [0], [1], [0, 0, 1, 1], [], []>} : vector<16x128xf32>, vector<128x128xf32>, vector<16x128xf32> -> vector<16x128xf32>
    %c0_3 = arith.constant 0 : index
    %c0_4 = arith.constant 0 : index
    %3 = vector.load %arg14[%c0_3, %c0_4] : memref<16x512xf32, #tpu.memory_space<vmem>>, vector<1x128xf32>
    %4 = vector.broadcast %3 : vector<1x128xf32> to vector<16x128xf32>
    %5 = arith.addf %2, %4 : vector<16x128xf32>
    %c0_5 = arith.constant 0 : index
    %c0_6 = arith.constant 0 : index
    %6 = vector.load %arg3[%c0_5, %c0_6] : memref<128x256xf32, #tpu.memory_space<vmem>>, vector<128x256xf32>
    %cst_7 = arith.constant dense<0.000000e+00> : vector<16x256xf32>
    %7 = tpu.matmul %5, %6, %cst_7 {dimension_numbers = #tpu.dot_dimension_numbers<[1], [0], [0], [1], [0, 0, 1, 1], [], []>} : vector<16x128xf32>, vector<128x256xf32>, vector<16x256xf32> -> vector<16x256xf32>
    %c1 = arith.constant 1 : index
    %c0_8 = arith.constant 0 : index
    %8 = vector.load %arg14[%c1, %c0_8] : memref<16x512xf32, #tpu.memory_space<vmem>>, vector<1x256xf32>
    %9 = vector.broadcast %8 : vector<1x256xf32> to vector<16x256xf32>
    %10 = arith.addf %7, %9 : vector<16x256xf32>
    %cst_9 = arith.constant 0.000000e+00 : f32
    %11 = vector.broadcast %cst_9 : f32 to vector<16x256xf32>
    %12 = arith.maximumf %10, %11 : vector<16x256xf32>
    %c0_10 = arith.constant 0 : index
    %c0_11 = arith.constant 0 : index
    %c0_12 = arith.constant 0 : index
    %13 = vector.load %arg4[%c0_10, %c0_11, %c0_12] : memref<3x16x16xf32, #tpu.memory_space<vmem>>, vector<1x16x16xf32>
    %14 = vector.shape_cast %13 : vector<1x16x16xf32> to vector<16x16xf32>
    %cst_13 = arith.constant dense<0.000000e+00> : vector<16x256xf32>
    %15 = tpu.matmul %14, %12, %cst_13 {dimension_numbers = #tpu.dot_dimension_numbers<[1], [0], [0], [1], [0, 0, 1, 1], [], []>} : vector<16x16xf32>, vector<16x256xf32>, vector<16x256xf32> -> vector<16x256xf32>
    %c2 = arith.constant 2 : index
    %c0_14 = arith.constant 0 : index
    %16 = vector.load %arg14[%c2, %c0_14] : memref<16x512xf32, #tpu.memory_space<vmem>>, vector<1x256xf32>
    %17 = vector.broadcast %16 : vector<1x256xf32> to vector<16x256xf32>
    %18 = arith.mulf %15, %17 : vector<16x256xf32>
    %c3 = arith.constant 3 : index
    %c0_15 = arith.constant 0 : index
    %19 = vector.load %arg14[%c3, %c0_15] : memref<16x512xf32, #tpu.memory_space<vmem>>, vector<1x256xf32>
    %20 = vector.broadcast %19 : vector<1x256xf32> to vector<16x256xf32>
    %21 = arith.addf %18, %20 : vector<16x256xf32>
    %cst_16 = arith.constant 0.000000e+00 : f32
    %22 = vector.broadcast %cst_16 : f32 to vector<16x256xf32>
    %23 = arith.maximumf %21, %22 : vector<16x256xf32>
    %24 = tpu.iota {dimensions = array<i32: 0>} : vector<16x256xi32>
    %c7_i32 = arith.constant 7 : i32
    %25 = vector.broadcast %c7_i32 : i32 to vector<16x256xi32>
    %26 = arith.andi %24, %25 : vector<16x256xi32>
    %c7_i32_17 = arith.constant 7 : i32
    %27 = vector.broadcast %c7_i32_17 : i32 to vector<16x256xi32>
    %28 = arith.cmpi eq, %26, %27 : vector<16x256xi32>
    %cst_18 = arith.constant 0.000000e+00 : f32
    %29 = vector.broadcast %cst_18 : f32 to vector<16x256xf32>
    %30 = arith.select %28, %29, %23 : vector<16x256xi1>, vector<16x256xf32>
    %31 = vector.extract_strided_slice %30 {offsets = [0, 0], sizes = [8, 256], strides = [1, 1]} : vector<16x256xf32> to vector<8x256xf32>
    %cst_19 = arith.constant dense<0.000000e+00> : vector<256xf32>
    %32 = vector.multi_reduction <add>, %31, %cst_19 [0] : vector<8x256xf32> to vector<256xf32>
    %33 = vector.shape_cast %32 : vector<256xf32> to vector<1x256xf32>
    %34 = vector.extract_strided_slice %30 {offsets = [8, 0], sizes = [8, 256], strides = [1, 1]} : vector<16x256xf32> to vector<8x256xf32>
    %cst_20 = arith.constant dense<0.000000e+00> : vector<256xf32>
    %35 = vector.multi_reduction <add>, %34, %cst_20 [0] : vector<8x256xf32> to vector<256xf32>
    %36 = vector.shape_cast %35 : vector<256xf32> to vector<1x256xf32>
    %37 = tpu.concatenate %33, %36 in 0 : vector<1x256xf32>, vector<1x256xf32> -> vector<2x256xf32>
    %cst_21 = arith.constant 0.142857149 : f32
    %38 = vector.broadcast %cst_21 : f32 to vector<2x256xf32>
    %39 = arith.mulf %37, %38 : vector<2x256xf32>
    %c0_22 = arith.constant 0 : index
    %c0_23 = arith.constant 0 : index
    %40 = vector.load %arg5[%c0_22, %c0_23] : memref<256x128xf32, #tpu.memory_space<vmem>>, vector<256x128xf32>
    %cst_24 = arith.constant dense<0.000000e+00> : vector<2x128xf32>
    %41 = tpu.matmul %39, %40, %cst_24 {dimension_numbers = #tpu.dot_dimension_numbers<[1], [0], [0], [1], [0, 0, 1, 1], [], []>} : vector<2x256xf32>, vector<256x128xf32>, vector<2x128xf32> -> vector<2x128xf32>
    %c4 = arith.constant 4 : index
    %c0_25 = arith.constant 0 : index
    %42 = vector.load %arg14[%c4, %c0_25] : memref<16x512xf32, #tpu.memory_space<vmem>>, vector<1x128xf32>
    %43 = vector.broadcast %42 : vector<1x128xf32> to vector<2x128xf32>
    %44 = arith.addf %41, %43 : vector<2x128xf32>
    %cst_26 = arith.constant 0.000000e+00 : f32
    %45 = vector.broadcast %cst_26 : f32 to vector<2x128xf32>
    %46 = arith.maximumf %44, %45 : vector<2x128xf32>
    %c0_27 = arith.constant 0 : index
    %c0_28 = arith.constant 0 : index
    %47 = vector.load %arg6[%c0_27, %c0_28] : memref<128x256xf32, #tpu.memory_space<vmem>>, vector<128x256xf32>
    %cst_29 = arith.constant dense<0.000000e+00> : vector<2x256xf32>
    %48 = tpu.matmul %46, %47, %cst_29 {dimension_numbers = #tpu.dot_dimension_numbers<[1], [0], [0], [1], [0, 0, 1, 1], [], []>} : vector<2x128xf32>, vector<128x256xf32>, vector<2x256xf32> -> vector<2x256xf32>
    %c5 = arith.constant 5 : index
    %c0_30 = arith.constant 0 : index
    %49 = vector.load %arg14[%c5, %c0_30] : memref<16x512xf32, #tpu.memory_space<vmem>>, vector<1x256xf32>
    %50 = vector.broadcast %49 : vector<1x256xf32> to vector<2x256xf32>
    %51 = arith.addf %48, %50 : vector<2x256xf32>
    %cst_31 = arith.constant 6.000000e+00 : f32
    %52 = vector.broadcast %cst_31 : f32 to vector<2x256xf32>
    %53 = arith.divf %51, %52 : vector<2x256xf32>
    %cst_32 = arith.constant 5.000000e-01 : f32
    %54 = vector.broadcast %cst_32 : f32 to vector<2x256xf32>
    %55 = arith.addf %53, %54 : vector<2x256xf32>
    %cst_33 = arith.constant 0.000000e+00 : f32
    %cst_34 = arith.constant 1.000000e+00 : f32
    %56 = vector.broadcast %cst_33 : f32 to vector<2x256xf32>
    %57 = arith.maximumf %56, %55 : vector<2x256xf32>
    %58 = vector.broadcast %cst_34 : f32 to vector<2x256xf32>
    %59 = arith.minimumf %58, %57 : vector<2x256xf32>
    %60 = vector.extract_strided_slice %59 {offsets = [0, 0], sizes = [1, 256], strides = [1, 1]} : vector<2x256xf32> to vector<1x256xf32>
    %61 = vector.shape_cast %60 : vector<1x256xf32> to vector<1x256xf32>
    %62 = vector.broadcast %61 : vector<1x256xf32> to vector<8x256xf32>
    %63 = vector.extract_strided_slice %59 {offsets = [1, 0], sizes = [1, 256], strides = [1, 1]} : vector<2x256xf32> to vector<1x256xf32>
    %64 = vector.shape_cast %63 : vector<1x256xf32> to vector<1x256xf32>
    %65 = vector.broadcast %64 : vector<1x256xf32> to vector<8x256xf32>
    %66 = tpu.concatenate %62, %65 in 0 : vector<8x256xf32>, vector<8x256xf32> -> vector<16x256xf32>
    %67 = arith.mulf %23, %66 : vector<16x256xf32>
    %c0_35 = arith.constant 0 : index
    %c0_36 = arith.constant 0 : index
    %68 = vector.load %arg7[%c0_35, %c0_36] : memref<256x128xf32, #tpu.memory_space<vmem>>, vector<256x128xf32>
    %cst_37 = arith.constant dense<0.000000e+00> : vector<16x128xf32>
    %69 = tpu.matmul %67, %68, %cst_37 {dimension_numbers = #tpu.dot_dimension_numbers<[1], [0], [0], [1], [0, 0, 1, 1], [], []>} : vector<16x256xf32>, vector<256x128xf32>, vector<16x128xf32> -> vector<16x128xf32>
    %c6 = arith.constant 6 : index
    %c0_38 = arith.constant 0 : index
    %70 = vector.load %arg14[%c6, %c0_38] : memref<16x512xf32, #tpu.memory_space<vmem>>, vector<1x128xf32>
    %71 = vector.broadcast %70 : vector<1x128xf32> to vector<16x128xf32>
    %72 = arith.addf %69, %71 : vector<16x128xf32>
    %73 = arith.addf %72, %5 : vector<16x128xf32>
    %c0_39 = arith.constant 0 : index
    %c0_40 = arith.constant 0 : index
    %74 = vector.load %arg8[%c0_39, %c0_40] : memref<128x512xf32, #tpu.memory_space<vmem>>, vector<128x512xf32>
    %cst_41 = arith.constant dense<0.000000e+00> : vector<16x512xf32>
    %75 = tpu.matmul %73, %74, %cst_41 {dimension_numbers = #tpu.dot_dimension_numbers<[1], [0], [0], [1], [0, 0, 1, 1], [], []>} : vector<16x128xf32>, vector<128x512xf32>, vector<16x512xf32> -> vector<16x512xf32>
    %c7 = arith.constant 7 : index
    %c0_42 = arith.constant 0 : index
    %76 = vector.load %arg14[%c7, %c0_42] : memref<16x512xf32, #tpu.memory_space<vmem>>, vector<1x512xf32>
    %77 = vector.broadcast %76 : vector<1x512xf32> to vector<16x512xf32>
    %78 = arith.addf %75, %77 : vector<16x512xf32>
    %cst_43 = arith.constant 3.000000e+00 : f32
    %79 = vector.broadcast %cst_43 : f32 to vector<16x512xf32>
    %80 = arith.addf %78, %79 : vector<16x512xf32>
    %cst_44 = arith.constant 0.000000e+00 : f32
    %cst_45 = arith.constant 6.000000e+00 : f32
    %81 = vector.broadcast %cst_44 : f32 to vector<16x512xf32>
    %82 = arith.maximumf %81, %80 : vector<16x512xf32>
    %83 = vector.broadcast %cst_45 : f32 to vector<16x512xf32>
    %84 = arith.minimumf %83, %82 : vector<16x512xf32>
    %85 = arith.mulf %78, %84 : vector<16x512xf32>
    %cst_46 = arith.constant 6.000000e+00 : f32
    %86 = vector.broadcast %cst_46 : f32 to vector<16x512xf32>
    %87 = arith.divf %85, %86 : vector<16x512xf32>
    %c1_47 = arith.constant 1 : index
    %c0_48 = arith.constant 0 : index
    %c0_49 = arith.constant 0 : index
    %88 = vector.load %arg4[%c1_47, %c0_48, %c0_49] : memref<3x16x16xf32, #tpu.memory_space<vmem>>, vector<1x16x16xf32>
    %89 = vector.shape_cast %88 : vector<1x16x16xf32> to vector<16x16xf32>
    %90 = vector.extract_strided_slice %87 {offsets = [0, 0], sizes = [16, 256], strides = [1, 1]} : vector<16x512xf32> to vector<16x256xf32>
    %cst_50 = arith.constant dense<0.000000e+00> : vector<16x256xf32>
    %91 = tpu.matmul %89, %90, %cst_50 {dimension_numbers = #tpu.dot_dimension_numbers<[1], [0], [0], [1], [0, 0, 1, 1], [], []>} : vector<16x16xf32>, vector<16x256xf32>, vector<16x256xf32> -> vector<16x256xf32>
    %c2_51 = arith.constant 2 : index
    %c0_52 = arith.constant 0 : index
    %c0_53 = arith.constant 0 : index
    %92 = vector.load %arg4[%c2_51, %c0_52, %c0_53] : memref<3x16x16xf32, #tpu.memory_space<vmem>>, vector<1x16x16xf32>
    %93 = vector.shape_cast %92 : vector<1x16x16xf32> to vector<16x16xf32>
    %94 = vector.extract_strided_slice %87 {offsets = [0, 256], sizes = [16, 256], strides = [1, 1]} : vector<16x512xf32> to vector<16x256xf32>
    %cst_54 = arith.constant dense<0.000000e+00> : vector<16x256xf32>
    %95 = tpu.matmul %93, %94, %cst_54 {dimension_numbers = #tpu.dot_dimension_numbers<[1], [0], [0], [1], [0, 0, 1, 1], [], []>} : vector<16x16xf32>, vector<16x256xf32>, vector<16x256xf32> -> vector<16x256xf32>
    %96 = tpu.concatenate %91, %95 in 1 : vector<16x256xf32>, vector<16x256xf32> -> vector<16x512xf32>
    %c8 = arith.constant 8 : index
    %c0_55 = arith.constant 0 : index
    %97 = vector.load %arg14[%c8, %c0_55] : memref<16x512xf32, #tpu.memory_space<vmem>>, vector<1x512xf32>
    %98 = vector.broadcast %97 : vector<1x512xf32> to vector<16x512xf32>
    %99 = arith.mulf %96, %98 : vector<16x512xf32>
    %c9 = arith.constant 9 : index
    %c0_56 = arith.constant 0 : index
    %100 = vector.load %arg14[%c9, %c0_56] : memref<16x512xf32, #tpu.memory_space<vmem>>, vector<1x512xf32>
    %101 = vector.broadcast %100 : vector<1x512xf32> to vector<16x512xf32>
    %102 = arith.addf %99, %101 : vector<16x512xf32>
    %cst_57 = arith.constant 3.000000e+00 : f32
    %103 = vector.broadcast %cst_57 : f32 to vector<16x512xf32>
    %104 = arith.addf %102, %103 : vector<16x512xf32>
    %cst_58 = arith.constant 0.000000e+00 : f32
    %cst_59 = arith.constant 6.000000e+00 : f32
    %105 = vector.broadcast %cst_58 : f32 to vector<16x512xf32>
    %106 = arith.maximumf %105, %104 : vector<16x512xf32>
    %107 = vector.broadcast %cst_59 : f32 to vector<16x512xf32>
    %108 = arith.minimumf %107, %106 : vector<16x512xf32>
    %109 = arith.mulf %102, %108 : vector<16x512xf32>
    %cst_60 = arith.constant 6.000000e+00 : f32
    %110 = vector.broadcast %cst_60 : f32 to vector<16x512xf32>
    %111 = arith.divf %109, %110 : vector<16x512xf32>
    %112 = tpu.iota {dimensions = array<i32: 0>} : vector<16x512xi32>
    %c7_i32_61 = arith.constant 7 : i32
    %113 = vector.broadcast %c7_i32_61 : i32 to vector<16x512xi32>
    %114 = arith.andi %112, %113 : vector<16x512xi32>
    %c7_i32_62 = arith.constant 7 : i32
    %115 = vector.broadcast %c7_i32_62 : i32 to vector<16x512xi32>
    %116 = arith.cmpi eq, %114, %115 : vector<16x512xi32>
    %cst_63 = arith.constant -1.000000e+09 : f32
    %117 = vector.broadcast %cst_63 : f32 to vector<16x512xf32>
    %118 = arith.select %116, %117, %111 : vector<16x512xi1>, vector<16x512xf32>
    %119 = vector.extract_strided_slice %118 {offsets = [0, 0], sizes = [8, 512], strides = [1, 1]} : vector<16x512xf32> to vector<8x512xf32>
    %cst_64 = arith.constant dense<0xFF800000> : vector<512xf32>
    %120 = vector.multi_reduction <maximumf>, %119, %cst_64 [0] : vector<8x512xf32> to vector<512xf32>
    %121 = vector.shape_cast %120 : vector<512xf32> to vector<1x512xf32>
    %122 = vector.extract_strided_slice %118 {offsets = [8, 0], sizes = [8, 512], strides = [1, 1]} : vector<16x512xf32> to vector<8x512xf32>
    %cst_65 = arith.constant dense<0xFF800000> : vector<512xf32>
    %123 = vector.multi_reduction <maximumf>, %122, %cst_65 [0] : vector<8x512xf32> to vector<512xf32>
    %124 = vector.shape_cast %123 : vector<512xf32> to vector<1x512xf32>
    %125 = tpu.concatenate %121, %124 in 0 : vector<1x512xf32>, vector<1x512xf32> -> vector<2x512xf32>
    %c0_66 = arith.constant 0 : index
    %c0_67 = arith.constant 0 : index
    %126 = vector.load %arg9[%c0_66, %c0_67] : memref<512x256xf32, #tpu.memory_space<vmem>>, vector<512x256xf32>
    %cst_68 = arith.constant dense<0.000000e+00> : vector<2x256xf32>
    %127 = tpu.matmul %125, %126, %cst_68 {dimension_numbers = #tpu.dot_dimension_numbers<[1], [0], [0], [1], [0, 0, 1, 1], [], []>} : vector<2x512xf32>, vector<512x256xf32>, vector<2x256xf32> -> vector<2x256xf32>
    %c10 = arith.constant 10 : index
    %c0_69 = arith.constant 0 : index
    %128 = vector.load %arg14[%c10, %c0_69] : memref<16x512xf32, #tpu.memory_space<vmem>>, vector<1x256xf32>
    %129 = vector.broadcast %128 : vector<1x256xf32> to vector<2x256xf32>
    %130 = arith.addf %127, %129 : vector<2x256xf32>
    %cst_70 = arith.constant 0.000000e+00 : f32
    %131 = vector.broadcast %cst_70 : f32 to vector<2x256xf32>
    %132 = arith.maximumf %130, %131 : vector<2x256xf32>
    %c0_71 = arith.constant 0 : index
    %c0_72 = arith.constant 0 : index
    %133 = vector.load %arg10[%c0_71, %c0_72] : memref<256x512xf32, #tpu.memory_space<vmem>>, vector<256x512xf32>
    %cst_73 = arith.constant dense<0.000000e+00> : vector<2x512xf32>
    %134 = tpu.matmul %132, %133, %cst_73 {dimension_numbers = #tpu.dot_dimension_numbers<[1], [0], [0], [1], [0, 0, 1, 1], [], []>} : vector<2x256xf32>, vector<256x512xf32>, vector<2x512xf32> -> vector<2x512xf32>
    %c11 = arith.constant 11 : index
    %c0_74 = arith.constant 0 : index
    %135 = vector.load %arg14[%c11, %c0_74] : memref<16x512xf32, #tpu.memory_space<vmem>>, vector<1x512xf32>
    %136 = vector.broadcast %135 : vector<1x512xf32> to vector<2x512xf32>
    %137 = arith.addf %134, %136 : vector<2x512xf32>
    %cst_75 = arith.constant 6.000000e+00 : f32
    %138 = vector.broadcast %cst_75 : f32 to vector<2x512xf32>
    %139 = arith.divf %137, %138 : vector<2x512xf32>
    %cst_76 = arith.constant 5.000000e-01 : f32
    %140 = vector.broadcast %cst_76 : f32 to vector<2x512xf32>
    %141 = arith.addf %139, %140 : vector<2x512xf32>
    %cst_77 = arith.constant 0.000000e+00 : f32
    %cst_78 = arith.constant 1.000000e+00 : f32
    %142 = vector.broadcast %cst_77 : f32 to vector<2x512xf32>
    %143 = arith.maximumf %142, %141 : vector<2x512xf32>
    %144 = vector.broadcast %cst_78 : f32 to vector<2x512xf32>
    %145 = arith.minimumf %144, %143 : vector<2x512xf32>
    %146 = vector.extract_strided_slice %145 {offsets = [0, 0], sizes = [1, 512], strides = [1, 1]} : vector<2x512xf32> to vector<1x512xf32>
    %147 = vector.shape_cast %146 : vector<1x512xf32> to vector<1x512xf32>
    %148 = vector.broadcast %147 : vector<1x512xf32> to vector<8x512xf32>
    %149 = vector.extract_strided_slice %145 {offsets = [1, 0], sizes = [1, 512], strides = [1, 1]} : vector<2x512xf32> to vector<1x512xf32>
    %150 = vector.shape_cast %149 : vector<1x512xf32> to vector<1x512xf32>
    %151 = vector.broadcast %150 : vector<1x512xf32> to vector<8x512xf32>
    %152 = tpu.concatenate %148, %151 in 0 : vector<8x512xf32>, vector<8x512xf32> -> vector<16x512xf32>
    %153 = arith.mulf %111, %152 : vector<16x512xf32>
    %c0_79 = arith.constant 0 : index
    %c0_80 = arith.constant 0 : index
    %154 = vector.load %arg11[%c0_79, %c0_80] : memref<512x256xf32, #tpu.memory_space<vmem>>, vector<512x256xf32>
    %cst_81 = arith.constant dense<0.000000e+00> : vector<16x256xf32>
    %155 = tpu.matmul %153, %154, %cst_81 {dimension_numbers = #tpu.dot_dimension_numbers<[1], [0], [0], [1], [0, 0, 1, 1], [], []>} : vector<16x512xf32>, vector<512x256xf32>, vector<16x256xf32> -> vector<16x256xf32>
    %c12 = arith.constant 12 : index
    %c0_82 = arith.constant 0 : index
    %156 = vector.load %arg14[%c12, %c0_82] : memref<16x512xf32, #tpu.memory_space<vmem>>, vector<1x256xf32>
    %157 = vector.broadcast %156 : vector<1x256xf32> to vector<16x256xf32>
    %158 = arith.addf %155, %157 : vector<16x256xf32>
    %159 = tpu.concatenate %73, %73 in 1 : vector<16x128xf32>, vector<16x128xf32> -> vector<16x256xf32>
    %160 = arith.addf %158, %159 : vector<16x256xf32>
    %161 = tpu.concatenate %160, %160, %160, %160, %160, %160, %160, %160 in 1 : vector<16x256xf32>, vector<16x256xf32>, vector<16x256xf32>, vector<16x256xf32>, vector<16x256xf32>, vector<16x256xf32>, vector<16x256xf32>, vector<16x256xf32> -> vector<16x2048xf32>
    %162 = tpu.iota {dimensions = array<i32: 1>} : vector<16x2048xi32>
    %c8_i32 = arith.constant 8 : i32
    %163 = vector.broadcast %c8_i32 : i32 to vector<16x2048xi32>
    %164 = arith.shrsi %162, %163 : vector<16x2048xi32>
    %165 = tpu.iota {dimensions = array<i32: 0>} : vector<16x2048xi32>
    %c7_i32_83 = arith.constant 7 : i32
    %166 = vector.broadcast %c7_i32_83 : i32 to vector<16x2048xi32>
    %167 = arith.andi %165, %166 : vector<16x2048xi32>
    %168 = arith.cmpi eq, %164, %167 : vector<16x2048xi32>
    %cst_84 = arith.constant 0.000000e+00 : f32
    %169 = vector.broadcast %cst_84 : f32 to vector<16x2048xf32>
    %170 = arith.select %168, %161, %169 : vector<16x2048xi1>, vector<16x2048xf32>
    %c0_85 = arith.constant 0 : index
    %c0_86 = arith.constant 0 : index
    %171 = vector.load %arg12[%c0_85, %c0_86] : memref<2048x256xf32, #tpu.memory_space<vmem>>, vector<2048x256xf32>
    %cst_87 = arith.constant dense<0.000000e+00> : vector<16x256xf32>
    %172 = tpu.matmul %170, %171, %cst_87 {dimension_numbers = #tpu.dot_dimension_numbers<[1], [0], [0], [1], [0, 0, 1, 1], [], []>} : vector<16x2048xf32>, vector<2048x256xf32>, vector<16x256xf32> -> vector<16x256xf32>
    %173 = vector.extract_strided_slice %172 {offsets = [0, 0], sizes = [8, 256], strides = [1, 1]} : vector<16x256xf32> to vector<8x256xf32>
    %cst_88 = arith.constant dense<0.000000e+00> : vector<256xf32>
    %174 = vector.multi_reduction <add>, %173, %cst_88 [0] : vector<8x256xf32> to vector<256xf32>
    %175 = vector.shape_cast %174 : vector<256xf32> to vector<1x256xf32>
    %176 = vector.extract_strided_slice %172 {offsets = [8, 0], sizes = [8, 256], strides = [1, 1]} : vector<16x256xf32> to vector<8x256xf32>
    %cst_89 = arith.constant dense<0.000000e+00> : vector<256xf32>
    %177 = vector.multi_reduction <add>, %176, %cst_89 [0] : vector<8x256xf32> to vector<256xf32>
    %178 = vector.shape_cast %177 : vector<256xf32> to vector<1x256xf32>
    %179 = tpu.concatenate %175, %178 in 0 : vector<1x256xf32>, vector<1x256xf32> -> vector<2x256xf32>
    %c13 = arith.constant 13 : index
    %c0_90 = arith.constant 0 : index
    %180 = vector.load %arg14[%c13, %c0_90] : memref<16x512xf32, #tpu.memory_space<vmem>>, vector<1x256xf32>
    %181 = vector.broadcast %180 : vector<1x256xf32> to vector<2x256xf32>
    %182 = arith.addf %179, %181 : vector<2x256xf32>
    %cst_91 = arith.constant 0.000000e+00 : f32
    %183 = vector.broadcast %cst_91 : f32 to vector<2x256xf32>
    %184 = arith.maximumf %182, %183 : vector<2x256xf32>
    %c0_92 = arith.constant 0 : index
    %c0_93 = arith.constant 0 : index
    %185 = vector.load %arg13[%c0_92, %c0_93] : memref<256x256xf32, #tpu.memory_space<vmem>>, vector<256x256xf32>
    %cst_94 = arith.constant dense<0.000000e+00> : vector<2x256xf32>
    %186 = tpu.matmul %184, %185, %cst_94 {dimension_numbers = #tpu.dot_dimension_numbers<[1], [0], [0], [1], [0, 0, 1, 1], [], []>} : vector<2x256xf32>, vector<256x256xf32>, vector<2x256xf32> -> vector<2x256xf32>
    %c14 = arith.constant 14 : index
    %c0_95 = arith.constant 0 : index
    %187 = vector.load %arg14[%c14, %c0_95] : memref<16x512xf32, #tpu.memory_space<vmem>>, vector<1x256xf32>
    %188 = vector.broadcast %187 : vector<1x256xf32> to vector<2x256xf32>
    %189 = arith.addf %186, %188 : vector<2x256xf32>
    %c0_96 = arith.constant 0 : index
    %c0_97 = arith.constant 0 : index
    %190 = vector.load %arg1[%c0_96, %c0_97] : memref<2x128xi32, #tpu.memory_space<vmem>>, vector<2x128xi32>
    %c0_i32 = arith.constant 0 : i32
    %191 = vector.broadcast %c0_i32 : i32 to vector<2x128xi32>
    %192 = arith.cmpi ne, %190, %191 : vector<2x128xi32>
    %193 = vector.extract_strided_slice %189 {offsets = [0, 0], sizes = [2, 128], strides = [1, 1]} : vector<2x256xf32> to vector<2x128xf32>
    %cst_98 = arith.constant -1.000000e+08 : f32
    %194 = vector.broadcast %cst_98 : f32 to vector<2x128xf32>
    %195 = arith.select %192, %193, %194 : vector<2x128xi1>, vector<2x128xf32>
    %cst_99 = arith.constant dense<0xFF800000> : vector<2xf32>
    %196 = vector.multi_reduction <maximumf>, %195, %cst_99 [1] : vector<2x128xf32> to vector<2xf32>
    %197 = vector.shape_cast %196 : vector<2xf32> to vector<2x1xf32>
    %198 = vector.broadcast %197 : vector<2x1xf32> to vector<2x128xf32>
    %199 = arith.subf %195, %198 : vector<2x128xf32>
    %200 = math.exp %199 : vector<2x128xf32>
    %cst_100 = arith.constant dense<0.000000e+00> : vector<2xf32>
    %201 = vector.multi_reduction <add>, %200, %cst_100 [1] : vector<2x128xf32> to vector<2xf32>
    %202 = vector.shape_cast %201 : vector<2xf32> to vector<2x1xf32>
    %203 = math.log %202 : vector<2x1xf32>
    %204 = vector.broadcast %203 : vector<2x1xf32> to vector<2x128xf32>
    %205 = arith.subf %199, %204 : vector<2x128xf32>
    %c0_101 = arith.constant 0 : index
    %c0_102 = arith.constant 0 : index
    %206 = vector.load %arg15[%c0_101, %c0_102] : memref<2x128xf32, #tpu.memory_space<vmem>>, vector<2x128xf32>
    tpu.vector_store %arg15[%c0_101, %c0_102], %205 {strides = array<i32>} : memref<2x128xf32, #tpu.memory_space<vmem>>, vector<2x128xf32>,
    %207 = vector.extract_strided_slice %189 {offsets = [0, 128], sizes = [2, 128], strides = [1, 1]} : vector<2x256xf32> to vector<2x128xf32>
    %208 = math.tanh %207 : vector<2x128xf32>
    %c0_103 = arith.constant 0 : index
    %c0_104 = arith.constant 0 : index
    %209 = vector.load %arg16[%c0_103, %c0_104] : memref<2x128xf32, #tpu.memory_space<vmem>>, vector<2x128xf32>
    tpu.vector_store %arg16[%c0_103, %c0_104], %208 {strides = array<i32>} : memref<2x128xf32, #tpu.memory_space<vmem>>, vector<2x128xf32>,
    return
  }
}

</mosaic_0001>

<bundles_post_ra>
// kernel: tpu_custom_call.1
= control target key start
LH: loop header
LB: loop body
LE: loop exit
PB: predicated region body
PF: predicated region fallthrough
CT: control target
= control target key end

     0   :  { %s6604_s0 = inlined_call_operand.hbm [shape: f32[16,128], index: 0, kind: input, shape index: {}]   ;;  %s6605_s1 = inlined_call_operand.hbm [shape: s32[2,128], index: 1, kind: input, shape index: {}]   ;;  %s6606_s2 = inlined_call_operand.hbm [shape: f32[128,128], index: 2, kind: input, shape index: {}]   ;;  %s6607_s3 = inlined_call_operand.hbm [shape: f32[128,256], index: 3, kind: input, shape index: {}]   ;;  %s6608_s4 = inlined_call_operand.hbm [shape: f32[3,16,16], index: 4, kind: input, shape index: {}]   ;;  %s6609_s5 = inlined_call_operand.hbm [shape: f32[256,128], index: 5, kind: input, shape index: {}]   ;;  %s6610_s6 = inlined_call_operand.hbm [shape: f32[128,256], index: 6, kind: input, shape index: {}]   ;;  %s6611_s7 = inlined_call_operand.hbm [shape: f32[256,128], index: 7, kind: input, shape index: {}]   ;;  %s6612_s8 = inlined_call_operand.hbm [shape: f32[128,512], index: 8, kind: input, shape index: {}]   ;;  %s6613_s9 = inlined_call_operand.hbm [shape: f32[512,256], index: 9, kind: input, shape index: {}]   ;;  %s6614_s10 = inlined_call_operand.hbm [shape: f32[256,512], index: 10, kind: input, shape index: {}]   ;;  %s6615_s11 = inlined_call_operand.hbm [shape: f32[512,256], index: 11, kind: input, shape index: {}]   ;;  %s6616_s12 = inlined_call_operand.hbm [shape: f32[2048,256], index: 12, kind: input, shape index: {}]   ;;  %s6617_s13 = inlined_call_operand.hbm [shape: f32[256,256], index: 13, kind: input, shape index: {}]   ;;  %s6618_s14 = inlined_call_operand.hbm [shape: f32[16,512], index: 14, kind: input, shape index: {}]   ;;  %s6619_s15 = inlined_call_operand.hbm [shape: f32[2,128], index: 15, kind: output, shape index: {0}]   ;;  %s6620_s16 = inlined_call_operand.hbm [shape: f32[2,128], index: 16, kind: output, shape index: {1}]  }
   0x1   :  { %6622 = sst [smem:[#allocation39_spill]] %s6604_s0 }
   0x2   :  { %22 = vsyncpa [#allocation3], 0 }
   0x3   :  { %23 = vsyncpa [#allocation6], 0 }
   0x4   :  { %24 = vsyncpa [#allocation9], 0 }
   0x5   :  { %25 = vsyncpa [#allocation12], 0 }
   0x6   :  { %26 = vsyncpa [#allocation15], 0 }
   0x7   :  { %27 = vsyncpa [#allocation18], 0 }
   0x8   :  { %28 = vsyncpa [#allocation21], 0 }
   0x9   :  { %29 = vsyncpa [#allocation24], 0 }
   0xa   :  { %30 = vsyncpa [#allocation4], 0 }
   0xb   :  { %31 = vsyncpa [#allocation28], 0  ;;  %s5841_s21 = smov [#allocation5]   ;;  %s5842_s23 = smov [#allocation8]  }
   0xc   :  { %s50_s22 = sshll.u32 %s5841_s21, 4  ;;  %s71_s24 = sshll.u32 %s5842_s23, 4  ;;  %s51_s22 = int_to_ptr.vmem [resolvable:$true] %s50_s22  ;;  %s5950_s24 = int_to_ptr.vmem [resolvable:$true] %s71_s24 }
   0xd   :  { %s5447_s27 = scalar_lea.hbm %s6605_s1, 32 }
   0xe   :  { %p5448_p0 = scmp.ne.s32.totalorder %s6605_s1, %s5447_s27  ;;  %p5451_p1 = scmp.lt.u32.totalorder %s5447_s27, %s6605_s1 }
  0x10   :  { %p5453_p2 = pnand %p5451_p1, %p5448_p0 }
  0x12   :  { %5456 = shalt.err (!%p5453_p2)
}
  0x13   :  { %s5457_s17 = scalar_lea.vmem %s51_s22, 32  ;;  %p5462_p4 = scmp.lt.s32.totalorder %s51_s22, %s51_s22 }
  0x14   :  { %p5458_p3 = scmp.ne.s32.totalorder %s51_s22, %s5457_s17  ;;  %p5463_p5 = scmp.lt.s32.totalorder %s5457_s17, %s5457_s17 }
  0x16   :  { %p5464_p6 = por %p5463_p5, %p5462_p4 }
  0x18   :  { %p5465_p7 = pnand %p5464_p6, %p5458_p3 }
  0x1a   :  { %5468 = shalt.err (!%p5465_p7)
}
  0x1b   :  { %53 = dma.hbm_to_vmem [thread:$0]  %s6605_s1, 32, %s51_s22, [#allocation6]  }
  0x1c   :  { %s5469_s23 = scalar_lea.hbm %s6607_s3, 4096 }
  0x1d   :  { %p5470_p8 = scmp.ne.s32.totalorder %s6607_s3, %s5469_s23  ;;  %p5473_p9 = scmp.lt.u32.totalorder %s5469_s23, %s6607_s3 }
  0x1f   :  { %p5475_p10 = pnand %p5473_p9, %p5470_p8 }
  0x21   :  { %5478 = shalt.err (!%p5475_p10)
}
  0x22   :  { %s5479_s29 = scalar_lea.vmem %s5950_s24, 4096  ;;  %p5484_p12 = scmp.lt.s32.totalorder %s5950_s24, %s5950_s24 }
  0x23   :  { %p5480_p11 = scmp.ne.s32.totalorder %s5950_s24, %s5479_s29  ;;  %p5485_p13 = scmp.lt.s32.totalorder %s5479_s29, %s5479_s29 }
  0x25   :  { %p5486_p0 = por %p5485_p13, %p5484_p12 }
  0x27   :  { %p5487_p1 = pnand %p5486_p0, %p5480_p11 }
  0x29   :  { %5490 = shalt.err (!%p5487_p1)
}
  0x2a   :  { %s5843_s1 = smov 256   ;;  %s5844_s22 = smov 16  }
  0x2b   :  { %77 = dma.hbm_to_vmem [thread:$0]  %s6607_s3, 4096, %s5950_s24, [#allocation9], %s5843_s1, %s5843_s1, %s5844_s22  }
  0x2c   :  { %s5845_s17 = smov [#allocation11]   ;;  %s5846_s19 = smov [#allocation14]  }
  0x2d   :  { %s95_s18 = sshll.u32 %s5845_s17, 4  ;;  %s119_s20 = sshll.u32 %s5846_s19, 4  ;;  %s96_s18 = int_to_ptr.vmem [resolvable:$true] %s95_s18  ;;  %s5984_s20 = int_to_ptr.vmem [resolvable:$true] %s119_s20 }
  0x2e   :  { %s5491_s25 = scalar_lea.hbm %s6609_s5, 4096 }
  0x2f   :  { %p5492_p2 = scmp.ne.s32.totalorder %s6609_s5, %s5491_s25  ;;  %p5495_p3 = scmp.lt.u32.totalorder %s5491_s25, %s6609_s5 }
  0x31   :  { %p5497_p4 = pnand %p5495_p3, %p5492_p2 }
  0x33   :  { %5500 = shalt.err (!%p5497_p4)
}
  0x34   :  { %s5501_s3 = scalar_lea.vmem %s96_s18, 4096  ;;  %p5506_p6 = scmp.lt.s32.totalorder %s96_s18, %s96_s18 }
  0x35   :  { %p5502_p5 = scmp.ne.s32.totalorder %s96_s18, %s5501_s3  ;;  %p5507_p7 = scmp.lt.s32.totalorder %s5501_s3, %s5501_s3 }
  0x37   :  { %p5508_p8 = por %p5507_p7, %p5506_p6 }
  0x39   :  { %p5509_p9 = pnand %p5508_p8, %p5502_p5 }
  0x3b   :  { %5512 = shalt.err (!%p5509_p9)
}
  0x3c   :  { %s5847_s24 = smov 128   ;;  %s5848_s30 = smov 8  }
  0x3d   :  { %101 = dma.hbm_to_vmem [thread:$0]  %s6609_s5, 4096, %s96_s18, [#allocation12], %s5847_s24, %s5847_s24, %s5848_s30  }
  0x3e   :  { %s5513_s23 = scalar_lea.hbm %s6611_s7, 4096 }
  0x3f   :  { %p5514_p10 = scmp.ne.s32.totalorder %s6611_s7, %s5513_s23  ;;  %p5517_p11 = scmp.lt.u32.totalorder %s5513_s23, %s6611_s7 }
  0x41   :  { %p5519_p12 = pnand %p5517_p11, %p5514_p10 }
  0x43   :  { %5522 = shalt.err (!%p5519_p12)
}
  0x44   :  { %s5523_s29 = scalar_lea.vmem %s5984_s20, 4096  ;;  %p5528_p0 = scmp.lt.s32.totalorder %s5984_s20, %s5984_s20 }
  0x45   :  { %p5524_p13 = scmp.ne.s32.totalorder %s5984_s20, %s5523_s29  ;;  %p5529_p1 = scmp.lt.s32.totalorder %s5523_s29, %s5523_s29 }
  0x47   :  { %p5530_p2 = por %p5529_p1, %p5528_p0 }
  0x49   :  { %p5531_p3 = pnand %p5530_p2, %p5524_p13 }
  0x4b   :  { %5534 = shalt.err (!%p5531_p3)
}
  0x4c   :  { %125 = dma.hbm_to_vmem [thread:$0]  %s6611_s7, 4096, %s5984_s20, [#allocation15], %s5847_s24, %s5847_s24, %s5848_s30  }
  0x4d   :  { %s5849_s3 = smov [#allocation17]   ;;  %s5850_s17 = smov [#allocation20]  }
  0x4e   :  { %s143_s0 = sshll.u32 %s5849_s3, 4  ;;  %s167_s19 = sshll.u32 %s5850_s17, 4  ;;  %s144_s0 = int_to_ptr.vmem [resolvable:$true] %s143_s0  ;;  %s6021_s19 = int_to_ptr.vmem [resolvable:$true] %s167_s19 }
  0x4f   :  { %s5535_s25 = scalar_lea.hbm %s6613_s9, 16384 }
  0x50   :  { %p5536_p4 = scmp.ne.s32.totalorder %s6613_s9, %s5535_s25  ;;  %p5539_p5 = scmp.lt.u32.totalorder %s5535_s25, %s6613_s9 }
  0x52   :  { %p5541_p6 = pnand %p5539_p5, %p5536_p4 }
  0x54   :  { %5544 = shalt.err (!%p5541_p6)
}
  0x55   :  { %s5545_s7 = scalar_lea.vmem %s144_s0, 16384  ;;  %p5550_p8 = scmp.lt.s32.totalorder %s144_s0, %s144_s0 }
  0x56   :  { %p5546_p7 = scmp.ne.s32.totalorder %s144_s0, %s5545_s7  ;;  %p5551_p9 = scmp.lt.s32.totalorder %s5545_s7, %s5545_s7 }
  0x58   :  { %p5552_p10 = por %p5551_p9, %p5550_p8 }
  0x5a   :  { %p5553_p11 = pnand %p5552_p10, %p5546_p7 }
  0x5c   :  { %5556 = shalt.err (!%p5553_p11)
}
  0x5d   :  { %149 = dma.hbm_to_vmem [thread:$0]  %s6613_s9, 16384, %s144_s0, [#allocation18], %s5843_s1, %s5843_s1, %s5844_s22  }
  0x5e   :  { %s5557_s17 = scalar_lea.hbm %s6615_s11, 16384 }
  0x5f   :  { %p5558_p12 = scmp.ne.s32.totalorder %s6615_s11, %s5557_s17  ;;  %p5561_p13 = scmp.lt.u32.totalorder %s5557_s17, %s6615_s11 }
  0x61   :  { %p5563_p0 = pnand %p5561_p13, %p5558_p12 }
  0x63   :  { %5566 = shalt.err (!%p5563_p0)
}
  0x64   :  { %s5567_s27 = scalar_lea.vmem %s6021_s19, 16384  ;;  %p5572_p2 = scmp.lt.s32.totalorder %s6021_s19, %s6021_s19 }
  0x65   :  { %p5568_p1 = scmp.ne.s32.totalorder %s6021_s19, %s5567_s27  ;;  %p5573_p3 = scmp.lt.s32.totalorder %s5567_s27, %s5567_s27 }
  0x67   :  { %p5574_p4 = por %p5573_p3, %p5572_p2 }
  0x69   :  { %p5575_p5 = pnand %p5574_p4, %p5568_p1 }
  0x6b   :  { %5578 = shalt.err (!%p5575_p5)
}
  0x6c   :  { %173 = dma.hbm_to_vmem [thread:$0]  %s6615_s11, 16384, %s6021_s19, [#allocation21], %s5843_s1, %s5843_s1, %s5844_s22  }
  0x6d   :  { %s5851_s28 = smov [#allocation23]   ;;  %s5852_s7 = smov [#allocation2]  }
  0x6e   :  { %s191_s29 = sshll.u32 %s5851_s28, 4  ;;  %s37_s20 = sshll.u32 %s5852_s7, 4  ;;  %s192_s29 = int_to_ptr.vmem [resolvable:$true] %s191_s29  ;;  %s6058_s20 = int_to_ptr.vmem [resolvable:$true] %s37_s20 }
  0x6f   :  { %s5579_s3 = scalar_lea.hbm %s6617_s13, 8192 }
  0x70   :  { %p5580_p6 = scmp.ne.s32.totalorder %s6617_s13, %s5579_s3  ;;  %p5583_p7 = scmp.lt.u32.totalorder %s5579_s3, %s6617_s13 }
  0x72   :  { %p5585_p8 = pnand %p5583_p7, %p5580_p6 }
  0x74   :  { %5588 = shalt.err (!%p5585_p8)
}
  0x75   :  { %s5589_s11 = scalar_lea.vmem %s192_s29, 8192  ;;  %p5594_p10 = scmp.lt.s32.totalorder %s192_s29, %s192_s29 }
  0x76   :  { %p5590_p9 = scmp.ne.s32.totalorder %s192_s29, %s5589_s11  ;;  %p5595_p11 = scmp.lt.s32.totalorder %s5589_s11, %s5589_s11 }
  0x78   :  { %p5596_p12 = por %p5595_p11, %p5594_p10 }
  0x7a   :  { %p5597_p13 = pnand %p5596_p12, %p5590_p9 }
  0x7c   :  { %5600 = shalt.err (!%p5597_p13)
}
  0x7d   :  { %197 = dma.hbm_to_vmem [thread:$0]  %s6617_s13, 8192, %s192_s29, [#allocation24], %s5843_s1, %s5843_s1, %s5844_s22  }
  0x7e   :  { %s6623_s0 = sld [smem:[#allocation39_spill]] }
  0x84   :  { %s5601_s28 = scalar_lea.hbm %s6623_s0, 256 }
  0x85   :  { %p5602_p0 = scmp.ne.s32.totalorder %s6623_s0, %s5601_s28  ;;  %p5605_p1 = scmp.lt.u32.totalorder %s5601_s28, %s6623_s0 }
  0x87   :  { %p5607_p2 = pnand %p5605_p1, %p5602_p0 }
  0x89   :  { %5610 = shalt.err (!%p5607_p2)
}
  0x8a   :  { %s5611_s17 = scalar_lea.vmem %s6058_s20, 256  ;;  %p5616_p4 = scmp.lt.s32.totalorder %s6058_s20, %s6058_s20 }
  0x8b   :  { %p5612_p3 = scmp.ne.s32.totalorder %s6058_s20, %s5611_s17  ;;  %p5617_p5 = scmp.lt.s32.totalorder %s5611_s17, %s5611_s17 }
  0x8d   :  { %p5618_p6 = por %p5617_p5, %p5616_p4 }
  0x8f   :  { %p5619_p7 = pnand %p5618_p6, %p5612_p3 }
  0x91   :  { %5622 = shalt.err (!%p5619_p7)
}
  0x92   :  { %43 = dma.hbm_to_vmem [thread:$0]  %s6623_s0, 256, %s6058_s20, [#allocation3], %s5847_s24, %s5847_s24, %s5848_s30  }
  0x93   :  { %s5853_s21 = smov [#allocation7]   ;;  %s5854_s25 = smov [#allocation10]  }
  0x94   :  { %s59_s23 = sshll.u32 %s5853_s21, 4  ;;  %s83_s11 = sshll.u32 %s5854_s25, 4  ;;  %s60_s23 = int_to_ptr.vmem [resolvable:$true] %s59_s23  ;;  %s6095_s11 = int_to_ptr.vmem [resolvable:$true] %s83_s11 }
  0x95   :  { %s5623_s27 = scalar_lea.hbm %s6606_s2, 2048 }
  0x96   :  { %p5624_p8 = scmp.ne.s32.totalorder %s6606_s2, %s5623_s27  ;;  %p5627_p9 = scmp.lt.u32.totalorder %s5623_s27, %s6606_s2 }
  0x98   :  { %p5629_p10 = pnand %p5627_p9, %p5624_p8 }
  0x9a   :  { %5632 = shalt.err (!%p5629_p10)
}
  0x9b   :  { %s5633_s20 = scalar_lea.vmem %s60_s23, 2048  ;;  %p5638_p12 = scmp.lt.s32.totalorder %s60_s23, %s60_s23 }
  0x9c   :  { %p5634_p11 = scmp.ne.s32.totalorder %s60_s23, %s5633_s20  ;;  %p5639_p13 = scmp.lt.s32.totalorder %s5633_s20, %s5633_s20 }
  0x9e   :  { %p5640_p0 = por %p5639_p13, %p5638_p12 }
  0xa0   :  { %p5641_p1 = pnand %p5640_p0, %p5634_p11 }
  0xa2   :  { %5644 = shalt.err (!%p5641_p1)
}
  0xa3   :  { %65 = dma.hbm_to_vmem [thread:$0]  %s6606_s2, 2048, %s60_s23, [#allocation6], %s5847_s24, %s5847_s24, %s5848_s30  }
  0xa4   :  { %s5645_s13 = scalar_lea.hbm %s6608_s4, 768 }
  0xa5   :  { %p5646_p2 = scmp.ne.s32.totalorder %s6608_s4, %s5645_s13  ;;  %p5649_p3 = scmp.lt.u32.totalorder %s5645_s13, %s6608_s4 }
  0xa7   :  { %p5651_p4 = pnand %p5649_p3, %p5646_p2 }
  0xa9   :  { %5654 = shalt.err (!%p5651_p4)
}
  0xaa   :  { %s5655_s26 = scalar_lea.vmem %s6095_s11, 768  ;;  %p5660_p6 = scmp.lt.s32.totalorder %s6095_s11, %s6095_s11 }
  0xab   :  { %p5656_p5 = scmp.ne.s32.totalorder %s6095_s11, %s5655_s26  ;;  %p5661_p7 = scmp.lt.s32.totalorder %s5655_s26, %s5655_s26 }
  0xad   :  { %p5662_p8 = por %p5661_p7, %p5660_p6 }
  0xaf   :  { %p5663_p9 = pnand %p5662_p8, %p5656_p5 }
  0xb1   :  { %5666 = shalt.err (!%p5663_p9)
}
  0xb2   :  { %89 = dma.hbm_to_vmem [thread:$0]  %s6608_s4, 768, %s6095_s11, [#allocation9], %s5847_s24, %s5847_s24, %s5848_s30  }
  0xb3   :  { %s5855_s27 = smov [#allocation13]   ;;  %s5856_s28 = smov [#allocation16]  }
  0xb4   :  { %s107_s9 = sshll.u32 %s5855_s27, 4  ;;  %s131_s7 = sshll.u32 %s5856_s28, 4  ;;  %s108_s9 = int_to_ptr.vmem [resolvable:$true] %s107_s9  ;;  %s6132_s7 = int_to_ptr.vmem [resolvable:$true] %s131_s7 }
  0xb5   :  { %s5667_s0 = scalar_lea.hbm %s6610_s6, 4096 }
  0xb6   :  { %p5668_p10 = scmp.ne.s32.totalorder %s6610_s6, %s5667_s0  ;;  %p5671_p11 = scmp.lt.u32.totalorder %s5667_s0, %s6610_s6 }
  0xb8   :  { %p5673_p12 = pnand %p5671_p11, %p5668_p10 }
  0xba   :  { %5676 = shalt.err (!%p5673_p12)
}
  0xbb   :  { %s5677_s4 = scalar_lea.vmem %s108_s9, 4096  ;;  %p5682_p0 = scmp.lt.s32.totalorder %s108_s9, %s108_s9 }
  0xbc   :  { %p5678_p13 = scmp.ne.s32.totalorder %s108_s9, %s5677_s4  ;;  %p5683_p1 = scmp.lt.s32.totalorder %s5677_s4, %s5677_s4 }
  0xbe   :  { %p5684_p2 = por %p5683_p1, %p5682_p0 }
  0xc0   :  { %p5685_p3 = pnand %p5684_p2, %p5678_p13 }
  0xc2   :  { %5688 = shalt.err (!%p5685_p3)
}
  0xc3   :  { %113 = dma.hbm_to_vmem [thread:$0]  %s6610_s6, 4096, %s108_s9, [#allocation12], %s5843_s1, %s5843_s1, %s5844_s22  }
  0xc4   :  { %s5689_s21 = scalar_lea.hbm %s6612_s8, 8192 }
  0xc5   :  { %p5690_p4 = scmp.ne.s32.totalorder %s6612_s8, %s5689_s21  ;;  %p5693_p5 = scmp.lt.u32.totalorder %s5689_s21, %s6612_s8 }
  0xc7   :  { %p5695_p6 = pnand %p5693_p5, %p5690_p4 }
  0xc9   :  { %5698 = shalt.err (!%p5695_p6)
}
  0xca   :  { %s5699_s23 = scalar_lea.vmem %s6132_s7, 8192  ;;  %p5704_p8 = scmp.lt.s32.totalorder %s6132_s7, %s6132_s7 }
  0xcb   :  { %p5700_p7 = scmp.ne.s32.totalorder %s6132_s7, %s5699_s23  ;;  %p5705_p9 = scmp.lt.s32.totalorder %s5699_s23, %s5699_s23 }
  0xcd   :  { %p5706_p10 = por %p5705_p9, %p5704_p8 }
  0xcf   :  { %p5707_p11 = pnand %p5706_p10, %p5700_p7 }
  0xd1   :  { %5710 = shalt.err (!%p5707_p11)
}
  0xd2   :  { %s5857_s6 = smov 512   ;;  %s5858_s27 = smov 32  }
  0xd3   :  { %137 = dma.hbm_to_vmem [thread:$0]  %s6612_s8, 8192, %s6132_s7, [#allocation15], %s5857_s6, %s5857_s6, %s5858_s27  }
  0xd4   :  { %s5859_s5 = smov [#allocation19]   ;;  %s5860_s0 = smov [#allocation22]  }
  0xd5   :  { %s155_s20 = sshll.u32 %s5859_s5, 4  ;;  %s179_s18 = sshll.u32 %s5860_s0, 4  ;;  %s156_s20 = int_to_ptr.vmem [resolvable:$true] %s155_s20  ;;  %s6169_s18 = int_to_ptr.vmem [resolvable:$true] %s179_s18 }
  0xd6   :  { %s5711_s13 = scalar_lea.hbm %s6614_s10, 16384 }
  0xd7   :  { %p5712_p12 = scmp.ne.s32.totalorder %s6614_s10, %s5711_s13  ;;  %p5715_p13 = scmp.lt.u32.totalorder %s5711_s13, %s6614_s10 }
  0xd9   :  { %p5717_p0 = pnand %p5715_p13, %p5712_p12 }
  0xdb   :  { %5720 = shalt.err (!%p5717_p0)
}
  0xdc   :  { %s5721_s8 = scalar_lea.vmem %s156_s20, 16384  ;;  %p5726_p2 = scmp.lt.s32.totalorder %s156_s20, %s156_s20 }
  0xdd   :  { %p5722_p1 = scmp.ne.s32.totalorder %s156_s20, %s5721_s8  ;;  %p5727_p3 = scmp.lt.s32.totalorder %s5721_s8, %s5721_s8 }
  0xdf   :  { %p5728_p4 = por %p5727_p3, %p5726_p2 }
  0xe1   :  { %p5729_p5 = pnand %p5728_p4, %p5722_p1 }
  0xe3   :  { %5732 = shalt.err (!%p5729_p5)
}
  0xe4   :  { %161 = dma.hbm_to_vmem [thread:$0]  %s6614_s10, 16384, %s156_s20, [#allocation18], %s5857_s6, %s5857_s6, %s5858_s27  }
  0xe5   :  { %s5733_s19 = scalar_lea.hbm %s6616_s12, 65536 }
  0xe6   :  { %p5734_p6 = scmp.ne.s32.totalorder %s6616_s12, %s5733_s19  ;;  %p5737_p7 = scmp.lt.u32.totalorder %s5733_s19, %s6616_s12 }
  0xe8   :  { %p5739_p8 = pnand %p5737_p7, %p5734_p6 }
  0xea   :  { %5742 = shalt.err (!%p5739_p8)
}
  0xeb   :  { %s5743_s28 = scalar_lea.vmem %s6169_s18, 65536  ;;  %p5748_p10 = scmp.lt.s32.totalorder %s6169_s18, %s6169_s18 }
  0xec   :  { %p5744_p9 = scmp.ne.s32.totalorder %s6169_s18, %s5743_s28  ;;  %p5749_p11 = scmp.lt.s32.totalorder %s5743_s28, %s5743_s28 }
  0xee   :  { %p5750_p12 = por %p5749_p11, %p5748_p10 }
  0xf0   :  { %p5751_p13 = pnand %p5750_p12, %p5744_p9 }
  0xf2   :  { %5754 = shalt.err (!%p5751_p13)
}
  0xf3   :  { %185 = dma.hbm_to_vmem [thread:$0]  %s6616_s12, 65536, %s6169_s18, [#allocation21], %s5843_s1, %s5843_s1, %s5844_s22  }
  0xf4   :  { %s5861_s20 = smov [#allocation25]   ;;  %s5755_s13 = scalar_lea.hbm %s6618_s14, 1024 }
  0xf5   :  { %s203_s0 = sshll.u32 %s5861_s20, 4  ;;  %p5756_p0 = scmp.ne.s32.totalorder %s6618_s14, %s5755_s13  ;;  %s204_s0 = int_to_ptr.vmem [resolvable:$true] %s203_s0 }
  0xf6   :  { %p5759_p1 = scmp.lt.u32.totalorder %s5755_s13, %s6618_s14 }
  0xf8   :  { %p5761_p2 = pnand %p5759_p1, %p5756_p0 }
  0xfa   :  { %5764 = shalt.err (!%p5761_p2)
}
  0xfb   :  { %s5765_s8 = scalar_lea.vmem %s204_s0, 1024  ;;  %p5770_p4 = scmp.lt.s32.totalorder %s204_s0, %s204_s0 }
  0xfc   :  { %p5766_p3 = scmp.ne.s32.totalorder %s204_s0, %s5765_s8  ;;  %p5771_p5 = scmp.lt.s32.totalorder %s5765_s8, %s5765_s8 }
  0xfe   :  { %p5772_p6 = por %p5771_p5, %p5770_p4 }
 0x100   :  { %p5773_p7 = pnand %p5772_p6, %p5766_p3 }
 0x102   :  { %5776 = shalt.err (!%p5773_p7)
}
 0x103   :  { %209 = dma.hbm_to_vmem [thread:$0]  %s6618_s14, 1024, %s204_s0, [#allocation24], %s5857_s6, %s5857_s6, %s5858_s27  }
 0x104   :  { %5821 = dma.done.wait [#allocation3], 256  }
 0x105   :  { %5822 = vsyncadd [#allocation3], 4294967040 }
 0x106   :  { %5823 = dma.done.wait [#allocation6], 2080  }
 0x107   :  { %5824 = vsyncadd [#allocation6], 4294965216 }
 0x108   :  { %5825 = dma.done.wait [#allocation9], 4864  }
 0x109   :  { %5826 = vsyncadd [#allocation9], 4294962432 }
 0x10a   :  { %5827 = dma.done.wait [#allocation12], 8192  }
 0x10b   :  { %5828 = vsyncadd [#allocation12], 4294959104 }
 0x10c   :  { %5829 = dma.done.wait [#allocation15], 12288  }
 0x10d   :  { %5830 = vsyncadd [#allocation15], 4294955008 }
 0x10e   :  { %5831 = dma.done.wait [#allocation18], 32768  }
 0x10f   :  { %5832 = vsyncadd [#allocation18], 4294934528 }
 0x110   :  { %5833 = dma.done.wait [#allocation21], 81920  }
 0x111   :  { %5834 = vsyncadd [#allocation21], 4294885376 }
 0x112   :  { %5835 = dma.done.wait [#allocation24], 9216  }
 0x113   :  { %5836 = vsyncadd [#allocation24], 4294958080  ;;  %v257_v0 = vld [vmem:[#allocation7] sm:$0xff]  ;;  %v258_v1 = vld [vmem:[#allocation7 + $0x8] sm:$0xff]  ;;  %vm477_vm0 = vcmask 130048   ;;  %vm634_vm3 = vcmask 1040384  }
 0x114   :  { %v259_v2 = vld [vmem:[#allocation7 + $0x10] sm:$0xff]  ;;  %v4181_v3 = vpack.c.bf16 %v258_v1, %v257_v0  ;;  %v260_v4 = vld [vmem:[#allocation7 + $0x18] sm:$0xff]  ;;  %v261_v6 = vld [vmem:[#allocation7 + $0x20] sm:$0xff]  ;;  %s5863_s14 = smov [#allocation27]  }
 0x115   :  { %v4185_v5 = vpack.c.bf16 %v260_v4, %v259_v2  ;;  %v262_v7 = vld [vmem:[#allocation7 + $0x28] sm:$0xff]  ;;  %v263_v10 = vld [vmem:[#allocation7 + $0x30] sm:$0xff]  ;;  %v264_v11 = vld [vmem:[#allocation7 + $0x38] sm:$0xff]  ;;  %s3997_s22 = sshll.u32 %s5863_s14, 4  ;;  %s3998_s22 = int_to_ptr.vmem [resolvable:$true] %s3997_s22 }
 0x116   :  { %4182 = vmatprep.subr.bf16.mxu0 %v4181_v3  ;;  %v4189_v8 = vpack.c.bf16 %v262_v7, %v261_v6  ;;  %v255_v9 = vld [vmem:[#allocation2] sm:$0xff]  ;;  %v4193_v12 = vpack.c.bf16 %v264_v11, %v263_v10  ;;  %v265_v13 = vld [vmem:[#allocation7 + $0x40] sm:$0xff]  ;;  %v268_v17 = vld [vmem:[#allocation7 + $0x58] sm:$0xff]  ;;  %v5862_v10 = vmov 0.0   ;;  %s5777_s6 = scalar_lea.vmem %s3998_s22, 32  ;;  %p5782_p9 = scmp.lt.s32.totalorder %s3998_s22, %s3998_s22 }
 0x117   :  { %4184 = vmatpush3.bf16.msra.mxu0 %v4181_v3  ;;  %4178 = vmatprep.mubr.f32.mxu0 %v255_v9  ;;  %v266_v14 = vld [vmem:[#allocation7 + $0x48] sm:$0xff]  ;;  %v267_v16 = vld [vmem:[#allocation7 + $0x50] sm:$0xff]  ;;  %v269_v19 = vld [vmem:[#allocation7 + $0x60] sm:$0xff]  ;;  %p5778_p8 = scmp.ne.s32.totalorder %s3998_s22, %s5777_s6  ;;  %p5783_p10 = scmp.lt.s32.totalorder %s5777_s6, %s5777_s6 }
 0x118   :  { %4186 = vmatprep.subr.bf16.mxu0 %v4185_v5  ;;  %v4197_v15 = vpack.c.bf16 %v266_v14, %v265_v13  ;;  %v4201_v18 = vpack.c.bf16 %v268_v17, %v267_v16  ;;  %v270_v20 = vld [vmem:[#allocation7 + $0x68] sm:$0xff]  ;;  %v271_v22 = vld [vmem:[#allocation7 + $0x70] sm:$0xff]  ;;  %v272_v23 = vld [vmem:[#allocation7 + $0x78] sm:$0xff] }
 0x119   :  { %v4205_v21 = vpack.c.bf16 %v270_v20, %v269_v19  ;;  %v4209_v24 = vpack.c.bf16 %v272_v23, %v271_v22  ;;  %v350_v25 = vld [vmem:[#allocation8 + $0x8] sm:$0xff]  ;;  %v352_v26 = vld [vmem:[#allocation8 + $0x18] sm:$0xff]  ;;  %v349_v28 = vld [vmem:[#allocation8] sm:$0xff]  ;;  %v384_v22 = vlaneseq  ;;  %p5784_p11 = por %p5783_p10, %p5782_p9 }
 0x11a   :  { %v4213_v27 = vpack.c.bf16 %v352_v26, %v350_v25  ;;  %v351_v29 = vld [vmem:[#allocation8 + $0x10] sm:$0xff]  ;;  %v354_v30 = vld [vmem:[#allocation8 + $0x28] sm:$0xff]  ;;  %v356_v31 = vld [vmem:[#allocation8 + $0x38] sm:$0xff] }
 0x11b   :  { %4188 = vmatpush3.bf16.msra.mxu0 %v4185_v5  ;;  %v256_v32 = vld [vmem:[#allocation2 + $0x8] sm:$0xff]  ;;  %v4215_v33 = vpack.c.bf16 %v351_v29, %v349_v28  ;;  %v4217_v34 = vpack.c.bf16 %v356_v31, %v354_v30  ;;  %v353_v35 = vld [vmem:[#allocation8 + $0x20] sm:$0xff]  ;;  %v358_v37 = vld [vmem:[#allocation8 + $0x48] sm:$0xff]  ;;  %v6231_v23 = vshrl.u32 %v384_v22, 7  ;;  %p5785_p12 = pnand %p5784_p11, %p5778_p8 }
 0x11c   :  { %4190 = vmatprep.subr.bf16.mxu0 %v4189_v8  ;;  %v355_v36 = vld [vmem:[#allocation8 + $0x30] sm:$0xff]  ;;  %v360_v38 = vld [vmem:[#allocation8 + $0x58] sm:$0xff]  ;;  %v357_v41 = vld [vmem:[#allocation8 + $0x40] sm:$0xff] }
 0x11d   :  { %v4219_v39 = vpack.c.bf16 %v355_v36, %v353_v35  ;;  %v4221_v40 = vpack.c.bf16 %v360_v38, %v358_v37  ;;  %v359_v42 = vld [vmem:[#allocation8 + $0x50] sm:$0xff]  ;;  %v362_v43 = vld [vmem:[#allocation8 + $0x68] sm:$0xff]  ;;  %v364_v44 = vld [vmem:[#allocation8 + $0x78] sm:$0xff]  ;;  %v6237_v26 = vsub.s32 1, %v6231_v23 }
 0x11e   :  { %v4223_v45 = vpack.c.bf16 %v359_v42, %v357_v41  ;;  %v4225_v46 = vpack.c.bf16 %v364_v44, %v362_v43  ;;  %v361_v47 = vld [vmem:[#allocation8 + $0x60] sm:$0xff]  ;;  %v363_v48 = vld [vmem:[#allocation8 + $0x70] sm:$0xff]  ;;  %v366_v49 = vld [vmem:[#allocation8 + $0x88] sm:$0xff] }
 0x11f   :  { %4192 = vmatpush3.bf16.msra.mxu0 %v4189_v8  ;;  %v368_v50 = vld [vmem:[#allocation8 + $0x98] sm:$0xff]  ;;  %v4227_v51 = vpack.c.bf16 %v363_v48, %v361_v47  ;;  %v365_v53 = vld [vmem:[#allocation8 + $0x80] sm:$0xff]  ;;  %v367_v54 = vld [vmem:[#allocation8 + $0x90] sm:$0xff] }
 0x120   :  { %4194 = vmatprep.subr.bf16.mxu0 %v4193_v12  ;;  %v4229_v52 = vpack.c.bf16 %v368_v50, %v366_v49  ;;  %v370_v55 = vld [vmem:[#allocation8 + $0xa8] sm:$0xff]  ;;  %v372_v56 = vld [vmem:[#allocation8 + $0xb8] sm:$0xff]  ;;  %v4231_v57 = vpack.c.bf16 %v367_v54, %v365_v53  ;;  %v369_v59 = vld [vmem:[#allocation8 + $0xa0] sm:$0xff] }
 0x121   :  { %v4233_v58 = vpack.c.bf16 %v372_v56, %v370_v55  ;;  %v371_v60 = vld [vmem:[#allocation8 + $0xb0] sm:$0xff]  ;;  %v374_v61 = vld [vmem:[#allocation8 + $0xc8] sm:$0xff]  ;;  %v376_v62 = vld [vmem:[#allocation8 + $0xd8] sm:$0xff] }
 0x122   :  { %v4235_v63 = vpack.c.bf16 %v371_v60, %v369_v59  ;;  %v4237_v0 = vpack.c.bf16 %v376_v62, %v374_v61  ;;  %v373_v1 = vld [vmem:[#allocation8 + $0xc0] sm:$0xff]  ;;  %v375_v2 = vld [vmem:[#allocation8 + $0xd0] sm:$0xff]  ;;  %v378_v4 = vld [vmem:[#allocation8 + $0xe8] sm:$0xff] }
 0x123   :  { %4196 = vmatpush3.bf16.msra.mxu0 %v4193_v12  ;;  %v4239_v3 = vpack.c.bf16 %v375_v2, %v373_v1  ;;  %v380_v5 = vld [vmem:[#allocation8 + $0xf8] sm:$0xff]  ;;  %v377_v7 = vld [vmem:[#allocation8 + $0xe0] sm:$0xff]  ;;  %v379_v8 = vld [vmem:[#allocation8 + $0xf0] sm:$0xff] }
 0x124   :  { %4198 = vmatprep.subr.bf16.mxu0 %v4197_v15  ;;  %v4241_v6 = vpack.c.bf16 %v380_v5, %v378_v4  ;;  %v4243_v9 = vpack.c.bf16 %v379_v8, %v377_v7  ;;  %v273_v11 = vld [vmem:[#allocation25] ss:$0 sm:$0xff]  ;;  %v656_v17 = vld [vmem:[#allocation11 + $0x88] sm:$0xff]  ;;  %v475_v43 = vld [vmem:[#allocation10] sm:$0xff] }
 0x125   :  { %v655_v16 = vld [vmem:[#allocation11 + $0x80] sm:$0xff]  ;;  %v640_v20 = vld [vmem:[#allocation11 + $0x8] sm:$0xff]  ;;  %v476_v44 = vld [vmem:[#allocation10 + $0x8] sm:$0xff] }
 0x126   :  { %v4249_v19 = vpack.c.bf16 %v656_v17, %v655_v16  ;;  %v382_v25 = vld [vmem:[#allocation25 + $0x1] ss:$8 sm:$0x3]  ;;  %v641_v48 = vld [vmem:[#allocation11 + $0x10] sm:$0xff]  ;;  %v642_v49 = vld [vmem:[#allocation11 + $0x18] sm:$0xff] }
 0x127   :  { %4200 = vmatpush3.bf16.msra.mxu0 %v4197_v15  ;;  %v391_v29 = vrot.slane %v382_v25, %v6237_v26  ;;  %v4255_v50 = vpack.c.bf16 %v642_v49, %v641_v48  ;;  %v643_v54 = vld [vmem:[#allocation11 + $0x20] sm:$0xff]  ;;  %v644_v55 = vld [vmem:[#allocation11 + $0x28] sm:$0xff]  ;;  %v645_v60 = vld [vmem:[#allocation11 + $0x30] sm:$0xff] }
 0x128   :  { %4202 = vmatprep.subr.bf16.mxu0 %v4201_v18  ;;  %4250 = vmatprep.subr.bf16.mxu1 %v4249_v19  ;;  %v4259_v56 = vpack.c.bf16 %v644_v55, %v643_v54  ;;  %v646_v61 = vld [vmem:[#allocation11 + $0x38] sm:$0xff]  ;;  %v647_v2 = vld [vmem:[#allocation11 + $0x40] sm:$0xff]  ;;  %v665_v5 = vld [vmem:[#allocation11 + $0xd0] sm:$0xff] }
 0x129   :  { %v4263_v62 = vpack.c.bf16 %v646_v61, %v645_v60  ;;  %v649_v8 = vld [vmem:[#allocation11 + $0x50] sm:$0xff]  ;;  %v651_v17 = vld [vmem:[#allocation11 + $0x60] sm:$0xff]  ;;  %v758_v48 = vld [vmem:[#allocation13 + $0x78] sm:$0xff] }
 0x12a   :  { %v762_v54 = vld [vmem:[#allocation13 + $0x98] sm:$0xff] }
 0x12b   :  { %4204 = vmatpush3.bf16.msra.mxu0 %v4201_v18  ;;  %v639_v18 = vld [vmem:[#allocation11] sm:$0xff]  ;;  %v766_v60 = vld [vmem:[#allocation13 + $0xb8] sm:$0xff] }
 0x12c   :  { %4206 = vmatprep.subr.bf16.mxu0 %v4205_v21 }
 0x12f   :  { %4208 = vmatpush3.bf16.msra.mxu0 %v4205_v21  ;;  %v4251_v21 = vpack.c.bf16 %v640_v20, %v639_v18  ;;  %v652_v18 = vld [vmem:[#allocation11 + $0x68] sm:$0xff]  ;;  %v669_v20 = vld [vmem:[#allocation11 + $0xf0] sm:$0xff] }
 0x130   :  { %4210 = vmatprep.subr.bf16.mxu0 %v4209_v24  ;;  %v4275_v19 = vpack.c.bf16 %v652_v18, %v651_v17 }
 0x131   :  { %4252 = vmatpush3.bf16.msra.mxu1 %v4251_v21  ;;  %v670_v21 = vld [vmem:[#allocation11 + $0xf8] sm:$0xff] }
 0x133   :  { %4212 = vmatpush3.bf16.msra.mxu0 %v4209_v24  ;;  %v6234_v24 = vsub.s32 0, %v6231_v23 }
 0x134   :  { %4214 = vmatprep.subr.bf16.mxu0 %v4213_v27 }
 0x135   :  { %v387_v27 = vrot.slane %v382_v25, %v6234_v24  ;;  %v653_v25 = vld [vmem:[#allocation11 + $0x70] sm:$0xff] }
 0x136   :  { %4179 = vmatmul.mubr.f32.vlgmr.msra.gmra.mrb[0].mxu0 %v256_v32 }
 0x137   :  { %4216 = vmatpush1.bf16.msra.mxu0 %v4215_v33  ;;  %458 = vmatprep.mubr.f32.mxu0 %v5862_v10 }
 0x138   :  { %4218 = vmatprep.subr.bf16.mxu0 %v4217_v34 }
 0x13b   :  { %4220 = vmatpush1.bf16.msra.mxu0 %v4219_v39 }
 0x13c   :  { %4222 = vmatprep.subr.bf16.mxu0 %v4221_v40 }
 0x13f   :  { %4224 = vmatpush1.bf16.msra.mxu0 %v4223_v45  ;;  %v657_v45 = vld [vmem:[#allocation11 + $0x90] sm:$0xff] }
 0x140   :  { %4226 = vmatprep.subr.bf16.mxu0 %v4225_v46  ;;  %v658_v46 = vld [vmem:[#allocation11 + $0x98] sm:$0xff] }
 0x141   :  { %v4253_v47 = vpack.c.bf16 %v658_v46, %v657_v45  ;;  %v751_v45 = vld [vmem:[#allocation13 + $0x40] sm:$0xff]  ;;  %v753_v46 = vld [vmem:[#allocation13 + $0x50] sm:$0xff] }
 0x142   :  { %v4291_v49 = vpack.c.bf16 %v753_v46, %v751_v45 }
 0x143   :  { %4228 = vmatpush1.bf16.msra.mxu0 %v4227_v51  ;;  %4254 = vmatprep.subr.bf16.mxu1 %v4253_v47  ;;  %v659_v51 = vld [vmem:[#allocation11 + $0xa0] sm:$0xff]  ;;  %v756_v47 = vld [vmem:[#allocation13 + $0x68] sm:$0xff] }
 0x144   :  { %4230 = vmatprep.subr.bf16.mxu0 %v4229_v52  ;;  %4256 = vmatpush3.bf16.msra.mxu1 %v4255_v50  ;;  %v660_v52 = vld [vmem:[#allocation11 + $0xa8] sm:$0xff]  ;;  %v4293_v50 = vpack.c.bf16 %v758_v48, %v756_v47 }
 0x145   :  { %v4257_v53 = vpack.c.bf16 %v660_v52, %v659_v51  ;;  %v755_v51 = vld [vmem:[#allocation13 + $0x60] sm:$0xff]  ;;  %v757_v52 = vld [vmem:[#allocation13 + $0x70] sm:$0xff] }
 0x146   :  { %v4295_v55 = vpack.c.bf16 %v757_v52, %v755_v51 }
 0x147   :  { %4232 = vmatpush1.bf16.msra.mxu0 %v4231_v57  ;;  %4258 = vmatprep.subr.bf16.mxu1 %v4257_v53  ;;  %v661_v57 = vld [vmem:[#allocation11 + $0xb0] sm:$0xff]  ;;  %v760_v53 = vld [vmem:[#allocation13 + $0x88] sm:$0xff] }
 0x148   :  { %4234 = vmatprep.subr.bf16.mxu0 %v4233_v58  ;;  %4260 = vmatpush3.bf16.msra.mxu1 %v4259_v56  ;;  %v662_v58 = vld [vmem:[#allocation11 + $0xb8] sm:$0xff]  ;;  %v4297_v56 = vpack.c.bf16 %v762_v54, %v760_v53 }
 0x149   :  { %v4261_v59 = vpack.c.bf16 %v662_v58, %v661_v57  ;;  %v759_v57 = vld [vmem:[#allocation13 + $0x80] sm:$0xff]  ;;  %v761_v58 = vld [vmem:[#allocation13 + $0x90] sm:$0xff] }
 0x14a   :  { %v4299_v61 = vpack.c.bf16 %v761_v58, %v759_v57 }
 0x14b   :  { %4236 = vmatpush1.bf16.msra.mxu0 %v4235_v63  ;;  %4262 = vmatprep.subr.bf16.mxu1 %v4261_v59  ;;  %v663_v63 = vld [vmem:[#allocation11 + $0xc0] sm:$0xff]  ;;  %v764_v59 = vld [vmem:[#allocation13 + $0xa8] sm:$0xff] }
 0x14c   :  { %4238 = vmatprep.subr.bf16.mxu0 %v4237_v0  ;;  %4264 = vmatpush3.bf16.msra.mxu1 %v4263_v62  ;;  %v664_v0 = vld [vmem:[#allocation11 + $0xc8] sm:$0xff]  ;;  %v4301_v62 = vpack.c.bf16 %v766_v60, %v764_v59 }
 0x14d   :  { %v4265_v1 = vpack.c.bf16 %v664_v0, %v663_v63  ;;  %v763_v63 = vld [vmem:[#allocation13 + $0xa0] sm:$0xff]  ;;  %v765_v0 = vld [vmem:[#allocation13 + $0xb0] sm:$0xff] }
 0x14f   :  { %4240 = vmatpush1.bf16.msra.mxu0 %v4239_v3  ;;  %v648_v3 = vld [vmem:[#allocation11 + $0x48] sm:$0xff]  ;;  %4266 = vmatprep.subr.bf16.mxu1 %v4265_v1  ;;  %v4303_v1 = vpack.c.bf16 %v765_v0, %v763_v63 }
 0x150   :  { %4242 = vmatprep.subr.bf16.mxu0 %v4241_v6  ;;  %v4267_v4 = vpack.c.bf16 %v648_v3, %v647_v2  ;;  %v666_v6 = vld [vmem:[#allocation11 + $0xd8] sm:$0xff]  ;;  %v562_v2 = vld [vmem:[#allocation25 + $0x2] ss:$8 sm:$0x3] }
 0x151   :  { %v4269_v7 = vpack.c.bf16 %v666_v6, %v665_v5  ;;  %v579_v3 = vld [vmem:[#allocation25 + $0x3] ss:$8 sm:$0x3]  ;;  %v571_v5 = vrot.slane %v562_v2, %v6237_v26 }
 0x152   :  { %4268 = vmatpush3.bf16.msra.mxu1 %v4267_v4  ;;  %v567_v4 = vrot.slane %v562_v2, %v6234_v24  ;;  %v584_v6 = vrot.slane %v579_v3, %v6234_v24  ;;  %v768_v2 = vld [vmem:[#allocation13 + $0xc8] sm:$0xff] }
 0x153   :  { %4244 = vmatpush1.bf16.msra.mxu0 %v4243_v9  ;;  %v650_v9 = vld [vmem:[#allocation11 + $0x58] sm:$0xff]  ;;  %4270 = vmatprep.subr.bf16.mxu1 %v4269_v7 }
 0x209   :  { %v4180_v12 = vpop.f32.mrb[0].mxu0 }
 0x20a   :  { %v340_v13 = vpop.f32.mrb[1].mxu0  ;;  %v6226_v15 = vadd.f32 %v4180_v12, %v273_v11  ;;  %v667_v12 = vld [vmem:[#allocation11 + $0xe0] sm:$0xff] }
 0x20b   :  { %v6222_v14 = vadd.f32 %v340_v13, %v273_v11  ;;  %v4271_v11 = vpack.c.bf16 %v650_v9, %v649_v8  ;;  %v668_v13 = vld [vmem:[#allocation11 + $0xe8] sm:$0xff]  ;;  %v6249_v8 = vand.u32 7, %v6231_v23  ;;  %v588_v9 = vrot.slane %v579_v3, %v6237_v26  ;;  %v770_v3 = vld [vmem:[#allocation13 + $0xd8] sm:$0xff] }
 0x20c   :  { %v4273_v16 = vpack.c.bf16 %v668_v13, %v667_v12 }
 0x20d   :  { %459 = vmatmul.mubr.f32.vlgmr.msra.gmra.mrb[2].mxu0 %v6222_v14  ;;  %4272 = vmatpush3.bf16.msra.mxu1 %v4271_v11  ;;  %v601_v11 = vadd.s32 8, %v6231_v23  ;;  %vm604_vm1 = vcmp.eq.s32.totalorder %v6249_v8, 7 }
 0x20e   :  { %464 = vmatprep.mubr.f32.mxu0 %v5862_v10  ;;  %4274 = vmatprep.subr.bf16.mxu1 %v4273_v16 }
 0x211   :  { %465 = vmatmul.mubr.f32.gmra.mrb[4].mxu0 %v6226_v15  ;;  %4276 = vmatpush3.bf16.msra.mxu1 %v4275_v19 }
 0x212   :  { %548 = vmatprep.mubr.f32.mxu0 %v5862_v10 }
 0x2e0   :  { %v460_v28 = vpop.f32.mrb[2].mxu0 }
 0x2e1   :  { %v462_v30 = vpop.f32.mrb[3].mxu0  ;;  %v461_v31 = vadd.f32 %v460_v28, %v387_v27  ;;  %v654_v28 = vld [vmem:[#allocation11 + $0x78] sm:$0xff] }
 0x2e2   :  { %v463_v32 = vadd.f32 %v462_v30, %v391_v29  ;;  %v744_v30 = vld [vmem:[#allocation13 + $0x8] sm:$0xff] }
 0x2e3   :  { %v471_v37 = vmax.f32 %v461_v31, 0.0  ;;  %v746_v31 = vld [vmem:[#allocation13 + $0x18] sm:$0xff] }
 0x2e4   :  { %v466_v33 = vpop.f32.mrb[4].mxu0  ;;  %v472_v39 = vmax.f32 %v463_v32, 0.0  ;;  %v743_v32 = vld [vmem:[#allocation13] sm:$0xff] }
 0x2e5   :  { %v467_v34 = vadd.f32 %v466_v33, %v387_v27  ;;  %v468_v35 = vpop.f32.mrb[5].mxu0  ;;  %v4277_v27 = vpack.c.bf16 %v670_v21, %v669_v20  ;;  %v4281_v33 = vpack.c.bf16 %v746_v31, %v744_v30  ;;  %v6258_v20 = vand.u32 7, %v601_v11  ;;  %v774_v11 = vld [vmem:[#allocation13 + $0xf8] sm:$0xff] }
 0x2e6   :  { %v469_v36 = vadd.f32 %v468_v35, %v391_v29  ;;  %v4279_v29 = vpack.c.bf16 %v654_v28, %v653_v25  ;;  %v748_v35 = vld [vmem:[#allocation13 + $0x28] sm:$0xff] }
 0x2e7   :  { %v473_v38 = vmax.f32 %v467_v34, 0.0  ;;  %4278 = vmatprep.subr.bf16.mxu1 %v4277_v27  ;;  %v745_v34 = vld [vmem:[#allocation13 + $0x10] sm:$0xff]  ;;  %vm605_vm2 = vcmp.eq.s32.totalorder %v6258_v20, 7 }
 0x2e8   :  { %v474_v40 = vmax.f32 %v469_v36, 0.0  ;;  %4280 = vmatpush3.bf16.msra.mxu1 %v4279_v29  ;;  %v750_v36 = vld [vmem:[#allocation13 + $0x38] sm:$0xff] }
 0x2e9   :  { %v4247_v41 = vpack.c.bf16 %v473_v38, %v471_v37  ;;  %v4283_v37 = vpack.c.bf16 %v745_v34, %v743_v32  ;;  %v4285_v38 = vpack.c.bf16 %v750_v36, %v748_v35 }
 0x2ea   :  { %v4245_v42 = vpack.c.bf16 %v474_v40, %v472_v39  ;;  %v747_v39 = vld [vmem:[#allocation13 + $0x20] sm:$0xff]  ;;  %v749_v40 = vld [vmem:[#allocation13 + $0x30] sm:$0xff] }
 0x2ec   :  { %4246 = vmatprep.subr.bf16.mxu0 %v4245_v42  ;;  %v754_v42 = vld [vmem:[#allocation13 + $0x58] sm:$0xff] }
 0x2ed   :  { %4248 = vmatpush1.bf16.msra.mxu0 %v4247_v41  ;;  %v752_v41 = vld [vmem:[#allocation13 + $0x48] sm:$0xff] }
 0x2ee   :  { %4282 = vmatprep.subr.bf16.mxu0 %v4281_v33 }
 0x2f0   :  { %4017 = vmatmul.mubr.msk.f32.vlgmr.msra.gmra.mrb[6].mxu0 %vm477_vm0, %v475_v43  ;;  %v4287_v43 = vpack.c.bf16 %v749_v40, %v747_v39 }
 0x2f1   :  { %554 = vmatprep.mubr.f32.mxu0 %v5862_v10  ;;  %4284 = vmatpush1.bf16.msra.mxu0 %v4283_v37 }
 0x2f2   :  { %4286 = vmatprep.subr.bf16.mxu0 %v4285_v38 }
 0x2f4   :  { %4018 = vmatmul.mubr.msk.f32.gmra.mrb[8].mxu0 %vm477_vm0, %v476_v44  ;;  %v4289_v44 = vpack.c.bf16 %v754_v42, %v752_v41 }
 0x2f5   :  { %852 = vmatprep.mubr.f32.mxu0 %v5862_v10  ;;  %4288 = vmatpush1.bf16.msra.mxu0 %v4287_v43 }
 0x2f6   :  { %4290 = vmatprep.subr.bf16.mxu0 %v4289_v44 }
 0x2f9   :  { %4292 = vmatpush1.bf16.msra.mxu0 %v4291_v49 }
 0x2fa   :  { %4294 = vmatprep.subr.bf16.mxu0 %v4293_v50 }
 0x2fd   :  { %4296 = vmatpush1.bf16.msra.mxu0 %v4295_v55 }
 0x2fe   :  { %4298 = vmatprep.subr.bf16.mxu0 %v4297_v56 }
 0x301   :  { %4300 = vmatpush1.bf16.msra.mxu0 %v4299_v61 }
 0x302   :  { %4302 = vmatprep.subr.bf16.mxu0 %v4301_v62 }
 0x305   :  { %4304 = vmatpush1.bf16.msra.mxu0 %v4303_v1 }
 0x3c3   :  { %v550_v7 = vpop.f32.mrb[6].mxu0 }
 0x3c4   :  { %v574_v12 = vmul.f32 %v567_v4, %v550_v7  ;;  %v552_v13 = vpop.f32.mrb[7].mxu0 }
 0x3c5   :  { %v575_v16 = vmul.f32 %v571_v5, %v552_v13  ;;  %v771_v13 = vld [vmem:[#allocation13 + $0xe0] sm:$0xff] }
 0x3c6   :  { %v6253_v17 = vadd.f32 %v584_v6, %v574_v12 }
 0x3c7   :  { %v6256_v18 = vadd.f32 %v588_v9, %v575_v16  ;;  %v556_v19 = vpop.f32.mrb[8].mxu0  ;;  %v773_v16 = vld [vmem:[#allocation13 + $0xf0] sm:$0xff] }
 0x3c8   :  { %v595_v21 = vmax.f32 %v6253_v17, 0.0  ;;  %v576_v25 = vmul.f32 %v567_v4, %v556_v19  ;;  %v558_v27 = vpop.f32.mrb[9].mxu0  ;;  %v4305_v4 = vpack.c.bf16 %v770_v3, %v768_v2  ;;  %v4311_v19 = vpack.c.bf16 %v773_v16, %v771_v13  ;;  %v914_v3 = vld [vmem:[#allocation14 + $0xd0] sm:$0xff]  ;;  %v900_v16 = vld [vmem:[#allocation14 + $0x60] sm:$0xff] }
 0x3c9   :  { %v596_v28 = vmax.f32 %v6256_v18, 0.0  ;;  %v577_v29 = vmul.f32 %v571_v5, %v558_v27  ;;  %v767_v5 = vld [vmem:[#allocation13 + $0xc0] sm:$0xff]  ;;  %v905_v27 = vld [vmem:[#allocation14 + $0x88] sm:$0xff]  ;;  %v1016_v17 = vld [vmem:[#allocation16 + $0x90] sm:$0xff] }
 0x3ca   :  { %v606_v30 = vsel %vm604_vm1, 0.0, %v595_v21  ;;  %v6266_v31 = vadd.f32 %v584_v6, %v576_v25  ;;  %v769_v6 = vld [vmem:[#allocation13 + $0xd0] sm:$0xff]  ;;  %4306 = vmatprep.subr.bf16.mxu0 %v4305_v4  ;;  %v904_v25 = vld [vmem:[#allocation14 + $0x80] sm:$0xff]  ;;  %v915_v4 = vld [vmem:[#allocation14 + $0xd8] sm:$0xff] }
 0x3cb   :  { %v610_v32 = vrot.slane %v606_v30, 4  ;;  %v607_v33 = vsel %vm604_vm1, 0.0, %v596_v28  ;;  %v6273_v34 = vadd.f32 %v588_v9, %v577_v29  ;;  %v4307_v7 = vpack.c.bf16 %v769_v6, %v767_v5  ;;  %v772_v9 = vld [vmem:[#allocation13 + $0xe8] sm:$0xff]  ;;  %v888_v29 = vld [vmem:[#allocation14] sm:$0xff]  ;;  %v898_v6 = vld [vmem:[#allocation14 + $0x50] sm:$0xff] }
 0x3cc   :  { %v616_v35 = vrot.slane %v607_v33, 4  ;;  %v597_v36 = vmax.f32 %v6266_v31, 0.0  ;;  %v4309_v12 = vpack.c.bf16 %v774_v11, %v772_v9  ;;  %v4333_v5 = vpack.c.bf16 %v915_v4, %v914_v3  ;;  %v916_v11 = vld [vmem:[#allocation14 + $0xe0] sm:$0xff] }
 0x3cd   :  { %v611_v37 = vadd.f32 %v610_v32, %v606_v30  ;;  %v598_v38 = vmax.f32 %v6273_v34, 0.0  ;;  %4308 = vmatpush1.bf16.msra.mxu0 %v4307_v7  ;;  %v4313_v30 = vpack.c.bf16 %v905_v27, %v904_v25  ;;  %v889_v32 = vld [vmem:[#allocation14 + $0x8] sm:$0xff]  ;;  %v899_v7 = vld [vmem:[#allocation14 + $0x58] sm:$0xff]  ;;  %v918_v27 = vld [vmem:[#allocation14 + $0xf0] sm:$0xff] }
 0x3ce   :  { %v617_v39 = vadd.f32 %v616_v35, %v607_v33  ;;  %v608_v40 = vsel %vm605_vm2, 0.0, %v597_v36  ;;  %4310 = vmatprep.subr.bf16.mxu0 %v4309_v12  ;;  %v906_v33 = vld [vmem:[#allocation14 + $0x90] sm:$0xff]  ;;  %v907_v35 = vld [vmem:[#allocation14 + $0x98] sm:$0xff]  ;;  %v4335_v9 = vpack.c.bf16 %v899_v7, %v898_v6  ;;  %v917_v12 = vld [vmem:[#allocation14 + $0xe8] sm:$0xff] }
 0x3cf   :  { %v612_v41 = vrot.slane %v611_v37, 2  ;;  %v622_v42 = vrot.slane %v608_v40, 4  ;;  %v609_v43 = vsel %vm605_vm2, 0.0, %v598_v38  ;;  %4314 = vmatprep.subr.bf16.mxu1 %v4313_v30  ;;  %v4337_v13 = vpack.c.bf16 %v917_v12, %v916_v11  ;;  %v1030_v4 = vld [vmem:[#allocation16 + $0x100] sm:$0xff]  ;;  %v1039_v6 = vld [vmem:[#allocation16 + $0x148] sm:$0xff] }
 0x3d0   :  { %v618_v44 = vrot.slane %v617_v39, 2  ;;  %v628_v45 = vrot.slane %v609_v43, 4  ;;  %v1043_v7 = vld [vmem:[#allocation16 + $0x168] sm:$0xff]  ;;  %v1038_v12 = vld [vmem:[#allocation16 + $0x140] sm:$0xff] }
 0x3d1   :  { %v613_v46 = vadd.f32 %v612_v41, %v611_v37  ;;  %v623_v47 = vadd.f32 %v622_v42, %v608_v40  ;;  %4312 = vmatpush1.bf16.msra.mxu0 %v4311_v19  ;;  %v4315_v37 = vpack.c.bf16 %v889_v32, %v888_v29  ;;  %v890_v40 = vld [vmem:[#allocation14 + $0x10] sm:$0xff]  ;;  %v891_v41 = vld [vmem:[#allocation14 + $0x18] sm:$0xff]  ;;  %v908_v42 = vld [vmem:[#allocation14 + $0xa0] sm:$0xff]  ;;  %v4365_v11 = vpack.c.bf16 %v1043_v7, %v1039_v6 }
 0x3d2   :  { %v629_v48 = vadd.f32 %v628_v45, %v609_v43  ;;  %v619_v49 = vadd.f32 %v618_v44, %v617_v39  ;;  %v4317_v39 = vpack.c.bf16 %v907_v35, %v906_v33  ;;  %v909_v43 = vld [vmem:[#allocation14 + $0xa8] sm:$0xff]  ;;  %v4319_v44 = vpack.c.bf16 %v891_v41, %v890_v40  ;;  %v919_v29 = vld [vmem:[#allocation14 + $0xf8] sm:$0xff]  ;;  %v902_v32 = vld [vmem:[#allocation14 + $0x70] sm:$0xff] }
 0x3d3   :  { %v624_v50 = vrot.slane %v623_v47, 2  ;;  %v614_v52 = vrot.slane %v613_v46, 1  ;;  %v4321_v45 = vpack.c.bf16 %v909_v43, %v908_v42  ;;  %v901_v19 = vld [vmem:[#allocation14 + $0x68] sm:$0xff]  ;;  %v4341_v30 = vpack.c.bf16 %v919_v29, %v918_v27  ;;  %v903_v33 = vld [vmem:[#allocation14 + $0x78] sm:$0xff]  ;;  %v998_v43 = vld [vmem:[#allocation16] sm:$0xff] }
 0x3d4   :  { %v630_v51 = vrot.slane %v629_v48, 2  ;;  %v620_v54 = vrot.slane %v619_v49, 1  ;;  %v4339_v25 = vpack.c.bf16 %v901_v19, %v900_v16  ;;  %v4343_v35 = vpack.c.bf16 %v903_v33, %v902_v32  ;;  %v1001_v40 = vld [vmem:[#allocation16 + $0x18] sm:$0xff]  ;;  %v776_v19 = vld [vmem:[#allocation25 + $0x5] ss:$8 sm:$0x3] }
 0x3d5   :  { %v625_v53 = vadd.f32 %v624_v50, %v623_v47  ;;  %v615_v58 = vadd.f32 %v614_v52, %v613_v46  ;;  %v892_v46 = vld [vmem:[#allocation14 + $0x20] sm:$0xff]  ;;  %v893_v47 = vld [vmem:[#allocation14 + $0x28] sm:$0xff]  ;;  %v894_v52 = vld [vmem:[#allocation14 + $0x30] sm:$0xff]  ;;  %v785_v27 = vrot.slane %v776_v19, %v6237_v26 }
 0x3d6   :  { %v631_v55 = vadd.f32 %v630_v51, %v629_v48  ;;  %v621_v60 = vadd.f32 %v620_v54, %v619_v49  ;;  %v910_v48 = vld [vmem:[#allocation14 + $0xb0] sm:$0xff]  ;;  %v911_v49 = vld [vmem:[#allocation14 + $0xb8] sm:$0xff]  ;;  %v4323_v50 = vpack.c.bf16 %v893_v47, %v892_v46  ;;  %v1007_v47 = vld [vmem:[#allocation16 + $0x48] sm:$0xff] }
 0x3d7   :  { %v626_v56 = vrot.slane %v625_v53, 1  ;;  %v4325_v51 = vpack.c.bf16 %v911_v49, %v910_v48  ;;  %v1005_v42 = vld [vmem:[#allocation16 + $0x38] sm:$0xff]  ;;  %v1011_v48 = vld [vmem:[#allocation16 + $0x68] sm:$0xff]  ;;  %v1036_v6 = vld [vmem:[#allocation16 + $0x130] sm:$0xff] }
 0x3d8   :  { %v632_v57 = vrot.slane %v631_v55, 1  ;;  %v4349_v49 = vpack.c.bf16 %v1011_v48, %v1007_v47  ;;  %v1004_v47 = vld [vmem:[#allocation16 + $0x30] sm:$0xff]  ;;  %v1041_v7 = vld [vmem:[#allocation16 + $0x158] sm:$0xff] }
 0x3d9   :  { %v627_v59 = vadd.f32 %v626_v56, %v625_v53  ;;  %v895_v53 = vld [vmem:[#allocation14 + $0x38] sm:$0xff]  ;;  %v671_v56 = vld [vmem:[#allocation25 + $0x4] ss:$0 sm:$0xff] }
 0x3da   :  { %v633_v61 = vadd.f32 %v632_v57, %v631_v55  ;;  %v4327_v54 = vpack.c.bf16 %v895_v53, %v894_v52  ;;  %v1015_v53 = vld [vmem:[#allocation16 + $0x88] sm:$0xff] }
 0x3db   :  { %v635_v62 = vsel %vm634_vm3, %v615_v58, %v627_v59 }
 0x3dc   :  { %v636_v63 = vsel %vm634_vm3, %v621_v60, %v633_v61  ;;  %v637_v1 = vmul.f32 0.14285715, %v635_v62  ;;  %v912_v61 = vld [vmem:[#allocation14 + $0xc0] sm:$0xff]  ;;  %v913_v62 = vld [vmem:[#allocation14 + $0xc8] sm:$0xff] }
 0x3dd   :  { %v638_v0 = vmul.f32 0.14285715, %v636_v63  ;;  %v4329_v63 = vpack.c.bf16 %v913_v62, %v912_v61  ;;  %v1022_v62 = vld [vmem:[#allocation16 + $0xc0] sm:$0xff] }
 0x3df   :  { %736 = vmatprep.mubr.f32.mxu1 %v638_v0  ;;  %v896_v0 = vld [vmem:[#allocation14 + $0x40] sm:$0xff] }
 0x3e0   :  { %737 = vmatmul.mubr.f32.vlgmr.msra.gmra.mrb[0].mxu1 %v637_v1  ;;  %v897_v1 = vld [vmem:[#allocation14 + $0x48] sm:$0xff] }
 0x3e1   :  { %4316 = vmatpush3.bf16.msra.mxu1 %v4315_v37  ;;  %v4331_v2 = vpack.c.bf16 %v897_v1, %v896_v0  ;;  %v999_v37 = vld [vmem:[#allocation16 + $0x8] sm:$0xff] }
 0x3e2   :  { %4318 = vmatprep.subr.bf16.mxu1 %v4317_v39  ;;  %v1003_v39 = vld [vmem:[#allocation16 + $0x28] sm:$0xff] }
 0x3e3   :  { %v4345_v41 = vpack.c.bf16 %v1003_v39, %v999_v37  ;;  %v1031_v0 = vld [vmem:[#allocation16 + $0x108] sm:$0xff] }
 0x3e4   :  { %v1035_v1 = vld [vmem:[#allocation16 + $0x128] sm:$0xff] }
 0x3e5   :  { %4320 = vmatpush3.bf16.msra.mxu1 %v4319_v44  ;;  %v1002_v44 = vld [vmem:[#allocation16 + $0x20] sm:$0xff]  ;;  %4346 = vmatprep.subr.bf16.mxu0 %v4345_v41  ;;  %v4361_v3 = vpack.c.bf16 %v1035_v1, %v1031_v0  ;;  %v1029_v0 = vld [vmem:[#allocation16 + $0xf8] sm:$0xff] }
 0x3e6   :  { %4322 = vmatprep.subr.bf16.mxu1 %v4321_v45  ;;  %v4377_v45 = vpack.c.bf16 %v1005_v42, %v1001_v40  ;;  %v4347_v46 = vpack.c.bf16 %v1002_v44, %v998_v43 }
 0x3e9   :  { %4324 = vmatpush3.bf16.msra.mxu1 %v4323_v50  ;;  %v1006_v50 = vld [vmem:[#allocation16 + $0x40] sm:$0xff] }
 0x3ea   :  { %4326 = vmatprep.subr.bf16.mxu1 %v4325_v51  ;;  %v1010_v51 = vld [vmem:[#allocation16 + $0x60] sm:$0xff] }
 0x3eb   :  { %v4351_v52 = vpack.c.bf16 %v1010_v51, %v1006_v50  ;;  %v1009_v50 = vld [vmem:[#allocation16 + $0x58] sm:$0xff] }
 0x3ec   :  { %v1013_v51 = vld [vmem:[#allocation16 + $0x78] sm:$0xff] }
 0x3ed   :  { %4328 = vmatpush3.bf16.msra.mxu1 %v4327_v54  ;;  %v1019_v54 = vld [vmem:[#allocation16 + $0xa8] sm:$0xff] }
 0x3ee   :  { %4330 = vmatprep.subr.bf16.mxu1 %v4329_v63  ;;  %v1026_v63 = vld [vmem:[#allocation16 + $0xe0] sm:$0xff] }
 0x3f1   :  { %4332 = vmatpush3.bf16.msra.mxu1 %v4331_v2  ;;  %v4359_v2 = vpack.c.bf16 %v1026_v63, %v1022_v62  ;;  %v1025_v63 = vld [vmem:[#allocation16 + $0xd8] sm:$0xff] }
 0x3f2   :  { %4334 = vmatprep.subr.bf16.mxu1 %v4333_v5  ;;  %v1034_v5 = vld [vmem:[#allocation16 + $0x120] sm:$0xff]  ;;  %v4389_v34 = vpack.c.bf16 %v1029_v0, %v1025_v63  ;;  %v6320_v63 = vsub.s32 3, %v6231_v23 }
 0x3f5   :  { %4336 = vmatpush3.bf16.msra.mxu1 %v4335_v9  ;;  %v4363_v9 = vpack.c.bf16 %v1034_v5, %v1030_v4  ;;  %v1037_v4 = vld [vmem:[#allocation16 + $0x138] sm:$0xff]  ;;  %v1032_v5 = vld [vmem:[#allocation16 + $0x110] sm:$0xff] }
 0x3f6   :  { %4338 = vmatprep.subr.bf16.mxu1 %v4337_v13  ;;  %v1042_v13 = vld [vmem:[#allocation16 + $0x160] sm:$0xff] }
 0x3f7   :  { %v4367_v16 = vpack.c.bf16 %v1042_v13, %v1038_v12  ;;  %v1040_v13 = vld [vmem:[#allocation16 + $0x150] sm:$0xff] }
 0x3f9   :  { %4340 = vmatpush3.bf16.msra.mxu1 %v4339_v25  ;;  %v781_v25 = vrot.slane %v776_v19, %v6234_v24 }
 0x3fa   :  { %4342 = vmatprep.subr.bf16.mxu1 %v4341_v30 }
 0x3fd   :  { %4344 = vmatpush3.bf16.msra.mxu1 %v4343_v35 }
 0x3fe   :  { %4378 = vmatprep.subr.bf16.mxu1 %v4377_v45 }
 0x4b3   :  { %v4105_v55 = vpop.f32.mrb[0].mxu1 }
 0x4b4   :  { %v4106_v57 = vpop.f32.mrb[1].mxu1 }
 0x4b5   :  { %v4107_v58 = vadd.f32 %v4106_v57, %v4105_v55  ;;  %v4353_v55 = vpack.c.bf16 %v1019_v54, %v1015_v53  ;;  %v1018_v57 = vld [vmem:[#allocation16 + $0xa0] sm:$0xff] }
 0x4b7   :  { %v739_v59 = vadd.f32 %v4107_v58, %v671_v56  ;;  %v1014_v56 = vld [vmem:[#allocation16 + $0x80] sm:$0xff] }
 0x4b8   :  { %v4355_v58 = vpack.c.bf16 %v1018_v57, %v1014_v56  ;;  %v4381_v56 = vpack.c.bf16 %v1013_v51, %v1009_v50  ;;  %v1008_v57 = vld [vmem:[#allocation16 + $0x50] sm:$0xff] }
 0x4b9   :  { %v742_v60 = vmax.f32 %v739_v59, 0.0  ;;  %v1023_v59 = vld [vmem:[#allocation16 + $0xc8] sm:$0xff] }
 0x4bb   :  { %853 = vmatmul.mubr.f32.vlgmr.msra.gmra.mrb[10].mxu0 %v742_v60  ;;  %v1027_v60 = vld [vmem:[#allocation16 + $0xe8] sm:$0xff] }
 0x4bc   :  { %1149 = vmatprep.mubr.f32.mxu0 %v5862_v10  ;;  %4348 = vmatpush1.bf16.msra.mxu0 %v4347_v46  ;;  %v4357_v61 = vpack.c.bf16 %v1027_v60, %v1023_v59  ;;  %v1000_v46 = vld [vmem:[#allocation16 + $0x10] sm:$0xff]  ;;  %v1017_v60 = vld [vmem:[#allocation16 + $0x98] sm:$0xff] }
 0x4bd   :  { %4350 = vmatprep.subr.bf16.mxu0 %v4349_v49  ;;  %v4379_v53 = vpack.c.bf16 %v1004_v47, %v1000_v46  ;;  %v1061_v47 = vld [vmem:[#allocation16 + $0x1f8] sm:$0xff] }
 0x4c0   :  { %4352 = vmatpush1.bf16.msra.mxu0 %v4351_v52 }
 0x4c1   :  { %4354 = vmatprep.subr.bf16.mxu0 %v4353_v55 }
 0x4c4   :  { %4356 = vmatpush1.bf16.msra.mxu0 %v4355_v58  ;;  %v1012_v58 = vld [vmem:[#allocation16 + $0x70] sm:$0xff] }
 0x4c5   :  { %4358 = vmatprep.subr.bf16.mxu0 %v4357_v61  ;;  %v1021_v61 = vld [vmem:[#allocation16 + $0xb8] sm:$0xff]  ;;  %v4383_v18 = vpack.c.bf16 %v1012_v58, %v1008_v57 }
 0x4c6   :  { %v4385_v62 = vpack.c.bf16 %v1021_v61, %v1017_v60 }
 0x4c8   :  { %4360 = vmatpush1.bf16.msra.mxu0 %v4359_v2  ;;  %v1028_v2 = vld [vmem:[#allocation16 + $0xf0] sm:$0xff] }
 0x4c9   :  { %4362 = vmatprep.subr.bf16.mxu0 %v4361_v3  ;;  %v1033_v3 = vld [vmem:[#allocation16 + $0x118] sm:$0xff] }
 0x4cc   :  { %4364 = vmatpush1.bf16.msra.mxu0 %v4363_v9  ;;  %v1045_v9 = vld [vmem:[#allocation16 + $0x178] sm:$0xff] }
 0x4cd   :  { %4366 = vmatprep.subr.bf16.mxu0 %v4365_v11  ;;  %v4395_v11 = vpack.c.bf16 %v1036_v6, %v1032_v5  ;;  %v4397_v12 = vpack.c.bf16 %v1045_v9, %v1041_v7 }
 0x4d0   :  { %4368 = vmatpush1.bf16.msra.mxu0 %v4367_v16  ;;  %v1044_v16 = vld [vmem:[#allocation16 + $0x170] sm:$0xff] }
 0x4d1   :  { %v4399_v19 = vpack.c.bf16 %v1044_v16, %v1040_v13 }
 0x58e   :  { %v854_v29 = vpop.f32.mrb[10].mxu0 }
 0x58f   :  { %v855_v30 = vadd.f32 %v854_v29, %v781_v25  ;;  %v856_v32 = vpop.f32.mrb[11].mxu0  ;;  %v1047_v25 = vld [vmem:[#allocation16 + $0x188] sm:$0xff]  ;;  %v1049_v29 = vld [vmem:[#allocation16 + $0x198] sm:$0xff] }
 0x590   :  { %v857_v33 = vadd.f32 %v856_v32, %v785_v27  ;;  %v1051_v27 = vld [vmem:[#allocation16 + $0x1a8] sm:$0xff]  ;;  %v1053_v32 = vld [vmem:[#allocation16 + $0x1b8] sm:$0xff] }
 0x591   :  { %v860_v35 = vmul.f32 0.16666667, %v855_v30  ;;  %v4369_v30 = vpack.c.bf16 %v1051_v27, %v1047_v25 }
 0x592   :  { %v861_v37 = vmul.f32 0.16666667, %v857_v33  ;;  %v1046_v33 = vld [vmem:[#allocation16 + $0x180] sm:$0xff] }
 0x593   :  { %v862_v39 = vadd.f32 0.5, %v860_v35  ;;  %v1050_v35 = vld [vmem:[#allocation16 + $0x1a0] sm:$0xff]  ;;  %4370 = vmatprep.subr.bf16.mxu0 %v4369_v30 }
 0x594   :  { %v863_v40 = vadd.f32 0.5, %v861_v37  ;;  %v4401_v37 = vpack.c.bf16 %v1053_v32, %v1049_v29 }
 0x595   :  { %v864_v41 = vmax.f32 %v862_v39, 0.0  ;;  %v4371_v39 = vpack.c.bf16 %v1050_v35, %v1046_v33 }
 0x596   :  { %v865_v42 = vmax.f32 %v863_v40, 0.0  ;;  %v1048_v40 = vld [vmem:[#allocation16 + $0x190] sm:$0xff] }
 0x597   :  { %v866_v43 = vmin.f32 %v864_v41, 1.0  ;;  %v1052_v41 = vld [vmem:[#allocation16 + $0x1b0] sm:$0xff]  ;;  %4372 = vmatpush1.bf16.msra.mxu0 %v4371_v39 }
 0x598   :  { %v867_v44 = vmin.f32 %v865_v42, 1.0  ;;  %v4403_v42 = vpack.c.bf16 %v1052_v41, %v1048_v40 }
 0x599   :  { %v871_v45 = vrot.slane %v866_v43, %v6234_v24  ;;  %v879_v54 = vrot.slane %v866_v43, %v6237_v26  ;;  %v1055_v43 = vld [vmem:[#allocation16 + $0x1c8] sm:$0xff] }
 0x59a   :  { %v875_v48 = vrot.slane %v867_v44, %v6234_v24  ;;  %v883_v49 = vrot.slane %v867_v44, %v6237_v26  ;;  %v1059_v44 = vld [vmem:[#allocation16 + $0x1e8] sm:$0xff] }
 0x59b   :  { %v884_v55 = vmul.f32 %v871_v45, %v595_v21  ;;  %v1020_v21 = vld [vmem:[#allocation16 + $0xb0] sm:$0xff]  ;;  %v1057_v45 = vld [vmem:[#allocation16 + $0x1d8] sm:$0xff]  ;;  %v4373_v46 = vpack.c.bf16 %v1059_v44, %v1055_v43 }
 0x59c   :  { %v885_v52 = vmul.f32 %v875_v48, %v596_v28  ;;  %v887_v59 = vmul.f32 %v883_v49, %v598_v38  ;;  %v886_v28 = vmul.f32 %v879_v54, %v597_v36  ;;  %v4387_v1 = vpack.c.bf16 %v1020_v21, %v1016_v17  ;;  %v1024_v38 = vld [vmem:[#allocation16 + $0xd0] sm:$0xff]  ;;  %v1054_v48 = vld [vmem:[#allocation16 + $0x1c0] sm:$0xff] }
 0x59d   :  { %v4391_v31 = vpack.c.bf16 %v1028_v2, %v1024_v38  ;;  %v4393_v36 = vpack.c.bf16 %v1037_v4, %v1033_v3  ;;  %v1058_v49 = vld [vmem:[#allocation16 + $0x1e0] sm:$0xff]  ;;  %v4405_v50 = vpack.c.bf16 %v1061_v47, %v1057_v45  ;;  %4374 = vmatprep.subr.bf16.mxu0 %v4373_v46 }
 0x59e   :  { %985 = vmatprep.mubr.f32.mxu1 %v885_v52  ;;  %v4375_v51 = vpack.c.bf16 %v1058_v49, %v1054_v48  ;;  %v1056_v52 = vld [vmem:[#allocation16 + $0x1d0] sm:$0xff] }
 0x59f   :  { %986 = vmatmul.mubr.f32.vlgmr.msra.gmra.mrb[2].mxu1 %v884_v55  ;;  %v1063_v21 = vld [vmem:[#allocation25 + $0x7] ss:$8 sm:$0xf] }
 0x5a0   :  { %990 = vmatprep.mubr.f32.mxu1 %v887_v59  ;;  %4380 = vmatpush1.bf16.msra.mxu1 %v4379_v53  ;;  %v1060_v53 = vld [vmem:[#allocation16 + $0x1f0] sm:$0xff]  ;;  %v1068_v0 = vrot.slane %v1063_v21, %v6234_v24 }
 0x5a1   :  { %4382 = vmatprep.subr.bf16.mxu1 %v4381_v56  ;;  %v4407_v54 = vpack.c.bf16 %v1060_v53, %v1056_v52  ;;  %4376 = vmatpush1.bf16.msra.mxu0 %v4375_v51  ;;  %v920_v56 = vld [vmem:[#allocation25 + $0x6] ss:$0 sm:$0xff] }
 0x5a3   :  { %991 = vmatmul.mubr.f32.gmra.mrb[4].mxu1 %v886_v28 }
 0x5a4   :  { %4384 = vmatpush1.bf16.msra.mxu1 %v4383_v18  ;;  %1226 = vmatprep.mubr.f32.mxu1 %v5862_v10 }
 0x5a5   :  { %4386 = vmatprep.subr.bf16.mxu1 %v4385_v62 }
 0x5a8   :  { %4388 = vmatpush1.bf16.msra.mxu1 %v4387_v1 }
 0x5a9   :  { %4390 = vmatprep.subr.bf16.mxu1 %v4389_v34  ;;  %v1080_v34 = vrot.slane %v1063_v21, %v6320_v63 }
 0x5ac   :  { %4392 = vmatpush1.bf16.msra.mxu1 %v4391_v31 }
 0x5ad   :  { %4394 = vmatprep.subr.bf16.mxu1 %v4393_v36 }
 0x5b0   :  { %4396 = vmatpush1.bf16.msra.mxu1 %v4395_v11 }
 0x5b1   :  { %4398 = vmatprep.subr.bf16.mxu1 %v4397_v12 }
 0x5b4   :  { %4400 = vmatpush1.bf16.msra.mxu1 %v4399_v19 }
 0x5b5   :  { %4402 = vmatprep.subr.bf16.mxu1 %v4401_v37 }
 0x5b8   :  { %4404 = vmatpush1.bf16.msra.mxu1 %v4403_v42 }
 0x5b9   :  { %4406 = vmatprep.subr.bf16.mxu1 %v4405_v50 }
 0x5bc   :  { %4408 = vmatpush1.bf16.msra.mxu1 %v4407_v54 }
 0x672   :  { %v4140_v55 = vpop.f32.mrb[2].mxu1 }
 0x673   :  { %v4141_v57 = vpop.f32.mrb[3].mxu1 }
 0x674   :  { %v4142_v58 = vadd.f32 %v4141_v57, %v4140_v55 }
 0x676   :  { %v988_v59 = vadd.f32 %v4142_v58, %v920_v56  ;;  %v4143_v60 = vpop.f32.mrb[4].mxu1 }
 0x677   :  { %v4144_v61 = vpop.f32.mrb[5].mxu1 }
 0x678   :  { %v6304_v18 = vadd.f32 %v988_v59, %v6222_v14  ;;  %v4145_v28 = vadd.f32 %v4144_v61, %v4143_v60  ;;  %v6317_v14 = vsub.s32 2, %v6231_v23 }
 0x67a   :  { %v993_v62 = vadd.f32 %v4145_v28, %v920_v56  ;;  %1150 = vmatmul.mubr.f32.vlgmr.msra.gmra.mrb[12].mxu0 %v6304_v18  ;;  %1227 = vmatmul.mubr.f32.vlgmr.msra.gmra.mrb[6].mxu1 %v6304_v18  ;;  %v1076_v1 = vrot.slane %v1063_v21, %v6317_v14 }
 0x67b   :  { %1155 = vmatprep.mubr.f32.mxu0 %v5862_v10  ;;  %1232 = vmatprep.mubr.f32.mxu1 %v5862_v10 }
 0x67c   :  { %v6311_v17 = vadd.f32 %v993_v62, %v6226_v15  ;;  %v1072_v15 = vrot.slane %v1063_v21, %v6237_v26 }
 0x67e   :  { %1156 = vmatmul.mubr.f32.gmra.mrb[14].mxu0 %v6311_v17  ;;  %1233 = vmatmul.mubr.f32.gmra.mrb[8].mxu1 %v6311_v17 }
 0x67f   :  { %1352 = vmatprep.mubr.f32.mxu0 %v5862_v10 }
 0x74d   :  { %v1151_v38 = vpop.f32.mrb[12].mxu0  ;;  %v1228_v2 = vpop.f32.mrb[6].mxu1 }
 0x74e   :  { %v1152_v3 = vadd.f32 %v1151_v38, %v1068_v0  ;;  %v1229_v4 = vadd.f32 %v1228_v2, %v1076_v1  ;;  %v1153_v31 = vpop.f32.mrb[13].mxu0  ;;  %v1230_v36 = vpop.f32.mrb[7].mxu1 }
 0x74f   :  { %v1154_v5 = vadd.f32 %v1153_v31, %v1072_v15  ;;  %v1231_v6 = vadd.f32 %v1230_v36, %v1080_v34 }
 0x750   :  { %v1239_v7 = vadd.f32 3.0, %v1152_v3  ;;  %v1241_v9 = vadd.f32 3.0, %v1229_v4 }
 0x751   :  { %v1240_v23 = vadd.f32 3.0, %v1154_v5  ;;  %v1242_v11 = vadd.f32 3.0, %v1231_v6  ;;  %v1157_v12 = vpop.f32.mrb[14].mxu0  ;;  %v1234_v13 = vpop.f32.mrb[8].mxu1 }
 0x752   :  { %v1247_v16 = vmax.f32 %v1239_v7, 0.0  ;;  %v1249_v19 = vmax.f32 %v1241_v9, 0.0  ;;  %v1158_v25 = vadd.f32 %v1157_v12, %v1068_v0  ;;  %v1235_v27 = vadd.f32 %v1234_v13, %v1076_v1  ;;  %v1159_v29 = vpop.f32.mrb[15].mxu0  ;;  %v1236_v30 = vpop.f32.mrb[9].mxu1  ;;  %v1280_v7 = vld [vmem:[#allocation10 + $0x10] sm:$0xff]  ;;  %v1615_v12 = vld [vmem:[#allocation17 + $0x10] sm:$0xff] }
 0x753   :  { %v1248_v32 = vmax.f32 %v1240_v23, 0.0  ;;  %v1250_v33 = vmax.f32 %v1242_v11, 0.0  ;;  %v1160_v35 = vadd.f32 %v1159_v29, %v1072_v15  ;;  %v1237_v37 = vadd.f32 %v1236_v30, %v1080_v34  ;;  %v1281_v23 = vld [vmem:[#allocation10 + $0x18] sm:$0xff]  ;;  %v1613_v11 = vld [vmem:[#allocation17] sm:$0xff]  ;;  %v1619_v30 = vld [vmem:[#allocation17 + $0x30] sm:$0xff] }
 0x754   :  { %v1255_v39 = vmin.f32 %v1247_v16, 6.0  ;;  %v1257_v40 = vmin.f32 %v1249_v19, 6.0  ;;  %v1243_v41 = vadd.f32 3.0, %v1158_v25  ;;  %v1245_v42 = vadd.f32 3.0, %v1235_v27  ;;  %v1618_v13 = vld [vmem:[#allocation17 + $0x28] sm:$0xff]  ;;  %v1620_v16 = vld [vmem:[#allocation17 + $0x38] sm:$0xff] }
 0x755   :  { %v1256_v43 = vmin.f32 %v1248_v32, 6.0  ;;  %v1258_v44 = vmin.f32 %v1250_v33, 6.0  ;;  %v1244_v45 = vadd.f32 3.0, %v1160_v35  ;;  %v1246_v46 = vadd.f32 3.0, %v1237_v37  ;;  %v1366_v19 = vld [vmem:[#allocation10 + $0x20] sm:$0xff]  ;;  %v1617_v29 = vld [vmem:[#allocation17 + $0x20] sm:$0xff] }
 0x756   :  { %v1251_v47 = vmax.f32 %v1243_v41, 0.0  ;;  %v1253_v48 = vmax.f32 %v1245_v42, 0.0  ;;  %v1263_v49 = vmul.f32 %v1255_v39, %v1152_v3  ;;  %v1265_v50 = vmul.f32 %v1257_v40, %v1229_v4  ;;  %v1622_v32 = vld [vmem:[#allocation17 + $0x48] sm:$0xff]  ;;  %v1624_v33 = vld [vmem:[#allocation17 + $0x58] sm:$0xff]  ;;  %v1621_v40 = vld [vmem:[#allocation17 + $0x40] sm:$0xff] }
 0x757   :  { %v1252_v51 = vmax.f32 %v1244_v45, 0.0  ;;  %v1254_v52 = vmax.f32 %v1246_v46, 0.0  ;;  %v1264_v53 = vmul.f32 %v1256_v43, %v1154_v5  ;;  %v1266_v56 = vmul.f32 %v1258_v44, %v1231_v6  ;;  %v1614_v5 = vld [vmem:[#allocation17 + $0x8] sm:$0xff]  ;;  %v1616_v6 = vld [vmem:[#allocation17 + $0x18] sm:$0xff]  ;;  %v1623_v41 = vld [vmem:[#allocation17 + $0x50] sm:$0xff] }
 0x758   :  { %v1259_v54 = vmin.f32 %v1251_v47, 6.0  ;;  %v1261_v55 = vmin.f32 %v1253_v48, 6.0  ;;  %v1271_v61 = vmul.f32 0.16666667, %v1263_v49  ;;  %v1273_v28 = vmul.f32 0.16666667, %v1265_v50 }
 0x759   :  { %v1260_v57 = vmin.f32 %v1252_v51, 6.0  ;;  %v1262_v58 = vmin.f32 %v1254_v52, 6.0  ;;  %v1272_v0 = vmul.f32 0.16666667, %v1264_v53  ;;  %v1274_v34 = vmul.f32 0.16666667, %v1266_v56 }
 0x75a   :  { %v1267_v59 = vmul.f32 %v1259_v54, %v1158_v25  ;;  %v1269_v60 = vmul.f32 %v1261_v55, %v1235_v27  ;;  %v4417_v9 = vpack.c.bf16 %v1616_v6, %v1614_v5  ;;  %v4419_v25 = vpack.c.bf16 %v1615_v12, %v1613_v11  ;;  %v1626_v42 = vld [vmem:[#allocation17 + $0x68] sm:$0xff]  ;;  %v1628_v43 = vld [vmem:[#allocation17 + $0x78] sm:$0xff]  ;;  %v1625_v46 = vld [vmem:[#allocation17 + $0x60] sm:$0xff] }
 0x75b   :  { %v1268_v62 = vmul.f32 %v1260_v57, %v1160_v35  ;;  %v1270_v21 = vmul.f32 %v1262_v58, %v1237_v37  ;;  %v4421_v27 = vpack.c.bf16 %v1620_v16, %v1618_v13  ;;  %v1367_v35 = vld [vmem:[#allocation10 + $0x28] sm:$0xff]  ;;  %v4423_v37 = vpack.c.bf16 %v1619_v30, %v1617_v29  ;;  %v1627_v47 = vld [vmem:[#allocation17 + $0x70] sm:$0xff]  ;;  %v1630_v48 = vld [vmem:[#allocation17 + $0x88] sm:$0xff] }
 0x75c   :  { %v1275_v1 = vmul.f32 0.16666667, %v1267_v59  ;;  %v1277_v15 = vmul.f32 0.16666667, %v1269_v60  ;;  %v4425_v39 = vpack.c.bf16 %v1624_v33, %v1622_v32  ;;  %v4427_v44 = vpack.c.bf16 %v1623_v41, %v1621_v40  ;;  %v1632_v49 = vld [vmem:[#allocation17 + $0x98] sm:$0xff]  ;;  %v1629_v51 = vld [vmem:[#allocation17 + $0x80] sm:$0xff] }
 0x75d   :  { %v1276_v38 = vmul.f32 0.16666667, %v1268_v62  ;;  %v1278_v2 = vmul.f32 0.16666667, %v1270_v21  ;;  %v4429_v45 = vpack.c.bf16 %v1628_v43, %v1626_v42  ;;  %v4433_v50 = vpack.c.bf16 %v1632_v49, %v1630_v48  ;;  %v1631_v52 = vld [vmem:[#allocation17 + $0x90] sm:$0xff]  ;;  %v1634_v53 = vld [vmem:[#allocation17 + $0xa8] sm:$0xff] }
 0x75e   :  { %v4411_v3 = vpack.c.bf16 %v1275_v1, %v1271_v61  ;;  %v4415_v4 = vpack.c.bf16 %v1277_v15, %v1273_v28  ;;  %v1636_v54 = vld [vmem:[#allocation17 + $0xb8] sm:$0xff]  ;;  %v4435_v55 = vpack.c.bf16 %v1631_v52, %v1629_v51  ;;  %v1633_v57 = vld [vmem:[#allocation17 + $0xa0] sm:$0xff]  ;;  %v1635_v58 = vld [vmem:[#allocation17 + $0xb0] sm:$0xff] }
 0x75f   :  { %v4409_v31 = vpack.c.bf16 %v1276_v38, %v1272_v0  ;;  %v4413_v36 = vpack.c.bf16 %v1278_v2, %v1274_v34  ;;  %v4437_v56 = vpack.c.bf16 %v1636_v54, %v1634_v53  ;;  %v1638_v59 = vld [vmem:[#allocation17 + $0xc8] sm:$0xff]  ;;  %v1640_v60 = vld [vmem:[#allocation17 + $0xd8] sm:$0xff]  ;;  %v4439_v61 = vpack.c.bf16 %v1635_v58, %v1633_v57  ;;  %v1637_v62 = vld [vmem:[#allocation17 + $0xc0] sm:$0xff] }
 0x760   :  { %v4441_v28 = vpack.c.bf16 %v1640_v60, %v1638_v59  ;;  %v1639_v21 = vld [vmem:[#allocation17 + $0xd0] sm:$0xff]  ;;  %v1642_v0 = vld [vmem:[#allocation17 + $0xe8] sm:$0xff]  ;;  %v1644_v1 = vld [vmem:[#allocation17 + $0xf8] sm:$0xff] }
 0x761   :  { %4410 = vmatprep.subr.bf16.mxu0 %v4409_v31  ;;  %v4443_v15 = vpack.c.bf16 %v1639_v21, %v1637_v62  ;;  %v4445_v34 = vpack.c.bf16 %v1644_v1, %v1642_v0  ;;  %v1641_v38 = vld [vmem:[#allocation17 + $0xe0] sm:$0xff]  ;;  %v1643_v2 = vld [vmem:[#allocation17 + $0xf0] sm:$0xff]  ;;  %v1648_v31 = vld [vmem:[#allocation17 + $0x118] sm:$0xff] }
 0x762   :  { %4412 = vmatpush1.bf16.msra.mxu0 %v4411_v3  ;;  %v4447_v3 = vpack.c.bf16 %v1643_v2, %v1641_v38  ;;  %v1645_v5 = vld [vmem:[#allocation17 + $0x100] sm:$0xff]  ;;  %v1647_v6 = vld [vmem:[#allocation17 + $0x110] sm:$0xff]  ;;  %v1658_v33 = vld [vmem:[#allocation17 + $0x168] sm:$0xff] }
 0x763   :  { %4414 = vmatprep.subr.bf16.mxu0 %v4413_v36  ;;  %v1649_v12 = vld [vmem:[#allocation17 + $0x120] sm:$0xff]  ;;  %v1651_v13 = vld [vmem:[#allocation17 + $0x130] sm:$0xff]  ;;  %v1662_v42 = vld [vmem:[#allocation17 + $0x188] sm:$0xff] }
 0x764   :  { %v4455_v16 = vpack.c.bf16 %v1651_v13, %v1649_v12  ;;  %v1653_v29 = vld [vmem:[#allocation17 + $0x140] sm:$0xff]  ;;  %v1655_v30 = vld [vmem:[#allocation17 + $0x150] sm:$0xff]  ;;  %v1664_v43 = vld [vmem:[#allocation17 + $0x198] sm:$0xff] }
 0x765   :  { %4019 = vmatmul.mubr.msk.f32.vlgmr.msra.gmra.mrb[16].mxu0 %vm477_vm0, %v1280_v7  ;;  %v4451_v7 = vpack.c.bf16 %v1647_v6, %v1645_v5  ;;  %v4459_v32 = vpack.c.bf16 %v1655_v30, %v1653_v29  ;;  %v1659_v40 = vld [vmem:[#allocation17 + $0x170] sm:$0xff]  ;;  %v1666_v48 = vld [vmem:[#allocation17 + $0x1a8] sm:$0xff]  ;;  %v1668_v49 = vld [vmem:[#allocation17 + $0x1b8] sm:$0xff] }
 0x766   :  { %4416 = vmatpush1.bf16.msra.mxu0 %v4415_v4  ;;  %1358 = vmatprep.mubr.f32.mxu0 %v5862_v10  ;;  %v1646_v4 = vld [vmem:[#allocation17 + $0x108] sm:$0xff]  ;;  %v1667_v51 = vld [vmem:[#allocation17 + $0x1b0] sm:$0xff]  ;;  %v1672_v54 = vld [vmem:[#allocation17 + $0x1d8] sm:$0xff] }
 0x767   :  { %4418 = vmatprep.subr.bf16.mxu0 %v4417_v9  ;;  %v4449_v36 = vpack.c.bf16 %v1648_v31, %v1646_v4  ;;  %v1650_v9 = vld [vmem:[#allocation17 + $0x128] sm:$0xff]  ;;  %v1671_v57 = vld [vmem:[#allocation17 + $0x1d0] sm:$0xff]  ;;  %v1676_v60 = vld [vmem:[#allocation17 + $0x1f8] sm:$0xff] }
 0x768   :  { %v1670_v53 = vld [vmem:[#allocation17 + $0x1c8] sm:$0xff]  ;;  %v1675_v62 = vld [vmem:[#allocation17 + $0x1f0] sm:$0xff]  ;;  %v1680_v1 = vld [vmem:[#allocation17 + $0x218] sm:$0xff] }
 0x769   :  { %4020 = vmatmul.mubr.msk.f32.gmra.mrb[18].mxu0 %vm477_vm0, %v1281_v23  ;;  %v1652_v23 = vld [vmem:[#allocation17 + $0x138] sm:$0xff]  ;;  %v1674_v59 = vld [vmem:[#allocation17 + $0x1e8] sm:$0xff] }
 0x76a   :  { %1438 = vmatprep.mubr.f32.mxu0 %v5862_v10  ;;  %v4453_v11 = vpack.c.bf16 %v1652_v23, %v1650_v9  ;;  %v1678_v0 = vld [vmem:[#allocation17 + $0x208] sm:$0xff] }
 0x76b   :  { %v1483_v38 = vld [vmem:[#allocation25 + $0x21] ss:$8 sm:$0xf] }
 0x76c   :  { %v1488_v4 = vrot.slane %v1483_v38, %v6234_v24 }
 0x76d   :  { %4021 = vmatmul.mubr.msk.f32.vlgmr.msra.gmra.mrb[20].mxu0 %vm477_vm0, %v1366_v19  ;;  %v1654_v19 = vld [vmem:[#allocation17 + $0x148] sm:$0xff] }
 0x76e   :  { %1444 = vmatprep.mubr.f32.mxu0 %v5862_v10  ;;  %4420 = vmatpush1.bf16.msra.mxu0 %v4419_v25  ;;  %v4431_v10 = vpack.c.bf16 %v1627_v47, %v1625_v46  ;;  %v1656_v25 = vld [vmem:[#allocation17 + $0x158] sm:$0xff]  ;;  %v1663_v46 = vld [vmem:[#allocation17 + $0x190] sm:$0xff] }
 0x76f   :  { %4422 = vmatprep.subr.bf16.mxu0 %v4421_v27  ;;  %v4457_v27 = vpack.c.bf16 %v1656_v25, %v1654_v19 }
 0x771   :  { %4022 = vmatmul.mubr.msk.f32.gmra.mrb[22].mxu0 %vm477_vm0, %v1367_v35  ;;  %v1660_v35 = vld [vmem:[#allocation17 + $0x178] sm:$0xff] }
 0x772   :  { %4424 = vmatpush1.bf16.msra.mxu0 %v4423_v37  ;;  %v4461_v37 = vpack.c.bf16 %v1660_v35, %v1658_v33  ;;  %v1496_v33 = vrot.slane %v1483_v38, %v6317_v14 }
 0x773   :  { %4426 = vmatprep.subr.bf16.mxu0 %v4425_v39  ;;  %v1657_v39 = vld [vmem:[#allocation17 + $0x160] sm:$0xff] }
 0x774   :  { %v4463_v41 = vpack.c.bf16 %v1659_v40, %v1657_v39  ;;  %v1500_v40 = vrot.slane %v1483_v38, %v6320_v63 }
 0x776   :  { %4428 = vmatpush1.bf16.msra.mxu0 %v4427_v44  ;;  %v4465_v44 = vpack.c.bf16 %v1664_v43, %v1662_v42 }
 0x777   :  { %4430 = vmatprep.subr.bf16.mxu0 %v4429_v45  ;;  %v1661_v45 = vld [vmem:[#allocation17 + $0x180] sm:$0xff] }
 0x778   :  { %v4467_v47 = vpack.c.bf16 %v1663_v46, %v1661_v45 }
 0x77a   :  { %4432 = vmatpush1.bf16.msra.mxu0 %v4431_v10  ;;  %v4469_v10 = vpack.c.bf16 %v1668_v49, %v1666_v48 }
 0x77b   :  { %4434 = vmatprep.subr.bf16.mxu0 %v4433_v50  ;;  %v1665_v50 = vld [vmem:[#allocation17 + $0x1a0] sm:$0xff] }
 0x77c   :  { %v4471_v52 = vpack.c.bf16 %v1667_v51, %v1665_v50 }
 0x77e   :  { %4436 = vmatpush1.bf16.msra.mxu0 %v4435_v55  ;;  %v4473_v55 = vpack.c.bf16 %v1672_v54, %v1670_v53 }
 0x77f   :  { %4438 = vmatprep.subr.bf16.mxu0 %v4437_v56  ;;  %v1669_v56 = vld [vmem:[#allocation17 + $0x1c0] sm:$0xff] }
 0x780   :  { %v4475_v58 = vpack.c.bf16 %v1671_v57, %v1669_v56 }
 0x782   :  { %4440 = vmatpush1.bf16.msra.mxu0 %v4439_v61  ;;  %v4477_v61 = vpack.c.bf16 %v1676_v60, %v1674_v59 }
 0x783   :  { %4442 = vmatprep.subr.bf16.mxu0 %v4441_v28  ;;  %v1673_v28 = vld [vmem:[#allocation17 + $0x1e0] sm:$0xff] }
 0x784   :  { %v4479_v21 = vpack.c.bf16 %v1675_v62, %v1673_v28 }
 0x786   :  { %4444 = vmatpush1.bf16.msra.mxu0 %v4443_v15  ;;  %v4481_v15 = vpack.c.bf16 %v1680_v1, %v1678_v0 }
 0x787   :  { %4446 = vmatprep.subr.bf16.mxu0 %v4445_v34  ;;  %v1452_v34 = vld [vmem:[#allocation25 + $0x20] ss:$8 sm:$0xf] }
 0x788   :  { %v1457_v2 = vrot.slane %v1452_v34, %v6234_v24  ;;  %v1465_v19 = vrot.slane %v1452_v34, %v6317_v14  ;;  %v1469_v29 = vrot.slane %v1452_v34, %v6320_v63 }
 0x78a   :  { %4448 = vmatpush1.bf16.msra.mxu0 %v4447_v3  ;;  %v1461_v3 = vrot.slane %v1452_v34, %v6237_v26 }
 0x78b   :  { %4450 = vmatprep.subr.bf16.mxu0 %v4449_v36  ;;  %v1492_v36 = vrot.slane %v1483_v38, %v6237_v26 }
 0x78e   :  { %4452 = vmatpush1.bf16.msra.mxu0 %v4451_v7 }
 0x78f   :  { %4454 = vmatprep.subr.bf16.mxu0 %v4453_v11 }
 0x792   :  { %4456 = vmatpush1.bf16.msra.mxu0 %v4455_v16 }
 0x793   :  { %4458 = vmatprep.subr.bf16.mxu0 %v4457_v27 }
 0x796   :  { %4460 = vmatpush1.bf16.msra.mxu0 %v4459_v32 }
 0x797   :  { %4462 = vmatprep.subr.bf16.mxu0 %v4461_v37 }
 0x79a   :  { %4464 = vmatpush1.bf16.msra.mxu0 %v4463_v41 }
 0x79b   :  { %4466 = vmatprep.subr.bf16.mxu0 %v4465_v44 }
 0x79e   :  { %4468 = vmatpush1.bf16.msra.mxu0 %v4467_v47 }
 0x79f   :  { %4470 = vmatprep.subr.bf16.mxu0 %v4469_v10 }
 0x7a2   :  { %4472 = vmatpush1.bf16.msra.mxu0 %v4471_v52 }
 0x7a3   :  { %4474 = vmatprep.subr.bf16.mxu0 %v4473_v55 }
 0x7a6   :  { %4476 = vmatpush1.bf16.msra.mxu0 %v4475_v58 }
 0x7a7   :  { %4478 = vmatprep.subr.bf16.mxu0 %v4477_v61 }
 0x7aa   :  { %4480 = vmatpush1.bf16.msra.mxu0 %v4479_v21 }
 0x7ab   :  { %4482 = vmatprep.subr.bf16.mxu0 %v4481_v15 }
 0x838   :  { %v1354_v31 = vpop.f32.mrb[16].mxu0 }
 0x839   :  { %v1474_v5 = vmul.f32 %v1457_v2, %v1354_v31  ;;  %v1356_v6 = vpop.f32.mrb[17].mxu0 }
 0x83a   :  { %v1475_v7 = vmul.f32 %v1461_v3, %v1356_v6 }
 0x83b   :  { %v1505_v9 = vadd.f32 %v1488_v4, %v1474_v5 }
 0x83c   :  { %v1506_v23 = vadd.f32 %v1492_v36, %v1475_v7  ;;  %v1360_v11 = vpop.f32.mrb[18].mxu0 }
 0x83d   :  { %v1513_v12 = vadd.f32 3.0, %v1505_v9  ;;  %v1478_v13 = vmul.f32 %v1457_v2, %v1360_v11  ;;  %v1362_v16 = vpop.f32.mrb[19].mxu0 }
 0x83e   :  { %v1514_v25 = vadd.f32 3.0, %v1506_v23  ;;  %v1479_v27 = vmul.f32 %v1461_v3, %v1362_v16 }
 0x83f   :  { %v1521_v30 = vmax.f32 %v1513_v12, 0.0  ;;  %v1509_v32 = vadd.f32 %v1488_v4, %v1478_v13 }
 0x840   :  { %v1522_v35 = vmax.f32 %v1514_v25, 0.0  ;;  %v1510_v37 = vadd.f32 %v1492_v36, %v1479_v27  ;;  %v1440_v39 = vpop.f32.mrb[20].mxu0 }
 0x841   :  { %v1529_v41 = vmin.f32 %v1521_v30, 6.0  ;;  %v1517_v42 = vadd.f32 3.0, %v1509_v32  ;;  %v1476_v43 = vmul.f32 %v1465_v19, %v1440_v39  ;;  %v1442_v44 = vpop.f32.mrb[21].mxu0 }
 0x842   :  { %v1530_v45 = vmin.f32 %v1522_v35, 6.0  ;;  %v1518_v46 = vadd.f32 3.0, %v1510_v37  ;;  %v1477_v47 = vmul.f32 %v1469_v29, %v1442_v44 }
 0x843   :  { %v1537_v48 = vmul.f32 %v1529_v41, %v1505_v9  ;;  %v1525_v49 = vmax.f32 %v1517_v42, 0.0  ;;  %v6341_v10 = vadd.f32 %v1496_v33, %v1476_v43 }
 0x844   :  { %v1538_v50 = vmul.f32 %v1530_v45, %v1506_v23  ;;  %v1526_v51 = vmax.f32 %v1518_v46, 0.0  ;;  %v1508_v52 = vadd.f32 %v1500_v40, %v1477_v47  ;;  %v1446_v53 = vpop.f32.mrb[22].mxu0 }
 0x845   :  { %v6343_v54 = vmul.f32 0.16666667, %v1537_v48  ;;  %v1533_v55 = vmin.f32 %v1525_v49, 6.0  ;;  %v1480_v56 = vmul.f32 %v1465_v19, %v1446_v53  ;;  %v1448_v57 = vpop.f32.mrb[23].mxu0  ;;  %v1677_v48 = vld [vmem:[#allocation17 + $0x200] sm:$0xff]  ;;  %v1679_v49 = vld [vmem:[#allocation17 + $0x210] sm:$0xff] }
 0x846   :  { %v6345_v58 = vmul.f32 0.16666667, %v1538_v50  ;;  %v1534_v59 = vmin.f32 %v1526_v51, 6.0  ;;  %v1516_v60 = vadd.f32 3.0, %v1508_v52  ;;  %v1481_v61 = vmul.f32 %v1469_v29, %v1448_v57  ;;  %v1682_v51 = vld [vmem:[#allocation17 + $0x228] sm:$0xff] }
 0x847   :  { %v1553_v28 = vsel %vm604_vm1, -1e+09, %v6343_v54  ;;  %v1541_v62 = vmul.f32 %v1533_v55, %v1509_v32  ;;  %v6350_v21 = vadd.f32 %v1496_v33, %v1480_v56 }
 0x848   :  { %v1561_v0 = vrot.slane %v1553_v28, 4  ;;  %v1554_v1 = vsel %vm604_vm1, -1e+09, %v6345_v58  ;;  %v1542_v15 = vmul.f32 %v1534_v59, %v1510_v37  ;;  %v1524_v34 = vmax.f32 %v1516_v60, 0.0 }
 0x849   :  { %v1567_v38 = vrot.slane %v1554_v1, 4  ;;  %v6355_v2 = vmul.f32 0.16666667, %v1541_v62  ;;  %v1512_v36 = vadd.f32 %v1500_v40, %v1481_v61  ;;  %v4483_v60 = vpack.c.bf16 %v1679_v49, %v1677_v48 }
 0x84a   :  { %v1562_v3 = vmax.f32 %v1553_v28, %v1561_v0  ;;  %v6357_v4 = vmul.f32 0.16666667, %v1542_v15  ;;  %v1532_v31 = vmin.f32 %v1524_v34, 6.0  ;;  %v1681_v0 = vld [vmem:[#allocation17 + $0x220] sm:$0xff]  ;;  %v1686_v34 = vld [vmem:[#allocation17 + $0x248] sm:$0xff] }
 0x84b   :  { %v1568_v5 = vmax.f32 %v1554_v1, %v1567_v38  ;;  %v1557_v6 = vsel %vm605_vm2, -1e+09, %v6355_v2  ;;  %v1520_v25 = vadd.f32 3.0, %v1512_v36  ;;  %v1683_v1 = vld [vmem:[#allocation17 + $0x230] sm:$0xff]  ;;  %v1688_v38 = vld [vmem:[#allocation17 + $0x258] sm:$0xff] }
 0x84c   :  { %v1563_v7 = vrot.slane %v1562_v3, 2  ;;  %v1585_v9 = vrot.slane %v1557_v6, 4  ;;  %v1558_v23 = vsel %vm605_vm2, -1e+09, %v6357_v4  ;;  %v1540_v11 = vmul.f32 %v1532_v31, %v1508_v52  ;;  %v1684_v52 = vld [vmem:[#allocation17 + $0x238] sm:$0xff] }
 0x84d   :  { %v1569_v12 = vrot.slane %v1568_v5, 2  ;;  %v1591_v13 = vrot.slane %v1558_v23, 4  ;;  %v1528_v40 = vmax.f32 %v1520_v25, 0.0  ;;  %v4485_v62 = vpack.c.bf16 %v1684_v52, %v1682_v51  ;;  %v1699_v51 = vld [vmem:[#allocation17 + $0x2b0] sm:$0xff]  ;;  %v1702_v52 = vld [vmem:[#allocation17 + $0x2c8] sm:$0xff] }
 0x84e   :  { %v1586_v16 = vmax.f32 %v1557_v6, %v1585_v9  ;;  %v6365_v19 = vmul.f32 0.16666667, %v1540_v11  ;;  %v1564_v30 = vmax.f32 %v1562_v3, %v1563_v7  ;;  %v4489_v6 = vpack.c.bf16 %v1688_v38, %v1686_v34  ;;  %v1685_v7 = vld [vmem:[#allocation17 + $0x240] sm:$0xff]  ;;  %v1687_v9 = vld [vmem:[#allocation17 + $0x250] sm:$0xff]  ;;  %v1690_v11 = vld [vmem:[#allocation17 + $0x268] sm:$0xff] }
 0x84f   :  { %v1592_v27 = vmax.f32 %v1558_v23, %v1591_v13  ;;  %v1570_v29 = vmax.f32 %v1568_v5, %v1569_v12  ;;  %v1536_v46 = vmin.f32 %v1528_v40, 6.0  ;;  %v4487_v5 = vpack.c.bf16 %v1683_v1, %v1681_v0  ;;  %v1692_v12 = vld [vmem:[#allocation17 + $0x278] sm:$0xff] }
 0x850   :  { %v1587_v32 = vrot.slane %v1586_v16, 2  ;;  %v1556_v33 = vsel %vm604_vm1, -1e+09, %v6365_v19  ;;  %v1565_v44 = vrot.slane %v1564_v30, 1  ;;  %v4491_v25 = vpack.c.bf16 %v1687_v9, %v1685_v7  ;;  %v1708_v0 = vld [vmem:[#allocation17 + $0x2f8] sm:$0xff] }
 0x851   :  { %v1593_v35 = vrot.slane %v1592_v27, 2  ;;  %v1579_v37 = vrot.slane %v1556_v33, 4  ;;  %v1571_v41 = vrot.slane %v1570_v29, 1  ;;  %v1544_v53 = vmul.f32 %v1536_v46, %v1512_v36  ;;  %v1700_v46 = vld [vmem:[#allocation17 + $0x2b8] sm:$0xff] }
 0x852   :  { %v1588_v39 = vmax.f32 %v1586_v16, %v1587_v32  ;;  %v1566_v59 = vmax.f32 %v1564_v30, %v1565_v44  ;;  %v1691_v30 = vld [vmem:[#allocation17 + $0x270] sm:$0xff] }
 0x853   :  { %v1594_v42 = vmax.f32 %v1592_v27, %v1593_v35  ;;  %v1580_v43 = vmax.f32 %v1556_v33, %v1579_v37  ;;  %v1572_v55 = vmax.f32 %v1570_v29, %v1571_v41  ;;  %v6370_v61 = vmul.f32 0.16666667, %v1544_v53  ;;  %v1689_v29 = vld [vmem:[#allocation17 + $0x260] sm:$0xff]  ;;  %v1694_v33 = vld [vmem:[#allocation17 + $0x288] sm:$0xff]  ;;  %v1696_v35 = vld [vmem:[#allocation17 + $0x298] sm:$0xff] }
 0x854   :  { %v1589_v45 = vrot.slane %v1588_v39, 1  ;;  %v4493_v27 = vpack.c.bf16 %v1692_v12, %v1690_v11  ;;  %v4495_v40 = vpack.c.bf16 %v1691_v30, %v1689_v29  ;;  %v4497_v41 = vpack.c.bf16 %v1696_v35, %v1694_v33  ;;  %v1704_v53 = vld [vmem:[#allocation17 + $0x2d8] sm:$0xff]  ;;  %v1709_v11 = vld [vmem:[#allocation17 + $0x300] sm:$0xff]  ;;  %v1711_v12 = vld [vmem:[#allocation17 + $0x310] sm:$0xff] }
 0x855   :  { %v1595_v47 = vrot.slane %v1594_v42, 1  ;;  %v1581_v57 = vrot.slane %v1580_v43, 2  ;;  %v1560_v3 = vsel %vm605_vm2, -1e+09, %v6370_v61  ;;  %v4515_v29 = vpack.c.bf16 %v1711_v12, %v1709_v11  ;;  %v1715_v33 = vld [vmem:[#allocation17 + $0x330] sm:$0xff]  ;;  %v1718_v35 = vld [vmem:[#allocation17 + $0x348] sm:$0xff] }
 0x856   :  { %v1590_v50 = vmax.f32 %v1588_v39, %v1589_v45  ;;  %v1603_v31 = vrot.slane %v1560_v3, 4  ;;  %v1698_v45 = vld [vmem:[#allocation17 + $0x2a8] sm:$0xff]  ;;  %v1735_v11 = vld [vmem:[#allocation17 + $0x3d0] sm:$0xff] }
 0x857   :  { %v1596_v56 = vmax.f32 %v1594_v42, %v1595_v47  ;;  %v1582_v36 = vmax.f32 %v1580_v43, %v1581_v57  ;;  %v1693_v42 = vld [vmem:[#allocation17 + $0x280] sm:$0xff]  ;;  %v1695_v43 = vld [vmem:[#allocation17 + $0x290] sm:$0xff]  ;;  %v4501_v49 = vpack.c.bf16 %v1700_v46, %v1698_v45  ;;  %v1738_v12 = vld [vmem:[#allocation17 + $0x3e8] sm:$0xff] }
 0x858   :  { %v1609_v15 = vsel %vm634_vm3, %v1566_v59, %v1590_v50  ;;  %v1604_v23 = vmax.f32 %v1560_v3, %v1603_v31  ;;  %v4499_v48 = vpack.c.bf16 %v1695_v43, %v1693_v42  ;;  %v1697_v50 = vld [vmem:[#allocation17 + $0x2a0] sm:$0xff]  ;;  %v4505_v59 = vpack.c.bf16 %v1704_v53, %v1702_v52  ;;  %v1707_v31 = vld [vmem:[#allocation17 + $0x2f0] sm:$0xff]  ;;  %v1726_v53 = vld [vmem:[#allocation17 + $0x388] sm:$0xff] }
 0x859   :  { %v1610_v28 = vsel %vm634_vm3, %v1572_v55, %v1596_v56  ;;  %v1583_v16 = vrot.slane %v1582_v36, 1  ;;  %v1515_v55 = vadd.f32 3.0, %v6341_v10  ;;  %v1519_v56 = vadd.f32 3.0, %v6350_v21  ;;  %v1705_v3 = vld [vmem:[#allocation17 + $0x2e0] sm:$0xff] }
 0x85a   :  { %1818 = vmatprep.mubr.f32.mxu0 %v1610_v28  ;;  %v1605_v13 = vrot.slane %v1604_v23, 2  ;;  %v4503_v57 = vpack.c.bf16 %v1699_v51, %v1697_v50  ;;  %v1703_v28 = vld [vmem:[#allocation17 + $0x2d0] sm:$0xff]  ;;  %v4511_v9 = vpack.c.bf16 %v1707_v31, %v1705_v3  ;;  %v1717_v43 = vld [vmem:[#allocation17 + $0x340] sm:$0xff] }
 0x85b   :  { %1819 = vmatmul.mubr.f32.vlgmr.msra.gmra.mrb[24].mxu0 %v1609_v15  ;;  %v1584_v37 = vmax.f32 %v1582_v36, %v1583_v16  ;;  %v1523_v1 = vmax.f32 %v1515_v55, 0.0  ;;  %v1527_v15 = vmax.f32 %v1519_v56, 0.0  ;;  %v1710_v36 = vld [vmem:[#allocation17 + $0x308] sm:$0xff]  ;;  %v1716_v16 = vld [vmem:[#allocation17 + $0x338] sm:$0xff]  ;;  %v1723_v50 = vld [vmem:[#allocation17 + $0x370] sm:$0xff] }
 0x85c   :  { %4484 = vmatpush1.bf16.msra.mxu0 %v4483_v60  ;;  %v1606_v32 = vmax.f32 %v1604_v23, %v1605_v13  ;;  %v1701_v60 = vld [vmem:[#allocation17 + $0x2c0] sm:$0xff]  ;;  %v1714_v13 = vld [vmem:[#allocation17 + $0x328] sm:$0xff]  ;;  %v1728_v55 = vld [vmem:[#allocation17 + $0x398] sm:$0xff] }
 0x85d   :  { %4486 = vmatprep.subr.bf16.mxu0 %v4485_v62  ;;  %v1706_v62 = vld [vmem:[#allocation17 + $0x2e8] sm:$0xff]  ;;  %v4507_v34 = vpack.c.bf16 %v1703_v28, %v1701_v60  ;;  %v1535_v7 = vmin.f32 %v1527_v15, 6.0  ;;  %v4517_v30 = vpack.c.bf16 %v1716_v16, %v1714_v13  ;;  %v1727_v60 = vld [vmem:[#allocation17 + $0x390] sm:$0xff]  ;;  %v1740_v13 = vld [vmem:[#allocation17 + $0x3f8] sm:$0xff] }
 0x85e   :  { %v1607_v39 = vrot.slane %v1606_v32, 1  ;;  %v4509_v38 = vpack.c.bf16 %v1708_v0, %v1706_v62  ;;  %v1730_v0 = vld [vmem:[#allocation17 + $0x3a8] sm:$0xff]  ;;  %v1731_v3 = vld [vmem:[#allocation17 + $0x3b0] sm:$0xff] }
 0x860   :  { %4488 = vmatpush1.bf16.msra.mxu0 %v4487_v5  ;;  %v1608_v44 = vmax.f32 %v1606_v32, %v1607_v39  ;;  %v1712_v5 = vld [vmem:[#allocation17 + $0x318] sm:$0xff]  ;;  %v1713_v32 = vld [vmem:[#allocation17 + $0x320] sm:$0xff] }
 0x861   :  { %4490 = vmatprep.subr.bf16.mxu0 %v4489_v6  ;;  %v1531_v6 = vmin.f32 %v1523_v1, 6.0  ;;  %v4513_v23 = vpack.c.bf16 %v1712_v5, %v1710_v36  ;;  %v1732_v1 = vld [vmem:[#allocation17 + $0x3b8] sm:$0xff]  ;;  %v1734_v5 = vld [vmem:[#allocation17 + $0x3c8] sm:$0xff] }
 0x862   :  { %v1612_v47 = vsel %vm634_vm3, %v1584_v37, %v1608_v44  ;;  %v1720_v37 = vld [vmem:[#allocation17 + $0x358] sm:$0xff]  ;;  %v1722_v44 = vld [vmem:[#allocation17 + $0x368] sm:$0xff] }
 0x863   :  { %1889 = vmatprep.mubr.f32.mxu0 %v1612_v47  ;;  %v4521_v42 = vpack.c.bf16 %v1720_v37, %v1718_v35  ;;  %v1899_v37 = vld [vmem:[#allocation19 + $0x8] sm:$0xff] }
 0x864   :  { %4492 = vmatpush1.bf16.msra.mxu0 %v4491_v25  ;;  %v1539_v25 = vmul.f32 %v1531_v6, %v6341_v10  ;;  %v1719_v10 = vld [vmem:[#allocation17 + $0x350] sm:$0xff]  ;;  %v1736_v6 = vld [vmem:[#allocation17 + $0x3d8] sm:$0xff] }
 0x865   :  { %4494 = vmatprep.subr.bf16.mxu0 %v4493_v27  ;;  %v1543_v27 = vmul.f32 %v1535_v7, %v6350_v21  ;;  %v1724_v21 = vld [vmem:[#allocation17 + $0x378] sm:$0xff]  ;;  %v4523_v47 = vpack.c.bf16 %v1719_v10, %v1717_v43  ;;  %v1898_v10 = vld [vmem:[#allocation19] sm:$0xff] }
 0x866   :  { %v6382_v39 = vmul.f32 0.16666667, %v1539_v25 }
 0x868   :  { %4496 = vmatpush1.bf16.msra.mxu0 %v4495_v40  ;;  %v6384_v40 = vmul.f32 0.16666667, %v1543_v27  ;;  %v1555_v45 = vsel %vm604_vm1, -1e+09, %v6382_v39 }
 0x869   :  { %4498 = vmatprep.subr.bf16.mxu0 %v4497_v41  ;;  %v4519_v41 = vpack.c.bf16 %v1715_v33, %v1713_v32  ;;  %v1573_v51 = vrot.slane %v1555_v45, 4  ;;  %v1739_v32 = vld [vmem:[#allocation17 + $0x3f0] sm:$0xff] }
 0x86a   :  { %v1559_v46 = vsel %vm605_vm2, -1e+09, %v6384_v40 }
 0x86b   :  { %v1597_v52 = vrot.slane %v1559_v46, 4  ;;  %v1574_v28 = vmax.f32 %v1555_v45, %v1573_v51  ;;  %v1910_v51 = vld [vmem:[#allocation19 + $0x60] sm:$0xff] }
 0x86c   :  { %4500 = vmatpush1.bf16.msra.mxu0 %v4499_v48  ;;  %v4525_v48 = vpack.c.bf16 %v1724_v21, %v1722_v44  ;;  %v1902_v44 = vld [vmem:[#allocation19 + $0x20] sm:$0xff] }
 0x86d   :  { %4502 = vmatprep.subr.bf16.mxu0 %v4501_v49  ;;  %v1721_v49 = vld [vmem:[#allocation17 + $0x360] sm:$0xff]  ;;  %v1598_v62 = vmax.f32 %v1559_v46, %v1597_v52  ;;  %v1575_v31 = vrot.slane %v1574_v28, 2  ;;  %v1907_v46 = vld [vmem:[#allocation19 + $0x48] sm:$0xff] }
 0x86e   :  { %v4527_v56 = vpack.c.bf16 %v1723_v50, %v1721_v49  ;;  %v1906_v50 = vld [vmem:[#allocation19 + $0x40] sm:$0xff] }
 0x86f   :  { %v1599_v36 = vrot.slane %v1598_v62, 2  ;;  %v1576_v16 = vmax.f32 %v1574_v28, %v1575_v31  ;;  %v1923_v28 = vld [vmem:[#allocation19 + $0xc8] sm:$0xff] }
 0x870   :  { %4504 = vmatpush1.bf16.msra.mxu0 %v4503_v57  ;;  %v4529_v57 = vpack.c.bf16 %v1728_v55, %v1726_v53  ;;  %v1915_v53 = vld [vmem:[#allocation19 + $0x88] sm:$0xff] }
 0x871   :  { %4506 = vmatprep.subr.bf16.mxu0 %v4505_v59  ;;  %v1725_v59 = vld [vmem:[#allocation17 + $0x380] sm:$0xff]  ;;  %v1600_v25 = vmax.f32 %v1598_v62, %v1599_v36  ;;  %v1577_v33 = vrot.slane %v1576_v16, 1  ;;  %v1919_v55 = vld [vmem:[#allocation19 + $0xa8] sm:$0xff] }
 0x872   :  { %v4531_v15 = vpack.c.bf16 %v1727_v60, %v1725_v59  ;;  %v1914_v59 = vld [vmem:[#allocation19 + $0x80] sm:$0xff]  ;;  %v1927_v62 = vld [vmem:[#allocation19 + $0xe8] sm:$0xff] }
 0x873   :  { %v1601_v35 = vrot.slane %v1600_v25, 1  ;;  %v1578_v21 = vmax.f32 %v1576_v16, %v1577_v33  ;;  %v1918_v60 = vld [vmem:[#allocation19 + $0xa0] sm:$0xff]  ;;  %v1947_v16 = vld [vmem:[#allocation19 + $0x188] sm:$0xff] }
 0x874   :  { %4508 = vmatpush1.bf16.msra.mxu0 %v4507_v34  ;;  %v4533_v34 = vpack.c.bf16 %v1732_v1, %v1730_v0  ;;  %v4555_v0 = vpack.c.bf16 %v1918_v60, %v1914_v59  ;;  %v4557_v1 = vpack.c.bf16 %v1927_v62, %v1923_v28  ;;  %v1955_v33 = vld [vmem:[#allocation19 + $0x1c8] sm:$0xff]  ;;  %v1978_v60 = vld [vmem:[#allocation19 + $0x280] sm:$0xff] }
 0x875   :  { %4510 = vmatprep.subr.bf16.mxu0 %v4509_v38  ;;  %v1729_v38 = vld [vmem:[#allocation17 + $0x3a0] sm:$0xff]  ;;  %v1602_v45 = vmax.f32 %v1600_v25, %v1601_v35  ;;  %v1951_v25 = vld [vmem:[#allocation19 + $0x1a8] sm:$0xff] }
 0x876   :  { %v4535_v7 = vpack.c.bf16 %v1731_v3, %v1729_v38  ;;  %v1931_v38 = vld [vmem:[#allocation19 + $0x108] sm:$0xff]  ;;  %v1982_v28 = vld [vmem:[#allocation19 + $0x2a0] sm:$0xff] }
 0x877   :  { %v1611_v52 = vsel %vm634_vm3, %v1578_v21, %v1602_v45  ;;  %v1935_v3 = vld [vmem:[#allocation19 + $0x128] sm:$0xff] }
 0x878   :  { %4512 = vmatpush1.bf16.msra.mxu0 %v4511_v9  ;;  %v4537_v9 = vpack.c.bf16 %v1736_v6, %v1734_v5  ;;  %v4561_v36 = vpack.c.bf16 %v1935_v3, %v1931_v38  ;;  %v1930_v5 = vld [vmem:[#allocation19 + $0x100] sm:$0xff]  ;;  %v1959_v35 = vld [vmem:[#allocation19 + $0x1e8] sm:$0xff] }
 0x879   :  { %4514 = vmatprep.subr.bf16.mxu0 %v4513_v23  ;;  %v1733_v23 = vld [vmem:[#allocation17 + $0x3c0] sm:$0xff]  ;;  %v1987_v62 = vld [vmem:[#allocation19 + $0x2c8] sm:$0xff] }
 0x87a   :  { %v4539_v27 = vpack.c.bf16 %v1735_v11, %v1733_v23  ;;  %v1934_v6 = vld [vmem:[#allocation19 + $0x120] sm:$0xff]  ;;  %v1995_v3 = vld [vmem:[#allocation19 + $0x308] sm:$0xff] }
 0x87b   :  { %v4563_v23 = vpack.c.bf16 %v1934_v6, %v1930_v5  ;;  %v1990_v38 = vld [vmem:[#allocation19 + $0x2e0] sm:$0xff] }
 0x87c   :  { %4516 = vmatpush1.bf16.msra.mxu0 %v4515_v29  ;;  %v4541_v29 = vpack.c.bf16 %v1740_v13, %v1738_v12  ;;  %v1938_v12 = vld [vmem:[#allocation19 + $0x140] sm:$0xff] }
 0x87d   :  { %4518 = vmatprep.subr.bf16.mxu0 %v4517_v30  ;;  %v1737_v30 = vld [vmem:[#allocation17 + $0x3e0] sm:$0xff] }
 0x87e   :  { %v1942_v13 = vld [vmem:[#allocation19 + $0x160] sm:$0xff] }
 0x87f   :  { %v1994_v6 = vld [vmem:[#allocation19 + $0x300] sm:$0xff] }
 0x880   :  { %4520 = vmatpush1.bf16.msra.mxu0 %v4519_v41  ;;  %v1903_v41 = vld [vmem:[#allocation19 + $0x28] sm:$0xff] }
 0x881   :  { %4522 = vmatprep.subr.bf16.mxu0 %v4521_v42  ;;  %v4543_v42 = vpack.c.bf16 %v1739_v32, %v1737_v30  ;;  %v4545_v43 = vpack.c.bf16 %v1903_v41, %v1899_v37  ;;  %v1946_v30 = vld [vmem:[#allocation19 + $0x180] sm:$0xff]  ;;  %v4573_v41 = vpack.c.bf16 %v1959_v35, %v1955_v33 }
 0x882   :  { %v1950_v32 = vld [vmem:[#allocation19 + $0x1a0] sm:$0xff] }
 0x883   :  { %v4571_v37 = vpack.c.bf16 %v1950_v32, %v1946_v30  ;;  %v2010_v32 = vld [vmem:[#allocation19 + $0x380] sm:$0xff] }
 0x884   :  { %4524 = vmatpush1.bf16.msra.mxu0 %v4523_v47  ;;  %v1911_v47 = vld [vmem:[#allocation19 + $0x68] sm:$0xff]  ;;  %v2014_v33 = vld [vmem:[#allocation19 + $0x3a0] sm:$0xff] }
 0x885   :  { %4526 = vmatprep.subr.bf16.mxu0 %v4525_v48  ;;  %v4547_v48 = vpack.c.bf16 %v1902_v44, %v1898_v10  ;;  %v4549_v49 = vpack.c.bf16 %v1911_v47, %v1907_v46  ;;  %v1963_v10 = vld [vmem:[#allocation19 + $0x208] sm:$0xff]  ;;  %v1962_v46 = vld [vmem:[#allocation19 + $0x200] sm:$0xff]  ;;  %v4603_v35 = vpack.c.bf16 %v2014_v33, %v2010_v32  ;;  %v1941_v32 = vld [vmem:[#allocation19 + $0x158] sm:$0xff] }
 0x886   :  { %v1967_v44 = vld [vmem:[#allocation19 + $0x228] sm:$0xff]  ;;  %v1966_v47 = vld [vmem:[#allocation19 + $0x220] sm:$0xff]  ;;  %v1945_v33 = vld [vmem:[#allocation19 + $0x178] sm:$0xff] }
 0x887   :  { %v4577_v45 = vpack.c.bf16 %v1967_v44, %v1963_v10  ;;  %v2022_v10 = vld [vmem:[#allocation19 + $0x3e0] sm:$0xff] }
 0x888   :  { %4528 = vmatpush1.bf16.msra.mxu0 %v4527_v56  ;;  %v4551_v56 = vpack.c.bf16 %v1910_v51, %v1906_v50  ;;  %v4579_v50 = vpack.c.bf16 %v1966_v47, %v1962_v46  ;;  %v1742_v47 = vld [vmem:[#allocation25 + $0x22] ss:$8 sm:$0x3] }
 0x889   :  { %4530 = vmatprep.subr.bf16.mxu0 %v4529_v57  ;;  %v4553_v57 = vpack.c.bf16 %v1919_v55, %v1915_v53  ;;  %v1974_v53 = vld [vmem:[#allocation19 + $0x260] sm:$0xff]  ;;  %v1979_v55 = vld [vmem:[#allocation19 + $0x288] sm:$0xff] }
 0x88c   :  { %4532 = vmatpush1.bf16.msra.mxu0 %v4531_v15  ;;  %v1922_v15 = vld [vmem:[#allocation19 + $0xc0] sm:$0xff] }
 0x88d   :  { %4534 = vmatprep.subr.bf16.mxu0 %v4533_v34  ;;  %v1926_v34 = vld [vmem:[#allocation19 + $0xe0] sm:$0xff] }
 0x88e   :  { %v4559_v31 = vpack.c.bf16 %v1926_v34, %v1922_v15  ;;  %v1986_v34 = vld [vmem:[#allocation19 + $0x2c0] sm:$0xff] }
 0x890   :  { %4536 = vmatpush1.bf16.msra.mxu0 %v4535_v7  ;;  %v1939_v7 = vld [vmem:[#allocation19 + $0x148] sm:$0xff] }
 0x891   :  { %4538 = vmatprep.subr.bf16.mxu0 %v4537_v9  ;;  %v1943_v9 = vld [vmem:[#allocation19 + $0x168] sm:$0xff] }
 0x892   :  { %v4565_v11 = vpack.c.bf16 %v1943_v9, %v1939_v7  ;;  %v1998_v7 = vld [vmem:[#allocation19 + $0x320] sm:$0xff]  ;;  %v2003_v9 = vld [vmem:[#allocation19 + $0x348] sm:$0xff] }
 0x894   :  { %4540 = vmatpush1.bf16.msra.mxu0 %v4539_v27  ;;  %v4567_v27 = vpack.c.bf16 %v1942_v13, %v1938_v12  ;;  %v2002_v13 = vld [vmem:[#allocation19 + $0x340] sm:$0xff] }
 0x895   :  { %4542 = vmatprep.subr.bf16.mxu0 %v4541_v29  ;;  %v4569_v29 = vpack.c.bf16 %v1951_v25, %v1947_v16  ;;  %v2006_v16 = vld [vmem:[#allocation19 + $0x360] sm:$0xff]  ;;  %v2011_v25 = vld [vmem:[#allocation19 + $0x388] sm:$0xff] }
 0x898   :  { %4544 = vmatpush1.bf16.msra.mxu0 %v4543_v42  ;;  %v1954_v42 = vld [vmem:[#allocation19 + $0x1c0] sm:$0xff] }
 0x899   :  { %4546 = vmatprep.subr.bf16.mxu0 %v4545_v43  ;;  %v1958_v43 = vld [vmem:[#allocation19 + $0x1e0] sm:$0xff] }
 0x89a   :  { %v4575_v21 = vpack.c.bf16 %v1958_v43, %v1954_v42  ;;  %v2018_v43 = vld [vmem:[#allocation19 + $0x3c0] sm:$0xff] }
 0x89b   :  { %1890 = vmatmul.mubr.f32.vlgmr.msra.gmra.mrb[24].mxu0 %v1611_v52  ;;  %v1970_v52 = vld [vmem:[#allocation19 + $0x240] sm:$0xff]  ;;  %v4607_v44 = vpack.c.bf16 %v2022_v10, %v2018_v43  ;;  %v1949_v43 = vld [vmem:[#allocation19 + $0x198] sm:$0xff] }
 0x89c   :  { %4548 = vmatpush1.bf16.msra.mxu0 %v4547_v48  ;;  %v1971_v48 = vld [vmem:[#allocation19 + $0x248] sm:$0xff]  ;;  %v1953_v10 = vld [vmem:[#allocation19 + $0x1b8] sm:$0xff] }
 0x89d   :  { %4550 = vmatprep.subr.bf16.mxu0 %v4549_v49  ;;  %v1975_v49 = vld [vmem:[#allocation19 + $0x268] sm:$0xff] }
 0x89e   :  { %v4581_v51 = vpack.c.bf16 %v1975_v49, %v1971_v48  ;;  %v1747_v48 = vrot.slane %v1742_v47, %v6234_v24  ;;  %v1751_v49 = vrot.slane %v1742_v47, %v6237_v26  ;;  %v1957_v47 = vld [vmem:[#allocation19 + $0x1d8] sm:$0xff] }
 0x8a0   :  { %4552 = vmatpush1.bf16.msra.mxu0 %v4551_v56  ;;  %v1983_v56 = vld [vmem:[#allocation19 + $0x2a8] sm:$0xff] }
 0x8a1   :  { %4554 = vmatprep.subr.bf16.mxu0 %v4553_v57  ;;  %v4583_v57 = vpack.c.bf16 %v1974_v53, %v1970_v52  ;;  %v4585_v59 = vpack.c.bf16 %v1983_v56, %v1979_v55  ;;  %v1900_v53 = vld [vmem:[#allocation19 + $0x10] sm:$0xff] }
 0x8a2   :  { %v1904_v55 = vld [vmem:[#allocation19 + $0x30] sm:$0xff] }
 0x8a4   :  { %4556 = vmatpush1.bf16.msra.mxu0 %v4555_v0  ;;  %v1991_v0 = vld [vmem:[#allocation19 + $0x2e8] sm:$0xff] }
 0x8a5   :  { %4558 = vmatprep.subr.bf16.mxu0 %v4557_v1  ;;  %v4587_v1 = vpack.c.bf16 %v1982_v28, %v1978_v60  ;;  %v4589_v15 = vpack.c.bf16 %v1991_v0, %v1987_v62  ;;  %v4611_v28 = vpack.c.bf16 %v1904_v55, %v1900_v53  ;;  %v1960_v53 = vld [vmem:[#allocation19 + $0x1f0] sm:$0xff]  ;;  %v1965_v55 = vld [vmem:[#allocation19 + $0x218] sm:$0xff] }
 0x8a8   :  { %4560 = vmatpush1.bf16.msra.mxu0 %v4559_v31  ;;  %v1999_v31 = vld [vmem:[#allocation19 + $0x328] sm:$0xff] }
 0x8a9   :  { %4562 = vmatprep.subr.bf16.mxu0 %v4561_v36  ;;  %v4591_v36 = vpack.c.bf16 %v1990_v38, %v1986_v34  ;;  %v4593_v5 = vpack.c.bf16 %v1999_v31, %v1995_v3  ;;  %v1917_v34 = vld [vmem:[#allocation19 + $0x98] sm:$0xff] }
 0x8aa   :  { %v1921_v38 = vld [vmem:[#allocation19 + $0xb8] sm:$0xff] }
 0x8ab   :  { %v4617_v31 = vpack.c.bf16 %v1921_v38, %v1917_v34  ;;  %v1972_v38 = vld [vmem:[#allocation19 + $0x250] sm:$0xff] }
 0x8ac   :  { %4564 = vmatpush1.bf16.msra.mxu0 %v4563_v23  ;;  %v2007_v23 = vld [vmem:[#allocation19 + $0x368] sm:$0xff] }
 0x8ad   :  { %4566 = vmatprep.subr.bf16.mxu0 %v4565_v11  ;;  %v4595_v11 = vpack.c.bf16 %v1998_v7, %v1994_v6  ;;  %v4597_v12 = vpack.c.bf16 %v2007_v23, %v2003_v9  ;;  %v1925_v6 = vld [vmem:[#allocation19 + $0xd8] sm:$0xff] }
 0x8ae   :  { %v1929_v7 = vld [vmem:[#allocation19 + $0xf8] sm:$0xff] }
 0x8af   :  { %v4621_v23 = vpack.c.bf16 %v1929_v7, %v1925_v6  ;;  %v1980_v7 = vld [vmem:[#allocation19 + $0x290] sm:$0xff] }
 0x8b0   :  { %4568 = vmatpush1.bf16.msra.mxu0 %v4567_v27  ;;  %v2015_v27 = vld [vmem:[#allocation19 + $0x3a8] sm:$0xff] }
 0x8b1   :  { %4570 = vmatprep.subr.bf16.mxu0 %v4569_v29  ;;  %v4599_v29 = vpack.c.bf16 %v2006_v16, %v2002_v13  ;;  %v4601_v30 = vpack.c.bf16 %v2015_v27, %v2011_v25  ;;  %v1933_v13 = vld [vmem:[#allocation19 + $0x118] sm:$0xff] }
 0x8b2   :  { %v1937_v16 = vld [vmem:[#allocation19 + $0x138] sm:$0xff] }
 0x8b3   :  { %v4625_v27 = vpack.c.bf16 %v1937_v16, %v1933_v13  ;;  %v1988_v16 = vld [vmem:[#allocation19 + $0x2d0] sm:$0xff] }
 0x8b4   :  { %4572 = vmatpush1.bf16.msra.mxu0 %v4571_v37  ;;  %v2019_v37 = vld [vmem:[#allocation19 + $0x3c8] sm:$0xff] }
 0x8b5   :  { %4574 = vmatprep.subr.bf16.mxu0 %v4573_v41  ;;  %v2023_v41 = vld [vmem:[#allocation19 + $0x3e8] sm:$0xff] }
 0x8b6   :  { %v4605_v42 = vpack.c.bf16 %v2023_v41, %v2019_v37  ;;  %v4629_v37 = vpack.c.bf16 %v1945_v33, %v1941_v32  ;;  %v1940_v41 = vld [vmem:[#allocation19 + $0x150] sm:$0xff] }
 0x8b7   :  { %v1996_v33 = vld [vmem:[#allocation19 + $0x310] sm:$0xff] }
 0x8b8   :  { %4576 = vmatpush1.bf16.msra.mxu0 %v4575_v21  ;;  %v1901_v21 = vld [vmem:[#allocation19 + $0x18] sm:$0xff] }
 0x8b9   :  { %4578 = vmatprep.subr.bf16.mxu0 %v4577_v45  ;;  %v1905_v45 = vld [vmem:[#allocation19 + $0x38] sm:$0xff] }
 0x8ba   :  { %v4609_v46 = vpack.c.bf16 %v1905_v45, %v1901_v21  ;;  %v4633_v21 = vpack.c.bf16 %v1953_v10, %v1949_v43  ;;  %v1948_v45 = vld [vmem:[#allocation19 + $0x190] sm:$0xff] }
 0x8bb   :  { %v2004_v10 = vld [vmem:[#allocation19 + $0x350] sm:$0xff] }
 0x8bc   :  { %4580 = vmatpush1.bf16.msra.mxu0 %v4579_v50 }
 0x8bd   :  { %4582 = vmatprep.subr.bf16.mxu0 %v4581_v51 }
 0x8c0   :  { %4584 = vmatpush1.bf16.msra.mxu0 %v4583_v57  ;;  %v1909_v57 = vld [vmem:[#allocation19 + $0x58] sm:$0xff] }
 0x8c1   :  { %4586 = vmatprep.subr.bf16.mxu0 %v4585_v59  ;;  %v1913_v59 = vld [vmem:[#allocation19 + $0x78] sm:$0xff] }
 0x8c2   :  { %v4613_v0 = vpack.c.bf16 %v1913_v59, %v1909_v57 }
 0x8c4   :  { %4588 = vmatpush1.bf16.msra.mxu0 %v4587_v1  ;;  %v1908_v1 = vld [vmem:[#allocation19 + $0x50] sm:$0xff] }
 0x8c5   :  { %4590 = vmatprep.subr.bf16.mxu0 %v4589_v15  ;;  %v1912_v15 = vld [vmem:[#allocation19 + $0x70] sm:$0xff] }
 0x8c6   :  { %v4615_v3 = vpack.c.bf16 %v1912_v15, %v1908_v1  ;;  %v1977_v1 = vld [vmem:[#allocation19 + $0x278] sm:$0xff] }
 0x8c8   :  { %4592 = vmatpush1.bf16.msra.mxu0 %v4591_v36  ;;  %v1916_v36 = vld [vmem:[#allocation19 + $0x90] sm:$0xff] }
 0x8c9   :  { %4594 = vmatprep.subr.bf16.mxu0 %v4593_v5  ;;  %v1920_v5 = vld [vmem:[#allocation19 + $0xb0] sm:$0xff] }
 0x8ca   :  { %v4619_v9 = vpack.c.bf16 %v1920_v5, %v1916_v36  ;;  %v1985_v36 = vld [vmem:[#allocation19 + $0x2b8] sm:$0xff] }
 0x8cc   :  { %4596 = vmatpush1.bf16.msra.mxu0 %v4595_v11  ;;  %v1924_v11 = vld [vmem:[#allocation19 + $0xd0] sm:$0xff] }
 0x8cd   :  { %4598 = vmatprep.subr.bf16.mxu0 %v4597_v12  ;;  %v1928_v12 = vld [vmem:[#allocation19 + $0xf0] sm:$0xff] }
 0x8ce   :  { %v4623_v25 = vpack.c.bf16 %v1928_v12, %v1924_v11  ;;  %v1993_v11 = vld [vmem:[#allocation19 + $0x2f8] sm:$0xff] }
 0x8d0   :  { %4600 = vmatpush1.bf16.msra.mxu0 %v4599_v29  ;;  %v1932_v29 = vld [vmem:[#allocation19 + $0x110] sm:$0xff] }
 0x8d1   :  { %4602 = vmatprep.subr.bf16.mxu0 %v4601_v30  ;;  %v1936_v30 = vld [vmem:[#allocation19 + $0x130] sm:$0xff] }
 0x8d4   :  { %4604 = vmatpush1.bf16.msra.mxu0 %v4603_v35  ;;  %v4627_v35 = vpack.c.bf16 %v1936_v30, %v1932_v29  ;;  %v2001_v29 = vld [vmem:[#allocation19 + $0x338] sm:$0xff] }
 0x8d5   :  { %4606 = vmatprep.subr.bf16.mxu0 %v4605_v42  ;;  %v1944_v42 = vld [vmem:[#allocation19 + $0x170] sm:$0xff] }
 0x8d8   :  { %4608 = vmatpush1.bf16.msra.mxu0 %v4607_v44  ;;  %v4631_v44 = vpack.c.bf16 %v1944_v42, %v1940_v41  ;;  %v2009_v41 = vld [vmem:[#allocation19 + $0x378] sm:$0xff] }
 0x8d9   :  { %4610 = vmatprep.subr.bf16.mxu0 %v4609_v46  ;;  %v1952_v46 = vld [vmem:[#allocation19 + $0x1b0] sm:$0xff] }
 0x96e   :  { %v1891_v50 = vpop.f32.mrb[24].mxu0 }
 0x96f   :  { %v6395_v51 = vadd.f32 %v1891_v50, %v1747_v48  ;;  %v1893_v52 = vpop.f32.mrb[25].mxu0  ;;  %v1961_v48 = vld [vmem:[#allocation19 + $0x1f8] sm:$0xff] }
 0x970   :  { %v5378_v56 = vadd.f32 %v1893_v52, %v1751_v49  ;;  %v4635_v49 = vpack.c.bf16 %v1952_v46, %v1948_v45  ;;  %v4637_v50 = vpack.c.bf16 %v1961_v48, %v1957_v47  ;;  %v1956_v52 = vld [vmem:[#allocation19 + $0x1d0] sm:$0xff]  ;;  %v2017_v45 = vld [vmem:[#allocation19 + $0x3b8] sm:$0xff] }
 0x971   :  { %v1896_v62 = vmax.f32 %v6395_v51, 0.0  ;;  %v4639_v57 = vpack.c.bf16 %v1960_v53, %v1956_v52  ;;  %v2012_v48 = vld [vmem:[#allocation19 + $0x390] sm:$0xff]  ;;  %v2025_v52 = vld [vmem:[#allocation19 + $0x3f8] sm:$0xff] }
 0x972   :  { %v1897_v60 = vmax.f32 %v5378_v56, 0.0  ;;  %v1969_v56 = vld [vmem:[#allocation19 + $0x238] sm:$0xff] }
 0x973   :  { %v4641_v59 = vpack.c.bf16 %v1969_v56, %v1965_v55  ;;  %v2020_v56 = vld [vmem:[#allocation19 + $0x3d0] sm:$0xff] }
 0x974   :  { %2113 = vmatprep.mubr.f32.mxu0 %v1897_v60 }
 0x975   :  { %2114 = vmatmul.mubr.f32.vlgmr.msra.gmra.mrb[26].mxu0 %v1896_v62 }
 0x976   :  { %4612 = vmatpush1.bf16.msra.mxu0 %v4611_v28  ;;  %2184 = vmatprep.mubr.f32.mxu0 %v1897_v60  ;;  %v1964_v60 = vld [vmem:[#allocation19 + $0x210] sm:$0xff] }
 0x977   :  { %4614 = vmatprep.subr.bf16.mxu0 %v4613_v0  ;;  %v1968_v28 = vld [vmem:[#allocation19 + $0x230] sm:$0xff]  ;;  %v1973_v0 = vld [vmem:[#allocation19 + $0x258] sm:$0xff] }
 0x978   :  { %v4643_v15 = vpack.c.bf16 %v1968_v28, %v1964_v60  ;;  %v4645_v34 = vpack.c.bf16 %v1977_v1, %v1973_v0  ;;  %v2250_v60 = vld [vmem:[#allocation20 + $0x18] sm:$0xff]  ;;  %v2247_v1 = vld [vmem:[#allocation20] sm:$0xff] }
 0x97a   :  { %4616 = vmatpush1.bf16.msra.mxu0 %v4615_v3  ;;  %v1976_v3 = vld [vmem:[#allocation19 + $0x270] sm:$0xff] }
 0x97b   :  { %4618 = vmatprep.subr.bf16.mxu0 %v4617_v31  ;;  %v1981_v31 = vld [vmem:[#allocation19 + $0x298] sm:$0xff]  ;;  %v4647_v5 = vpack.c.bf16 %v1976_v3, %v1972_v38 }
 0x97c   :  { %v4649_v6 = vpack.c.bf16 %v1985_v36, %v1981_v31  ;;  %v2254_v38 = vld [vmem:[#allocation20 + $0x38] sm:$0xff]  ;;  %v2251_v36 = vld [vmem:[#allocation20 + $0x20] sm:$0xff] }
 0x97e   :  { %4620 = vmatpush1.bf16.msra.mxu0 %v4619_v9  ;;  %v1984_v9 = vld [vmem:[#allocation19 + $0x2b0] sm:$0xff] }
 0x97f   :  { %4622 = vmatprep.subr.bf16.mxu0 %v4621_v23  ;;  %v1989_v23 = vld [vmem:[#allocation19 + $0x2d8] sm:$0xff]  ;;  %v4651_v12 = vpack.c.bf16 %v1984_v9, %v1980_v7 }
 0x980   :  { %v4653_v13 = vpack.c.bf16 %v1993_v11, %v1989_v23  ;;  %v2258_v7 = vld [vmem:[#allocation20 + $0x58] sm:$0xff]  ;;  %v2255_v11 = vld [vmem:[#allocation20 + $0x40] sm:$0xff] }
 0x982   :  { %4624 = vmatpush1.bf16.msra.mxu0 %v4623_v25  ;;  %v1992_v25 = vld [vmem:[#allocation19 + $0x2f0] sm:$0xff] }
 0x983   :  { %4626 = vmatprep.subr.bf16.mxu0 %v4625_v27  ;;  %v1997_v27 = vld [vmem:[#allocation19 + $0x318] sm:$0xff]  ;;  %v4655_v30 = vpack.c.bf16 %v1992_v25, %v1988_v16 }
 0x984   :  { %v4657_v32 = vpack.c.bf16 %v2001_v29, %v1997_v27  ;;  %v2262_v16 = vld [vmem:[#allocation20 + $0x78] sm:$0xff]  ;;  %v2259_v29 = vld [vmem:[#allocation20 + $0x60] sm:$0xff] }
 0x986   :  { %4628 = vmatpush1.bf16.msra.mxu0 %v4627_v35  ;;  %v2000_v35 = vld [vmem:[#allocation19 + $0x330] sm:$0xff] }
 0x987   :  { %4630 = vmatprep.subr.bf16.mxu0 %v4629_v37  ;;  %v2005_v37 = vld [vmem:[#allocation19 + $0x358] sm:$0xff]  ;;  %v4659_v42 = vpack.c.bf16 %v2000_v35, %v1996_v33 }
 0x988   :  { %v4661_v43 = vpack.c.bf16 %v2009_v41, %v2005_v37  ;;  %v2266_v33 = vld [vmem:[#allocation20 + $0x98] sm:$0xff]  ;;  %v2265_v37 = vld [vmem:[#allocation20 + $0x90] sm:$0xff]  ;;  %v2268_v41 = vld [vmem:[#allocation20 + $0xa8] sm:$0xff] }
 0x98a   :  { %4632 = vmatpush1.bf16.msra.mxu0 %v4631_v44  ;;  %v2008_v44 = vld [vmem:[#allocation19 + $0x370] sm:$0xff] }
 0x98b   :  { %4634 = vmatprep.subr.bf16.mxu0 %v4633_v21  ;;  %v2013_v21 = vld [vmem:[#allocation19 + $0x398] sm:$0xff]  ;;  %v4663_v46 = vpack.c.bf16 %v2008_v44, %v2004_v10  ;;  %v2267_v44 = vld [vmem:[#allocation20 + $0xa0] sm:$0xff] }
 0x98c   :  { %v4665_v47 = vpack.c.bf16 %v2017_v45, %v2013_v21  ;;  %v2269_v21 = vld [vmem:[#allocation20 + $0xb0] sm:$0xff]  ;;  %v2272_v45 = vld [vmem:[#allocation20 + $0xc8] sm:$0xff] }
 0x98e   :  { %4636 = vmatpush1.bf16.msra.mxu0 %v4635_v49  ;;  %v2016_v49 = vld [vmem:[#allocation19 + $0x3b0] sm:$0xff] }
 0x98f   :  { %4638 = vmatprep.subr.bf16.mxu0 %v4637_v50  ;;  %v2021_v50 = vld [vmem:[#allocation19 + $0x3d8] sm:$0xff]  ;;  %v4667_v53 = vpack.c.bf16 %v2016_v49, %v2012_v48  ;;  %v2271_v49 = vld [vmem:[#allocation20 + $0xc0] sm:$0xff] }
 0x990   :  { %v4669_v55 = vpack.c.bf16 %v2025_v52, %v2021_v50  ;;  %v2273_v50 = vld [vmem:[#allocation20 + $0xd0] sm:$0xff]  ;;  %v2276_v52 = vld [vmem:[#allocation20 + $0xe8] sm:$0xff] }
 0x992   :  { %4640 = vmatpush1.bf16.msra.mxu0 %v4639_v57  ;;  %v2024_v57 = vld [vmem:[#allocation19 + $0x3f0] sm:$0xff] }
 0x993   :  { %4642 = vmatprep.subr.bf16.mxu0 %v4641_v59  ;;  %v2248_v59 = vld [vmem:[#allocation20 + $0x8] sm:$0xff]  ;;  %v4671_v28 = vpack.c.bf16 %v2024_v57, %v2020_v56  ;;  %v2275_v57 = vld [vmem:[#allocation20 + $0xe0] sm:$0xff] }
 0x994   :  { %v4673_v0 = vpack.c.bf16 %v2250_v60, %v2248_v59  ;;  %v2277_v59 = vld [vmem:[#allocation20 + $0xf0] sm:$0xff]  ;;  %v2280_v60 = vld [vmem:[#allocation20 + $0x108] sm:$0xff] }
 0x996   :  { %4644 = vmatpush1.bf16.msra.mxu0 %v4643_v15  ;;  %v2249_v15 = vld [vmem:[#allocation20 + $0x10] sm:$0xff] }
 0x997   :  { %4646 = vmatprep.subr.bf16.mxu0 %v4645_v34  ;;  %v2252_v34 = vld [vmem:[#allocation20 + $0x28] sm:$0xff]  ;;  %v4675_v3 = vpack.c.bf16 %v2249_v15, %v2247_v1  ;;  %v2279_v15 = vld [vmem:[#allocation20 + $0x100] sm:$0xff] }
 0x998   :  { %v4677_v31 = vpack.c.bf16 %v2254_v38, %v2252_v34  ;;  %v2281_v34 = vld [vmem:[#allocation20 + $0x110] sm:$0xff]  ;;  %v2284_v38 = vld [vmem:[#allocation20 + $0x128] sm:$0xff] }
 0x99a   :  { %4648 = vmatpush1.bf16.msra.mxu0 %v4647_v5  ;;  %v2253_v5 = vld [vmem:[#allocation20 + $0x30] sm:$0xff] }
 0x99b   :  { %4650 = vmatprep.subr.bf16.mxu0 %v4649_v6  ;;  %v2256_v6 = vld [vmem:[#allocation20 + $0x48] sm:$0xff]  ;;  %v4679_v9 = vpack.c.bf16 %v2253_v5, %v2251_v36  ;;  %v2283_v5 = vld [vmem:[#allocation20 + $0x120] sm:$0xff] }
 0x99c   :  { %v4681_v23 = vpack.c.bf16 %v2258_v7, %v2256_v6  ;;  %v2285_v6 = vld [vmem:[#allocation20 + $0x130] sm:$0xff]  ;;  %v2288_v7 = vld [vmem:[#allocation20 + $0x148] sm:$0xff] }
 0x99e   :  { %4652 = vmatpush1.bf16.msra.mxu0 %v4651_v12  ;;  %v2257_v12 = vld [vmem:[#allocation20 + $0x50] sm:$0xff] }
 0x99f   :  { %4654 = vmatprep.subr.bf16.mxu0 %v4653_v13  ;;  %v2260_v13 = vld [vmem:[#allocation20 + $0x68] sm:$0xff]  ;;  %v4683_v25 = vpack.c.bf16 %v2257_v12, %v2255_v11  ;;  %v2287_v12 = vld [vmem:[#allocation20 + $0x140] sm:$0xff] }
 0x9a0   :  { %v4685_v27 = vpack.c.bf16 %v2262_v16, %v2260_v13  ;;  %v2289_v13 = vld [vmem:[#allocation20 + $0x150] sm:$0xff]  ;;  %v2292_v16 = vld [vmem:[#allocation20 + $0x168] sm:$0xff] }
 0x9a2   :  { %4656 = vmatpush1.bf16.msra.mxu0 %v4655_v30  ;;  %v2261_v30 = vld [vmem:[#allocation20 + $0x70] sm:$0xff] }
 0x9a3   :  { %4658 = vmatprep.subr.bf16.mxu0 %v4657_v32  ;;  %v2264_v32 = vld [vmem:[#allocation20 + $0x88] sm:$0xff]  ;;  %v4687_v35 = vpack.c.bf16 %v2261_v30, %v2259_v29  ;;  %v2291_v30 = vld [vmem:[#allocation20 + $0x160] sm:$0xff] }
 0x9a4   :  { %v4689_v51 = vpack.c.bf16 %v2266_v33, %v2264_v32  ;;  %v2293_v32 = vld [vmem:[#allocation20 + $0x170] sm:$0xff]  ;;  %v2296_v33 = vld [vmem:[#allocation20 + $0x188] sm:$0xff] }
 0x9a6   :  { %4660 = vmatpush1.bf16.msra.mxu0 %v4659_v42  ;;  %v2270_v42 = vld [vmem:[#allocation20 + $0xb8] sm:$0xff] }
 0x9a7   :  { %4662 = vmatprep.subr.bf16.mxu0 %v4661_v43  ;;  %v4693_v10 = vpack.c.bf16 %v2270_v42, %v2268_v41  ;;  %v2297_v41 = vld [vmem:[#allocation20 + $0x190] sm:$0xff]  ;;  %v2300_v42 = vld [vmem:[#allocation20 + $0x1a8] sm:$0xff] }
 0x9aa   :  { %4664 = vmatpush1.bf16.msra.mxu0 %v4663_v46  ;;  %v2274_v46 = vld [vmem:[#allocation20 + $0xd8] sm:$0xff] }
 0x9ab   :  { %4666 = vmatprep.subr.bf16.mxu0 %v4665_v47  ;;  %v4695_v47 = vpack.c.bf16 %v2269_v21, %v2267_v44  ;;  %v4697_v48 = vpack.c.bf16 %v2274_v46, %v2272_v45  ;;  %v2299_v21 = vld [vmem:[#allocation20 + $0x1a0] sm:$0xff]  ;;  %v2301_v45 = vld [vmem:[#allocation20 + $0x1b0] sm:$0xff]  ;;  %v2304_v46 = vld [vmem:[#allocation20 + $0x1c8] sm:$0xff] }
 0x9ae   :  { %4668 = vmatpush1.bf16.msra.mxu0 %v4667_v53  ;;  %v2278_v53 = vld [vmem:[#allocation20 + $0xf8] sm:$0xff] }
 0x9af   :  { %4670 = vmatprep.subr.bf16.mxu0 %v4669_v55  ;;  %v4699_v55 = vpack.c.bf16 %v2273_v50, %v2271_v49  ;;  %v4701_v56 = vpack.c.bf16 %v2278_v53, %v2276_v52  ;;  %v2303_v50 = vld [vmem:[#allocation20 + $0x1c0] sm:$0xff]  ;;  %v2305_v52 = vld [vmem:[#allocation20 + $0x1d0] sm:$0xff]  ;;  %v2308_v53 = vld [vmem:[#allocation20 + $0x1e8] sm:$0xff] }
 0x9b2   :  { %4672 = vmatpush1.bf16.msra.mxu0 %v4671_v28  ;;  %v2282_v28 = vld [vmem:[#allocation20 + $0x118] sm:$0xff] }
 0x9b3   :  { %4674 = vmatprep.subr.bf16.mxu0 %v4673_v0  ;;  %v4703_v0 = vpack.c.bf16 %v2277_v59, %v2275_v57  ;;  %v4705_v1 = vpack.c.bf16 %v2282_v28, %v2280_v60  ;;  %v2307_v59 = vld [vmem:[#allocation20 + $0x1e0] sm:$0xff]  ;;  %v2309_v60 = vld [vmem:[#allocation20 + $0x1f0] sm:$0xff]  ;;  %v2312_v28 = vld [vmem:[#allocation20 + $0x208] sm:$0xff] }
 0x9b5   :  { %2185 = vmatmul.mubr.f32.vlgmr.msra.gmra.mrb[28].mxu0 %v1896_v62  ;;  %v2263_v62 = vld [vmem:[#allocation20 + $0x80] sm:$0xff] }
 0x9b6   :  { %4676 = vmatpush1.bf16.msra.mxu0 %v4675_v3  ;;  %v4691_v43 = vpack.c.bf16 %v2265_v37, %v2263_v62  ;;  %v2286_v3 = vld [vmem:[#allocation20 + $0x138] sm:$0xff]  ;;  %v2295_v37 = vld [vmem:[#allocation20 + $0x180] sm:$0xff] }
 0x9b7   :  { %4678 = vmatprep.subr.bf16.mxu0 %v4677_v31  ;;  %v4707_v31 = vpack.c.bf16 %v2281_v34, %v2279_v15  ;;  %v4709_v36 = vpack.c.bf16 %v2286_v3, %v2284_v38  ;;  %v2644_v34 = vld [vmem:[#allocation22 + $0x8] sm:$0xff]  ;;  %v2646_v38 = vld [vmem:[#allocation22 + $0x18] sm:$0xff]  ;;  %v2643_v3 = vld [vmem:[#allocation22] sm:$0xff] }
 0x9ba   :  { %4680 = vmatpush1.bf16.msra.mxu0 %v4679_v9  ;;  %v2290_v9 = vld [vmem:[#allocation20 + $0x158] sm:$0xff] }
 0x9bb   :  { %4682 = vmatprep.subr.bf16.mxu0 %v4681_v23  ;;  %v4711_v23 = vpack.c.bf16 %v2285_v6, %v2283_v5  ;;  %v4713_v11 = vpack.c.bf16 %v2290_v9, %v2288_v7  ;;  %v2648_v5 = vld [vmem:[#allocation22 + $0x28] sm:$0xff]  ;;  %v2650_v6 = vld [vmem:[#allocation22 + $0x38] sm:$0xff] }
 0x9bc   :  { %v4805_v9 = vpack.c.bf16 %v2650_v6, %v2648_v5  ;;  %v2677_v5 = vld [vmem:[#allocation22 + $0x110] sm:$0xff]  ;;  %v2680_v6 = vld [vmem:[#allocation22 + $0x128] sm:$0xff] }
 0x9be   :  { %4684 = vmatpush1.bf16.msra.mxu0 %v4683_v25  ;;  %v2294_v25 = vld [vmem:[#allocation20 + $0x178] sm:$0xff] }
 0x9bf   :  { %4686 = vmatprep.subr.bf16.mxu0 %v4685_v27  ;;  %v4715_v27 = vpack.c.bf16 %v2289_v13, %v2287_v12  ;;  %v4717_v29 = vpack.c.bf16 %v2294_v25, %v2292_v16  ;;  %v2652_v12 = vld [vmem:[#allocation22 + $0x48] sm:$0xff]  ;;  %v2654_v13 = vld [vmem:[#allocation22 + $0x58] sm:$0xff] }
 0x9c0   :  { %v4809_v25 = vpack.c.bf16 %v2654_v13, %v2652_v12  ;;  %v2681_v12 = vld [vmem:[#allocation22 + $0x130] sm:$0xff]  ;;  %v2684_v13 = vld [vmem:[#allocation22 + $0x148] sm:$0xff] }
 0x9c2   :  { %4688 = vmatpush1.bf16.msra.mxu0 %v4687_v35  ;;  %v2298_v35 = vld [vmem:[#allocation20 + $0x198] sm:$0xff] }
 0x9c3   :  { %4690 = vmatprep.subr.bf16.mxu0 %v4689_v51  ;;  %v4719_v51 = vpack.c.bf16 %v2293_v32, %v2291_v30  ;;  %v4721_v62 = vpack.c.bf16 %v2298_v35, %v2296_v33  ;;  %v2656_v30 = vld [vmem:[#allocation22 + $0x68] sm:$0xff]  ;;  %v2658_v32 = vld [vmem:[#allocation22 + $0x78] sm:$0xff] }
 0x9c4   :  { %v4813_v35 = vpack.c.bf16 %v2658_v32, %v2656_v30  ;;  %v2683_v30 = vld [vmem:[#allocation22 + $0x140] sm:$0xff]  ;;  %v2685_v32 = vld [vmem:[#allocation22 + $0x150] sm:$0xff] }
 0x9c6   :  { %4692 = vmatpush1.bf16.msra.mxu0 %v4691_v43  ;;  %v2302_v43 = vld [vmem:[#allocation20 + $0x1b8] sm:$0xff] }
 0x9c7   :  { %4694 = vmatprep.subr.bf16.mxu0 %v4693_v10  ;;  %v4723_v10 = vpack.c.bf16 %v2297_v41, %v2295_v37  ;;  %v4725_v44 = vpack.c.bf16 %v2302_v43, %v2300_v42  ;;  %v2660_v37 = vld [vmem:[#allocation22 + $0x88] sm:$0xff]  ;;  %v2662_v41 = vld [vmem:[#allocation22 + $0x98] sm:$0xff] }
 0x9c8   :  { %v4817_v43 = vpack.c.bf16 %v2662_v41, %v2660_v37 }
 0x9ca   :  { %4696 = vmatpush1.bf16.msra.mxu0 %v4695_v47  ;;  %v2306_v47 = vld [vmem:[#allocation20 + $0x1d8] sm:$0xff] }
 0x9cb   :  { %4698 = vmatprep.subr.bf16.mxu0 %v4697_v48  ;;  %v4727_v48 = vpack.c.bf16 %v2301_v45, %v2299_v21  ;;  %v4729_v49 = vpack.c.bf16 %v2306_v47, %v2304_v46  ;;  %v2664_v21 = vld [vmem:[#allocation22 + $0xa8] sm:$0xff]  ;;  %v2666_v45 = vld [vmem:[#allocation22 + $0xb8] sm:$0xff] }
 0x9cc   :  { %v4821_v47 = vpack.c.bf16 %v2666_v45, %v2664_v21 }
 0x9ce   :  { %4700 = vmatpush1.bf16.msra.mxu0 %v4699_v55  ;;  %v2310_v55 = vld [vmem:[#allocation20 + $0x1f8] sm:$0xff] }
 0x9cf   :  { %4702 = vmatprep.subr.bf16.mxu0 %v4701_v56  ;;  %v4731_v56 = vpack.c.bf16 %v2305_v52, %v2303_v50  ;;  %v4733_v57 = vpack.c.bf16 %v2310_v55, %v2308_v53  ;;  %v2668_v50 = vld [vmem:[#allocation22 + $0xc8] sm:$0xff]  ;;  %v2670_v52 = vld [vmem:[#allocation22 + $0xd8] sm:$0xff] }
 0x9d0   :  { %v4825_v55 = vpack.c.bf16 %v2670_v52, %v2668_v50  ;;  %v2691_v50 = vld [vmem:[#allocation22 + $0x180] sm:$0xff]  ;;  %v2693_v52 = vld [vmem:[#allocation22 + $0x190] sm:$0xff] }
 0x9d2   :  { %4704 = vmatpush1.bf16.msra.mxu0 %v4703_v0  ;;  %v2314_v0 = vld [vmem:[#allocation20 + $0x218] sm:$0xff] }
 0x9d3   :  { %4706 = vmatprep.subr.bf16.mxu0 %v4705_v1  ;;  %v4735_v1 = vpack.c.bf16 %v2309_v60, %v2307_v59  ;;  %v4737_v15 = vpack.c.bf16 %v2314_v0, %v2312_v28  ;;  %v2672_v59 = vld [vmem:[#allocation22 + $0xe8] sm:$0xff]  ;;  %v2674_v60 = vld [vmem:[#allocation22 + $0xf8] sm:$0xff] }
 0x9d4   :  { %v4829_v0 = vpack.c.bf16 %v2674_v60, %v2672_v59  ;;  %v4851_v60 = vpack.c.bf16 %v2693_v52, %v2691_v50  ;;  %v2323_v50 = vld [vmem:[#allocation20 + $0x260] sm:$0xff]  ;;  %v2325_v52 = vld [vmem:[#allocation20 + $0x270] sm:$0xff] }
 0x9d6   :  { %4708 = vmatpush1.bf16.msra.mxu0 %v4707_v31  ;;  %v4801_v31 = vpack.c.bf16 %v2646_v38, %v2644_v34  ;;  %v2676_v34 = vld [vmem:[#allocation22 + $0x108] sm:$0xff]  ;;  %v2678_v38 = vld [vmem:[#allocation22 + $0x118] sm:$0xff] }
 0x9d7   :  { %4710 = vmatprep.subr.bf16.mxu0 %v4709_v36  ;;  %v2645_v36 = vld [vmem:[#allocation22 + $0x10] sm:$0xff] }
 0x9d8   :  { %v4803_v7 = vpack.c.bf16 %v2645_v36, %v2643_v3  ;;  %4802 = vmatprep.subr.bf16.mxu1 %v4801_v31  ;;  %v4833_v31 = vpack.c.bf16 %v2678_v38, %v2676_v34  ;;  %v2675_v36 = vld [vmem:[#allocation22 + $0x100] sm:$0xff]  ;;  %v2700_v38 = vld [vmem:[#allocation22 + $0x1c8] sm:$0xff] }
 0x9da   :  { %4712 = vmatpush1.bf16.msra.mxu0 %v4711_v23  ;;  %v2647_v23 = vld [vmem:[#allocation22 + $0x20] sm:$0xff]  ;;  %4804 = vmatpush1.bf16.msra.mxu1 %v4803_v7  ;;  %v2682_v7 = vld [vmem:[#allocation22 + $0x138] sm:$0xff] }
 0x9db   :  { %4714 = vmatprep.subr.bf16.mxu0 %v4713_v11  ;;  %v2649_v11 = vld [vmem:[#allocation22 + $0x30] sm:$0xff]  ;;  %4806 = vmatprep.subr.bf16.mxu1 %v4805_v9  ;;  %v4835_v9 = vpack.c.bf16 %v2677_v5, %v2675_v36 }
 0x9dc   :  { %v4807_v16 = vpack.c.bf16 %v2649_v11, %v2647_v23  ;;  %v4837_v23 = vpack.c.bf16 %v2682_v7, %v2680_v6  ;;  %v2679_v11 = vld [vmem:[#allocation22 + $0x120] sm:$0xff] }
 0x9de   :  { %4716 = vmatpush1.bf16.msra.mxu0 %v4715_v27  ;;  %v2651_v27 = vld [vmem:[#allocation22 + $0x40] sm:$0xff]  ;;  %4808 = vmatpush1.bf16.msra.mxu1 %v4807_v16  ;;  %v2686_v16 = vld [vmem:[#allocation22 + $0x158] sm:$0xff] }
 0x9df   :  { %4718 = vmatprep.subr.bf16.mxu0 %v4717_v29  ;;  %v2653_v29 = vld [vmem:[#allocation22 + $0x50] sm:$0xff]  ;;  %4810 = vmatprep.subr.bf16.mxu1 %v4809_v25  ;;  %v4839_v25 = vpack.c.bf16 %v2681_v12, %v2679_v11  ;;  %v2311_v12 = vld [vmem:[#allocation20 + $0x200] sm:$0xff] }
 0x9e0   :  { %v4811_v33 = vpack.c.bf16 %v2653_v29, %v2651_v27  ;;  %v6402_v27 = vld [vmem:[#allocation25 + $0x23] ss:$8 sm:$0xf]  ;;  %v4841_v29 = vpack.c.bf16 %v2686_v16, %v2684_v13 }
 0x9e1   :  { %v2036_v37 = vrot.slane %v6402_v27, %v6237_v26  ;;  %v2313_v13 = vld [vmem:[#allocation20 + $0x210] sm:$0xff] }
 0x9e2   :  { %4720 = vmatpush1.bf16.msra.mxu0 %v4719_v51  ;;  %v2655_v51 = vld [vmem:[#allocation22 + $0x60] sm:$0xff]  ;;  %4812 = vmatpush1.bf16.msra.mxu1 %v4811_v33  ;;  %v2688_v33 = vld [vmem:[#allocation22 + $0x168] sm:$0xff] }
 0x9e3   :  { %4722 = vmatprep.subr.bf16.mxu0 %v4721_v62  ;;  %v2657_v62 = vld [vmem:[#allocation22 + $0x70] sm:$0xff]  ;;  %4814 = vmatprep.subr.bf16.mxu1 %v4813_v35  ;;  %v2690_v35 = vld [vmem:[#allocation22 + $0x178] sm:$0xff] }
 0x9e4   :  { %v4815_v42 = vpack.c.bf16 %v2657_v62, %v2655_v51  ;;  %v2032_v51 = vrot.slane %v6402_v27, %v6234_v24  ;;  %v4843_v62 = vpack.c.bf16 %v2685_v32, %v2683_v30  ;;  %v4845_v41 = vpack.c.bf16 %v2690_v35, %v2688_v33  ;;  %v2318_v30 = vld [vmem:[#allocation20 + $0x238] sm:$0xff] }
 0x9e5   :  { %v4739_v35 = vpack.c.bf16 %v2313_v13, %v2311_v12  ;;  %v2339_v12 = vld [vmem:[#allocation20 + $0x2e0] sm:$0xff]  ;;  %v2341_v13 = vld [vmem:[#allocation20 + $0x2f0] sm:$0xff] }
 0x9e6   :  { %4724 = vmatpush1.bf16.msra.mxu0 %v4723_v10  ;;  %v2659_v10 = vld [vmem:[#allocation22 + $0x80] sm:$0xff]  ;;  %4816 = vmatpush1.bf16.msra.mxu1 %v4815_v42 }
 0x9e7   :  { %4726 = vmatprep.subr.bf16.mxu0 %v4725_v44  ;;  %v2661_v44 = vld [vmem:[#allocation22 + $0x90] sm:$0xff]  ;;  %4818 = vmatprep.subr.bf16.mxu1 %v4817_v43  ;;  %v2687_v42 = vld [vmem:[#allocation22 + $0x160] sm:$0xff] }
 0x9e8   :  { %v4819_v46 = vpack.c.bf16 %v2661_v44, %v2659_v10  ;;  %v2689_v43 = vld [vmem:[#allocation22 + $0x170] sm:$0xff]  ;;  %v2692_v10 = vld [vmem:[#allocation22 + $0x188] sm:$0xff]  ;;  %v2694_v44 = vld [vmem:[#allocation22 + $0x198] sm:$0xff] }
 0x9ea   :  { %4728 = vmatpush1.bf16.msra.mxu0 %v4727_v48  ;;  %v2663_v48 = vld [vmem:[#allocation22 + $0xa0] sm:$0xff]  ;;  %4820 = vmatpush1.bf16.msra.mxu1 %v4819_v46 }
 0x9eb   :  { %4730 = vmatprep.subr.bf16.mxu0 %v4729_v49  ;;  %v2665_v49 = vld [vmem:[#allocation22 + $0xb0] sm:$0xff]  ;;  %4822 = vmatprep.subr.bf16.mxu1 %v4821_v47  ;;  %v4847_v47 = vpack.c.bf16 %v2689_v43, %v2687_v42 }
 0x9ec   :  { %v4823_v53 = vpack.c.bf16 %v2665_v49, %v2663_v48  ;;  %v4849_v49 = vpack.c.bf16 %v2694_v44, %v2692_v10  ;;  %v2317_v42 = vld [vmem:[#allocation20 + $0x230] sm:$0xff]  ;;  %v2320_v10 = vld [vmem:[#allocation20 + $0x248] sm:$0xff]  ;;  %v2322_v44 = vld [vmem:[#allocation20 + $0x258] sm:$0xff] }
 0x9ee   :  { %4732 = vmatpush1.bf16.msra.mxu0 %v4731_v56  ;;  %v2667_v56 = vld [vmem:[#allocation22 + $0xc0] sm:$0xff]  ;;  %4824 = vmatpush1.bf16.msra.mxu1 %v4823_v53 }
 0x9ef   :  { %4734 = vmatprep.subr.bf16.mxu0 %v4733_v57  ;;  %v2669_v57 = vld [vmem:[#allocation22 + $0xd0] sm:$0xff]  ;;  %4826 = vmatprep.subr.bf16.mxu1 %v4825_v55  ;;  %v2696_v55 = vld [vmem:[#allocation22 + $0x1a8] sm:$0xff] }
 0x9f0   :  { %v4827_v28 = vpack.c.bf16 %v2669_v57, %v2667_v56  ;;  %v2698_v56 = vld [vmem:[#allocation22 + $0x1b8] sm:$0xff] }
 0x9f2   :  { %4736 = vmatpush1.bf16.msra.mxu0 %v4735_v1  ;;  %v2671_v1 = vld [vmem:[#allocation22 + $0xe0] sm:$0xff]  ;;  %4828 = vmatpush1.bf16.msra.mxu1 %v4827_v28 }
 0x9f3   :  { %4738 = vmatprep.subr.bf16.mxu0 %v4737_v15  ;;  %v2673_v15 = vld [vmem:[#allocation22 + $0xf0] sm:$0xff]  ;;  %4830 = vmatprep.subr.bf16.mxu1 %v4829_v0  ;;  %v4853_v0 = vpack.c.bf16 %v2698_v56, %v2696_v55  ;;  %v2330_v55 = vld [vmem:[#allocation20 + $0x298] sm:$0xff]  ;;  %v4751_v56 = vpack.c.bf16 %v2325_v52, %v2323_v50  ;;  %v2360_v50 = vld [vmem:[#allocation20 + $0x388] sm:$0xff] }
 0x9f4   :  { %v4831_v3 = vpack.c.bf16 %v2673_v15, %v2671_v1  ;;  %v2695_v1 = vld [vmem:[#allocation22 + $0x1a0] sm:$0xff]  ;;  %v2697_v15 = vld [vmem:[#allocation22 + $0x1b0] sm:$0xff]  ;;  %v2362_v52 = vld [vmem:[#allocation20 + $0x398] sm:$0xff] }
 0x9f5   :  { %v4855_v5 = vpack.c.bf16 %v2697_v15, %v2695_v1  ;;  %v2331_v15 = vld [vmem:[#allocation20 + $0x2a0] sm:$0xff] }
 0x9f6   :  { %4832 = vmatpush1.bf16.msra.mxu1 %v4831_v3  ;;  %v2702_v3 = vld [vmem:[#allocation22 + $0x1d8] sm:$0xff] }
 0x9f7   :  { %4834 = vmatprep.subr.bf16.mxu1 %v4833_v31  ;;  %v4857_v7 = vpack.c.bf16 %v2702_v3, %v2700_v38  ;;  %v2336_v38 = vld [vmem:[#allocation20 + $0x2c8] sm:$0xff]  ;;  %v2338_v3 = vld [vmem:[#allocation20 + $0x2d8] sm:$0xff] }
 0x9fa   :  { %4836 = vmatpush1.bf16.msra.mxu1 %v4835_v9  ;;  %v2699_v9 = vld [vmem:[#allocation22 + $0x1c0] sm:$0xff] }
 0x9fb   :  { %4838 = vmatprep.subr.bf16.mxu1 %v4837_v23  ;;  %v2701_v23 = vld [vmem:[#allocation22 + $0x1d0] sm:$0xff] }
 0x9fc   :  { %v4859_v32 = vpack.c.bf16 %v2701_v23, %v2699_v9  ;;  %v2342_v9 = vld [vmem:[#allocation20 + $0x2f8] sm:$0xff] }
 0x9fe   :  { %4840 = vmatpush1.bf16.msra.mxu1 %v4839_v25 }
 0x9ff   :  { %4842 = vmatprep.subr.bf16.mxu1 %v4841_v29  ;;  %v2316_v29 = vld [vmem:[#allocation20 + $0x228] sm:$0xff] }
 0xa02   :  { %4844 = vmatpush1.bf16.msra.mxu1 %v4843_v62 }
 0xa03   :  { %4846 = vmatprep.subr.bf16.mxu1 %v4845_v41  ;;  %v2315_v41 = vld [vmem:[#allocation20 + $0x220] sm:$0xff] }
 0xa06   :  { %4848 = vmatpush1.bf16.msra.mxu1 %v4847_v47  ;;  %v2321_v47 = vld [vmem:[#allocation20 + $0x250] sm:$0xff] }
 0xa07   :  { %4850 = vmatprep.subr.bf16.mxu1 %v4849_v49 }
 0xa0a   :  { %4852 = vmatpush1.bf16.msra.mxu1 %v4851_v60  ;;  %v2332_v60 = vld [vmem:[#allocation20 + $0x2a8] sm:$0xff] }
 0xa0b   :  { %4854 = vmatprep.subr.bf16.mxu1 %v4853_v0 }
 0xa0e   :  { %4856 = vmatpush1.bf16.msra.mxu1 %v4855_v5  ;;  %v2335_v5 = vld [vmem:[#allocation20 + $0x2c0] sm:$0xff] }
 0xa0f   :  { %4858 = vmatprep.subr.bf16.mxu1 %v4857_v7  ;;  %v2340_v7 = vld [vmem:[#allocation20 + $0x2e8] sm:$0xff] }
 0xa12   :  { %4860 = vmatpush1.bf16.msra.mxu1 %v4859_v32  ;;  %v2343_v32 = vld [vmem:[#allocation20 + $0x300] sm:$0xff] }
 0xa48   :  { %v2115_v21 = vpop.f32.mrb[26].mxu0 }
 0xa49   :  { %v2116_v45 = vadd.f32 %v2115_v21, %v2032_v51  ;;  %v2117_v46 = vpop.f32.mrb[27].mxu0  ;;  %v4743_v21 = vpack.c.bf16 %v2317_v42, %v2315_v41  ;;  %v2347_v41 = vld [vmem:[#allocation20 + $0x320] sm:$0xff]  ;;  %v2349_v42 = vld [vmem:[#allocation20 + $0x330] sm:$0xff] }
 0xa4a   :  { %v2118_v48 = vadd.f32 %v2117_v46, %v2036_v37  ;;  %v4741_v37 = vpack.c.bf16 %v2318_v30, %v2316_v29  ;;  %v2319_v46 = vld [vmem:[#allocation20 + $0x240] sm:$0xff]  ;;  %v4767_v29 = vpack.c.bf16 %v2341_v13, %v2339_v12 }
 0xa4b   :  { %v2191_v53 = vmul.f32 0.16666667, %v2116_v45  ;;  %v4745_v45 = vpack.c.bf16 %v2322_v44, %v2320_v10  ;;  %v4747_v49 = vpack.c.bf16 %v2321_v47, %v2319_v46  ;;  %v2354_v10 = vld [vmem:[#allocation20 + $0x358] sm:$0xff]  ;;  %v4775_v44 = vpack.c.bf16 %v2349_v42, %v2347_v41  ;;  %v2356_v46 = vld [vmem:[#allocation20 + $0x368] sm:$0xff] }
 0xa4c   :  { %v2192_v57 = vmul.f32 0.16666667, %v2118_v48  ;;  %v2326_v48 = vld [vmem:[#allocation20 + $0x278] sm:$0xff] }
 0xa4d   :  { %v2195_v59 = vadd.f32 0.5, %v2191_v53  ;;  %v2328_v53 = vld [vmem:[#allocation20 + $0x288] sm:$0xff]  ;;  %v2358_v47 = vld [vmem:[#allocation20 + $0x378] sm:$0xff] }
 0xa4e   :  { %v2196_v28 = vadd.f32 0.5, %v2192_v57  ;;  %v4753_v57 = vpack.c.bf16 %v2330_v55, %v2328_v53  ;;  %v4785_v55 = vpack.c.bf16 %v2362_v52, %v2360_v50  ;;  %v2710_v50 = vld [vmem:[#allocation22 + $0x218] sm:$0xff] }
 0xa4f   :  { %v2199_v34 = vmax.f32 %v2195_v59, 0.0  ;;  %v2327_v59 = vld [vmem:[#allocation20 + $0x280] sm:$0xff] }
 0xa50   :  { %v2200_v31 = vmax.f32 %v2196_v28, 0.0  ;;  %v2334_v28 = vld [vmem:[#allocation20 + $0x2b8] sm:$0xff] }
 0xa51   :  { %v2203_v36 = vmin.f32 %v2199_v34, 1.0  ;;  %v4757_v1 = vpack.c.bf16 %v2334_v28, %v2332_v60  ;;  %v2333_v34 = vld [vmem:[#allocation20 + $0x2b0] sm:$0xff]  ;;  %v2040_v60 = vrot.slane %v6402_v27, %v6317_v14  ;;  %v2044_v28 = vrot.slane %v6402_v27, %v6320_v63  ;;  %v2372_v63 = vld [vmem:[#allocation20 + $0x3e8] sm:$0xff]  ;;  %v2374_v27 = vld [vmem:[#allocation20 + $0x3f8] sm:$0xff] }
 0xa52   :  { %v2204_v6 = vmin.f32 %v2200_v31, 1.0  ;;  %v4759_v31 = vpack.c.bf16 %v2333_v34, %v2331_v15  ;;  %v2363_v15 = vld [vmem:[#allocation20 + $0x3a0] sm:$0xff]  ;;  %v2365_v34 = vld [vmem:[#allocation20 + $0x3b0] sm:$0xff] }
 0xa53   :  { %v2210_v11 = vrot.slane %v2203_v36, %v6234_v24  ;;  %v2226_v51 = vrot.slane %v2203_v36, %v6237_v26  ;;  %v4761_v36 = vpack.c.bf16 %v2338_v3, %v2336_v38  ;;  %v2368_v3 = vld [vmem:[#allocation20 + $0x3c8] sm:$0xff] }
 0xa54   :  { %v2214_v16 = vrot.slane %v2204_v6, %v6234_v24  ;;  %v2230_v25 = vrot.slane %v2204_v6, %v6237_v26  ;;  %v2337_v6 = vld [vmem:[#allocation20 + $0x2d0] sm:$0xff] }
 0xa55   :  { %v2239_v62 = vmul.f32 %v2210_v11, %v6343_v54  ;;  %v2324_v54 = vld [vmem:[#allocation20 + $0x268] sm:$0xff]  ;;  %v4763_v23 = vpack.c.bf16 %v2337_v6, %v2335_v5  ;;  %v4765_v11 = vpack.c.bf16 %v2342_v9, %v2340_v7  ;;  %v4791_v7 = vpack.c.bf16 %v2365_v34, %v2363_v15  ;;  %v2714_v34 = vld [vmem:[#allocation22 + $0x238] sm:$0xff] }
 0xa56   :  { %v2240_v33 = vmul.f32 %v2214_v16, %v6345_v58  ;;  %v2244_v43 = vmul.f32 %v2230_v25, %v6357_v4  ;;  %v2243_v58 = vmul.f32 %v2226_v51, %v6355_v2  ;;  %v4749_v4 = vpack.c.bf16 %v2326_v48, %v2324_v54  ;;  %v2329_v2 = vld [vmem:[#allocation20 + $0x290] sm:$0xff]  ;;  %v2344_v16 = vld [vmem:[#allocation20 + $0x308] sm:$0xff]  ;;  %v2346_v25 = vld [vmem:[#allocation20 + $0x318] sm:$0xff] }
 0xa57   :  { %v4755_v0 = vpack.c.bf16 %v2329_v2, %v2327_v59  ;;  %v4769_v30 = vpack.c.bf16 %v2346_v25, %v2344_v16  ;;  %v2350_v51 = vld [vmem:[#allocation20 + $0x338] sm:$0xff]  ;;  %v4781_v48 = vpack.c.bf16 %v2358_v47, %v2356_v46  ;;  %v2364_v59 = vld [vmem:[#allocation20 + $0x3a8] sm:$0xff] }
 0xa58   :  { %2452 = vmatprep.mubr.f32.mxu0 %v2240_v33  ;;  %v2345_v33 = vld [vmem:[#allocation20 + $0x310] sm:$0xff]  ;;  %v2366_v2 = vld [vmem:[#allocation20 + $0x3b8] sm:$0xff]  ;;  %v2704_v46 = vld [vmem:[#allocation22 + $0x1e8] sm:$0xff] }
 0xa59   :  { %2453 = vmatmul.mubr.f32.vlgmr.msra.gmra.mrb[30].mxu0 %v2239_v62  ;;  %v4771_v62 = vpack.c.bf16 %v2345_v33, %v2343_v32  ;;  %v2371_v32 = vld [vmem:[#allocation20 + $0x3e0] sm:$0xff]  ;;  %v2373_v33 = vld [vmem:[#allocation20 + $0x3f0] sm:$0xff]  ;;  %v2706_v47 = vld [vmem:[#allocation22 + $0x1f8] sm:$0xff] }
 0xa5a   :  { %4740 = vmatpush1.bf16.msra.mxu0 %v4739_v35  ;;  %2458 = vmatprep.mubr.f32.mxu0 %v2244_v43  ;;  %v2348_v35 = vld [vmem:[#allocation20 + $0x328] sm:$0xff] }
 0xa5b   :  { %4742 = vmatprep.subr.bf16.mxu0 %v4741_v37  ;;  %v4773_v37 = vpack.c.bf16 %v2350_v51, %v2348_v35  ;;  %v2352_v43 = vld [vmem:[#allocation20 + $0x348] sm:$0xff] }
 0xa5c   :  { %v2712_v15 = vld [vmem:[#allocation22 + $0x228] sm:$0xff] }
 0xa5d   :  { %2459 = vmatmul.mubr.f32.gmra.mrb[32].mxu0 %v2243_v58  ;;  %v2351_v58 = vld [vmem:[#allocation20 + $0x340] sm:$0xff] }
 0xa5e   :  { %4744 = vmatpush1.bf16.msra.mxu0 %v4743_v21  ;;  %v4777_v21 = vpack.c.bf16 %v2354_v10, %v2352_v43 }
 0xa5f   :  { %4746 = vmatprep.subr.bf16.mxu0 %v4745_v45  ;;  %v2353_v45 = vld [vmem:[#allocation20 + $0x350] sm:$0xff] }
 0xa60   :  { %v4779_v54 = vpack.c.bf16 %v2353_v45, %v2351_v58 }
 0xa62   :  { %4748 = vmatpush1.bf16.msra.mxu0 %v4747_v49  ;;  %v2355_v49 = vld [vmem:[#allocation20 + $0x360] sm:$0xff] }
 0xa63   :  { %4750 = vmatprep.subr.bf16.mxu0 %v4749_v4  ;;  %v2357_v4 = vld [vmem:[#allocation20 + $0x370] sm:$0xff] }
 0xa64   :  { %v4783_v53 = vpack.c.bf16 %v2357_v4, %v2355_v49  ;;  %v2705_v49 = vld [vmem:[#allocation22 + $0x1f0] sm:$0xff] }
 0xa66   :  { %4752 = vmatpush1.bf16.msra.mxu0 %v4751_v56  ;;  %v2359_v56 = vld [vmem:[#allocation20 + $0x380] sm:$0xff] }
 0xa67   :  { %4754 = vmatprep.subr.bf16.mxu0 %v4753_v57  ;;  %v2361_v57 = vld [vmem:[#allocation20 + $0x390] sm:$0xff] }
 0xa6a   :  { %4756 = vmatpush1.bf16.msra.mxu0 %v4755_v0  ;;  %v4787_v0 = vpack.c.bf16 %v2361_v57, %v2359_v56 }
 0xa6b   :  { %4758 = vmatprep.subr.bf16.mxu0 %v4757_v1  ;;  %v4789_v1 = vpack.c.bf16 %v2366_v2, %v2364_v59 }
 0xa6e   :  { %4760 = vmatpush1.bf16.msra.mxu0 %v4759_v31  ;;  %v2370_v31 = vld [vmem:[#allocation20 + $0x3d8] sm:$0xff] }
 0xa6f   :  { %4762 = vmatprep.subr.bf16.mxu0 %v4761_v36  ;;  %v4793_v14 = vpack.c.bf16 %v2370_v31, %v2368_v3 }
 0xa72   :  { %4764 = vmatpush1.bf16.msra.mxu0 %v4763_v23  ;;  %v2367_v23 = vld [vmem:[#allocation20 + $0x3c0] sm:$0xff] }
 0xa73   :  { %4766 = vmatprep.subr.bf16.mxu0 %v4765_v11  ;;  %v2369_v11 = vld [vmem:[#allocation20 + $0x3d0] sm:$0xff] }
 0xa74   :  { %v4795_v25 = vpack.c.bf16 %v2369_v11, %v2367_v23 }
 0xa76   :  { %4768 = vmatpush1.bf16.msra.mxu0 %v4767_v29 }
 0xa77   :  { %4770 = vmatprep.subr.bf16.mxu0 %v4769_v30  ;;  %v4797_v30 = vpack.c.bf16 %v2374_v27, %v2372_v63  ;;  %v2718_v63 = vld [vmem:[#allocation22 + $0x258] sm:$0xff] }
 0xa7a   :  { %4772 = vmatpush1.bf16.msra.mxu0 %v4771_v62 }
 0xa7b   :  { %4774 = vmatprep.subr.bf16.mxu0 %v4773_v37  ;;  %v4799_v37 = vpack.c.bf16 %v2373_v33, %v2371_v32  ;;  %v2722_v32 = vld [vmem:[#allocation22 + $0x278] sm:$0xff] }
 0xa7e   :  { %4776 = vmatpush1.bf16.msra.mxu0 %v4775_v44 }
 0xa7f   :  { %4778 = vmatprep.subr.bf16.mxu0 %v4777_v21 }
 0xa82   :  { %4780 = vmatpush1.bf16.msra.mxu0 %v4779_v54  ;;  %v4861_v54 = vpack.c.bf16 %v2706_v47, %v2704_v46  ;;  %v2727_v46 = vld [vmem:[#allocation22 + $0x2a0] sm:$0xff]  ;;  %v2729_v47 = vld [vmem:[#allocation22 + $0x2b0] sm:$0xff] }
 0xa83   :  { %4782 = vmatprep.subr.bf16.mxu0 %v4781_v48  ;;  %v2703_v48 = vld [vmem:[#allocation22 + $0x1e0] sm:$0xff] }
 0xa84   :  { %v4863_v4 = vpack.c.bf16 %v2705_v49, %v2703_v48  ;;  %4862 = vmatprep.subr.bf16.mxu1 %v4861_v54  ;;  %v2732_v54 = vld [vmem:[#allocation22 + $0x2c8] sm:$0xff]  ;;  %v2734_v48 = vld [vmem:[#allocation22 + $0x2d8] sm:$0xff]  ;;  %v4887_v49 = vpack.c.bf16 %v2729_v47, %v2727_v46  ;;  %v2763_v47 = vld [vmem:[#allocation22 + $0x3c0] sm:$0xff] }
 0xa86   :  { %4784 = vmatpush1.bf16.msra.mxu0 %v4783_v53  ;;  %4864 = vmatpush1.bf16.msra.mxu1 %v4863_v4  ;;  %v4889_v4 = vpack.c.bf16 %v2734_v48, %v2732_v54  ;;  %v2765_v54 = vld [vmem:[#allocation22 + $0x3d0] sm:$0xff]  ;;  %v2768_v48 = vld [vmem:[#allocation22 + $0x3e8] sm:$0xff] }
 0xa87   :  { %4786 = vmatprep.subr.bf16.mxu0 %v4785_v55 }
 0xa88   :  { %v2186_v38 = vpop.f32.mrb[28].mxu0 }
 0xa89   :  { %v2187_v36 = vadd.f32 %v2186_v38, %v2040_v60  ;;  %v2188_v5 = vpop.f32.mrb[29].mxu0 }
 0xa8a   :  { %v2189_v6 = vadd.f32 %v2188_v5, %v2044_v28  ;;  %4788 = vmatpush1.bf16.msra.mxu0 %v4787_v0  ;;  %v2707_v28 = vld [vmem:[#allocation22 + $0x200] sm:$0xff]  ;;  %v2709_v0 = vld [vmem:[#allocation22 + $0x210] sm:$0xff] }
 0xa8b   :  { %v2193_v9 = vmul.f32 0.16666667, %v2187_v36  ;;  %4790 = vmatprep.subr.bf16.mxu0 %v4789_v1  ;;  %v4867_v31 = vpack.c.bf16 %v2709_v0, %v2707_v28  ;;  %v2739_v28 = vld [vmem:[#allocation22 + $0x300] sm:$0xff]  ;;  %v2741_v0 = vld [vmem:[#allocation22 + $0x310] sm:$0xff] }
 0xa8c   :  { %v2194_v12 = vmul.f32 0.16666667, %v2189_v6 }
 0xa8d   :  { %v2197_v13 = vadd.f32 0.5, %v2193_v9  ;;  %v2711_v9 = vld [vmem:[#allocation22 + $0x220] sm:$0xff] }
 0xa8e   :  { %v2198_v16 = vadd.f32 0.5, %v2194_v12  ;;  %4792 = vmatpush1.bf16.msra.mxu0 %v4791_v7  ;;  %v4869_v7 = vpack.c.bf16 %v2714_v34, %v2712_v15  ;;  %v2716_v12 = vld [vmem:[#allocation22 + $0x248] sm:$0xff]  ;;  %v2746_v15 = vld [vmem:[#allocation22 + $0x338] sm:$0xff]  ;;  %v4899_v34 = vpack.c.bf16 %v2741_v0, %v2739_v28 }
 0xa8f   :  { %v2201_v29 = vmax.f32 %v2197_v13, 0.0  ;;  %4794 = vmatprep.subr.bf16.mxu0 %v4793_v14  ;;  %v2713_v14 = vld [vmem:[#allocation22 + $0x230] sm:$0xff]  ;;  %v2776_v28 = vld [vmem:[#allocation22 + $0x428] sm:$0xff]  ;;  %v2778_v0 = vld [vmem:[#allocation22 + $0x438] sm:$0xff] }
 0xa90   :  { %v2202_v35 = vmax.f32 %v2198_v16, 0.0  ;;  %v4873_v16 = vpack.c.bf16 %v2718_v63, %v2716_v12  ;;  %v2749_v12 = vld [vmem:[#allocation22 + $0x350] sm:$0xff]  ;;  %v2752_v63 = vld [vmem:[#allocation22 + $0x368] sm:$0xff] }
 0xa91   :  { %v2205_v51 = vmin.f32 %v2201_v29, 1.0  ;;  %v2717_v29 = vld [vmem:[#allocation22 + $0x250] sm:$0xff] }
 0xa92   :  { %v2206_v62 = vmin.f32 %v2202_v35, 1.0  ;;  %4796 = vmatpush1.bf16.msra.mxu0 %v4795_v25  ;;  %v2715_v25 = vld [vmem:[#allocation22 + $0x240] sm:$0xff] }
 0xa93   :  { %v2218_v41 = vrot.slane %v2205_v51, %v6234_v24  ;;  %4798 = vmatprep.subr.bf16.mxu0 %v4797_v30  ;;  %v2234_v44 = vrot.slane %v2205_v51, %v6237_v26  ;;  %v2720_v30 = vld [vmem:[#allocation22 + $0x268] sm:$0xff]  ;;  %v4875_v33 = vpack.c.bf16 %v2717_v29, %v2715_v25  ;;  %v2719_v35 = vld [vmem:[#allocation22 + $0x260] sm:$0xff]  ;;  %v2721_v51 = vld [vmem:[#allocation22 + $0x270] sm:$0xff] }
 0xa94   :  { %v2222_v42 = vrot.slane %v2206_v62, %v6234_v24  ;;  %v2238_v43 = vrot.slane %v2206_v62, %v6237_v26  ;;  %v2724_v62 = vld [vmem:[#allocation22 + $0x288] sm:$0xff]  ;;  %v2751_v29 = vld [vmem:[#allocation22 + $0x360] sm:$0xff] }
 0xa95   :  { %v2241_v21 = vmul.f32 %v2218_v41, %v6382_v39  ;;  %v2245_v45 = vmul.f32 %v2234_v44, %v6384_v40  ;;  %v6429_v39 = vand.u32 127, %v384_v22  ;;  %v4879_v41 = vpack.c.bf16 %v2721_v51, %v2719_v35  ;;  %v2728_v44 = vld [vmem:[#allocation22 + $0x2a8] sm:$0xff]  ;;  %v2755_v51 = vld [vmem:[#allocation22 + $0x380] sm:$0xff] }
 0xa96   :  { %4800 = vmatpush1.bf16.msra.mxu0 %v4799_v37  ;;  %v2242_v10 = vmul.f32 %v2222_v42, %v6365_v19  ;;  %v2246_v58 = vmul.f32 %v2238_v43, %v6370_v61  ;;  %v2708_v19 = vld [vmem:[#allocation22 + $0x208] sm:$0xff]  ;;  %v2726_v37 = vld [vmem:[#allocation22 + $0x298] sm:$0xff]  ;;  %v2723_v43 = vld [vmem:[#allocation22 + $0x280] sm:$0xff] }
 0xa97   :  { %v4865_v52 = vpack.c.bf16 %v2710_v50, %v2708_v19  ;;  %v2376_v61 = vld [vmem:[#allocation25 + $0x24] ss:$8 sm:$0x3]  ;;  %v2548_v53 = vadd.s32 128, %v6429_v39  ;;  %v2563_v59 = vshra.s32 %v6429_v39, 8  ;;  %v6436_v1 = vadd.s32 384, %v6429_v39 }
 0xa98   :  { %2529 = vmatprep.mubr.f32.mxu0 %v2242_v10  ;;  %v2381_v40 = vrot.slane %v2376_v61, %v6234_v24  ;;  %v2385_v55 = vrot.slane %v2376_v61, %v6237_v26  ;;  %v4881_v42 = vpack.c.bf16 %v2726_v37, %v2724_v62  ;;  %v2725_v10 = vld [vmem:[#allocation22 + $0x290] sm:$0xff]  ;;  %v2731_v19 = vld [vmem:[#allocation22 + $0x2c0] sm:$0xff]  ;;  %v2738_v61 = vld [vmem:[#allocation22 + $0x2f8] sm:$0xff] }
 0xa99   :  { %2530 = vmatmul.mubr.f32.vlgmr.msra.gmra.mrb[30].mxu0 %v2241_v21  ;;  %4866 = vmatprep.subr.bf16.mxu1 %v4865_v52  ;;  %v2564_v56 = vshra.s32 %v2548_v53, 8  ;;  %vm2579_vm5 = vcmp.eq.s32.totalorder %v2563_v59, %v6249_v8  ;;  %v2566_v23 = vshra.s32 %v6436_v1, 8  ;;  %vm2595_vm7 = vcmp.eq.s32.totalorder %v2563_v59, %v6258_v20  ;;  %v2730_v21 = vld [vmem:[#allocation22 + $0x2b8] sm:$0xff]  ;;  %v2733_v50 = vld [vmem:[#allocation22 + $0x2d0] sm:$0xff]  ;;  %v2736_v52 = vld [vmem:[#allocation22 + $0x2e8] sm:$0xff] }
 0xa9a   :  { %2535 = vmatprep.mubr.f32.mxu0 %v2246_v58  ;;  %v4883_v58 = vpack.c.bf16 %v2725_v10, %v2723_v43  ;;  %v4891_v53 = vpack.c.bf16 %v2733_v50, %v2731_v19  ;;  %v2742_v59 = vld [vmem:[#allocation22 + $0x318] sm:$0xff]  ;;  %v2757_v62 = vld [vmem:[#allocation22 + $0x390] sm:$0xff]  ;;  %v2760_v37 = vld [vmem:[#allocation22 + $0x3a8] sm:$0xff]  ;;  %v2549_v19 = vadd.s32 256, %v6429_v39 }
 0xa9b   :  { %vm2580_vm4 = vcmp.eq.s32.totalorder %v2564_v56, %v6249_v8  ;;  %vm2596_vm6 = vcmp.eq.s32.totalorder %v2564_v56, %v6258_v20  ;;  %vm2582_vm8 = vcmp.eq.s32.totalorder %v2566_v23, %v6249_v8  ;;  %v2737_v56 = vld [vmem:[#allocation22 + $0x2f0] sm:$0xff]  ;;  %v2759_v10 = vld [vmem:[#allocation22 + $0x3a0] sm:$0xff]  ;;  %vm2598_vm10 = vcmp.eq.s32.totalorder %v2566_v23, %v6258_v20 }
 0xa9c   :  { %v2779_v23 = vld [vmem:[#allocation22 + $0x440] sm:$0xff] }
 0xa9d   :  { %2536 = vmatmul.mubr.f32.gmra.mrb[32].mxu0 %v2245_v45  ;;  %v4885_v45 = vpack.c.bf16 %v2730_v21, %v2728_v44  ;;  %v2761_v44 = vld [vmem:[#allocation22 + $0x3b0] sm:$0xff]  ;;  %v2764_v21 = vld [vmem:[#allocation22 + $0x3c8] sm:$0xff] }
 0xb6c   :  { %v2531_v57 = vpop.f32.mrb[30].mxu0 }
 0xb6d   :  { %v5379_v2 = vadd.f32 %v2531_v57, %v2381_v40  ;;  %v2533_v60 = vpop.f32.mrb[31].mxu0  ;;  %v2740_v57 = vld [vmem:[#allocation22 + $0x308] sm:$0xff] }
 0xb6e   :  { %v5380_v22 = vadd.f32 %v2533_v60, %v2385_v55  ;;  %v4897_v60 = vpack.c.bf16 %v2742_v59, %v2740_v57  ;;  %v2771_v59 = vld [vmem:[#allocation22 + $0x400] sm:$0xff] }
 0xb6f   :  { %v6444_v36 = vadd.f32 %v5379_v2, %v6304_v18 }
 0xb70   :  { %v6440_v38 = vadd.f32 %v5380_v22, %v6304_v18  ;;  %v2537_v3 = vpop.f32.mrb[32].mxu0  ;;  %v4871_v18 = vpack.c.bf16 %v2713_v14, %v2711_v9  ;;  %v2744_v22 = vld [vmem:[#allocation22 + $0x328] sm:$0xff] }
 0xb71   :  { %v5381_v5 = vadd.f32 %v2537_v3, %v2381_v40  ;;  %v2539_v6 = vpop.f32.mrb[33].mxu0  ;;  %v4893_v40 = vpack.c.bf16 %v2738_v61, %v2736_v52  ;;  %v4901_v3 = vpack.c.bf16 %v2746_v15, %v2744_v22  ;;  %v2767_v52 = vld [vmem:[#allocation22 + $0x3e0] sm:$0xff]  ;;  %v2769_v61 = vld [vmem:[#allocation22 + $0x3f0] sm:$0xff]  ;;  %v4933_v15 = vpack.c.bf16 %v2778_v0, %v2776_v28  ;;  %v2812_v0 = vld [vmem:[#allocation22 + $0x548] sm:$0xff] }
 0xb72   :  { %v5382_v11 = vadd.f32 %v2539_v6, %v2385_v55  ;;  %4023 = vmatprep.mubr.msk.f32.mxu1 %vm2580_vm4, %v6440_v38  ;;  %v2735_v55 = vld [vmem:[#allocation22 + $0x2e0] sm:$0xff]  ;;  %v2748_v6 = vld [vmem:[#allocation22 + $0x348] sm:$0xff]  ;;  %v2809_v28 = vld [vmem:[#allocation22 + $0x530] sm:$0xff] }
 0xb73   :  { %4024 = vmatmul.mubr.msk.f32.vlgmr.msra.gmra.mrb[10].mxu1 %vm2579_vm5, %v6444_v36  ;;  %v6455_v13 = vadd.f32 %v5381_v5, %v6311_v17  ;;  %v4895_v2 = vpack.c.bf16 %v2737_v56, %v2735_v55  ;;  %v2745_v5 = vld [vmem:[#allocation22 + $0x330] sm:$0xff]  ;;  %v4927_v55 = vpack.c.bf16 %v2769_v61, %v2767_v52  ;;  %v2565_v56 = vshra.s32 %v2549_v19, 8  ;;  %v2804_v19 = vld [vmem:[#allocation22 + $0x508] sm:$0xff] }
 0xb74   :  { %v6451_v27 = vadd.f32 %v5382_v11, %v6311_v17  ;;  %4868 = vmatpush1.bf16.msra.mxu1 %v4867_v31  ;;  %v4877_v17 = vpack.c.bf16 %v2722_v32, %v2720_v30  ;;  %v2743_v31 = vld [vmem:[#allocation22 + $0x320] sm:$0xff]  ;;  %v2753_v30 = vld [vmem:[#allocation22 + $0x370] sm:$0xff]  ;;  %v2756_v32 = vld [vmem:[#allocation22 + $0x388] sm:$0xff] }
 0xb75   :  { %4870 = vmatprep.subr.bf16.mxu1 %v4869_v7  ;;  %v2750_v7 = vld [vmem:[#allocation22 + $0x358] sm:$0xff]  ;;  %v4903_v9 = vpack.c.bf16 %v2745_v5, %v2743_v31  ;;  %v2747_v11 = vld [vmem:[#allocation22 + $0x340] sm:$0xff]  ;;  %vm2581_vm9 = vcmp.eq.s32.totalorder %v2565_v56, %v6249_v8  ;;  %v2780_v5 = vld [vmem:[#allocation22 + $0x448] sm:$0xff]  ;;  %vm2597_vm11 = vcmp.eq.s32.totalorder %v2565_v56, %v6258_v20 }
 0xb76   :  { %4025 = vmatprep.mubr.msk.f32.mxu1 %vm2596_vm6, %v6451_v27  ;;  %v4905_v14 = vpack.c.bf16 %v2750_v7, %v2748_v6  ;;  %v2782_v6 = vld [vmem:[#allocation22 + $0x458] sm:$0xff] }
 0xb77   :  { %4026 = vmatmul.mubr.msk.f32.gmra.mrb[12].mxu1 %vm2595_vm7, %v6455_v13  ;;  %v4937_v1 = vpack.c.bf16 %v2782_v6, %v2780_v5  ;;  %v2810_v56 = vld [vmem:[#allocation22 + $0x538] sm:$0xff]  ;;  %v2813_v5 = vld [vmem:[#allocation22 + $0x550] sm:$0xff]  ;;  %v2816_v6 = vld [vmem:[#allocation22 + $0x568] sm:$0xff] }
 0xb78   :  { %4872 = vmatpush1.bf16.msra.mxu1 %v4871_v18  ;;  %4027 = vmatprep.mubr.msk.f32.mxu1 %vm2582_vm8, %v6440_v38  ;;  %v2754_v18 = vld [vmem:[#allocation22 + $0x378] sm:$0xff] }
 0xb79   :  { %4874 = vmatprep.subr.bf16.mxu1 %v4873_v16  ;;  %v4907_v16 = vpack.c.bf16 %v2749_v12, %v2747_v11  ;;  %v4909_v25 = vpack.c.bf16 %v2754_v18, %v2752_v63  ;;  %v2786_v11 = vld [vmem:[#allocation22 + $0x478] sm:$0xff]  ;;  %v2783_v18 = vld [vmem:[#allocation22 + $0x460] sm:$0xff] }
 0xb7c   :  { %4876 = vmatpush1.bf16.msra.mxu1 %v4875_v33  ;;  %v2758_v33 = vld [vmem:[#allocation22 + $0x398] sm:$0xff] }
 0xb7d   :  { %4878 = vmatprep.subr.bf16.mxu1 %v4877_v17  ;;  %v4911_v17 = vpack.c.bf16 %v2753_v30, %v2751_v29  ;;  %v4913_v35 = vpack.c.bf16 %v2758_v33, %v2756_v32  ;;  %v2790_v29 = vld [vmem:[#allocation22 + $0x498] sm:$0xff]  ;;  %v2787_v33 = vld [vmem:[#allocation22 + $0x480] sm:$0xff] }
 0xb80   :  { %4880 = vmatpush1.bf16.msra.mxu1 %v4879_v41  ;;  %v2762_v41 = vld [vmem:[#allocation22 + $0x3b8] sm:$0xff] }
 0xb81   :  { %4882 = vmatprep.subr.bf16.mxu1 %v4881_v42  ;;  %v4915_v42 = vpack.c.bf16 %v2757_v62, %v2755_v51  ;;  %v4917_v43 = vpack.c.bf16 %v2762_v41, %v2760_v37  ;;  %v2794_v51 = vld [vmem:[#allocation22 + $0x4b8] sm:$0xff]  ;;  %v2791_v41 = vld [vmem:[#allocation22 + $0x4a0] sm:$0xff] }
 0xb84   :  { %4884 = vmatpush1.bf16.msra.mxu1 %v4883_v58  ;;  %v2766_v58 = vld [vmem:[#allocation22 + $0x3d8] sm:$0xff] }
 0xb85   :  { %4886 = vmatprep.subr.bf16.mxu1 %v4885_v45  ;;  %v4919_v45 = vpack.c.bf16 %v2761_v44, %v2759_v10  ;;  %v4921_v46 = vpack.c.bf16 %v2766_v58, %v2764_v21  ;;  %v2798_v10 = vld [vmem:[#allocation22 + $0x4d8] sm:$0xff]  ;;  %v2795_v58 = vld [vmem:[#allocation22 + $0x4c0] sm:$0xff] }
 0xb88   :  { %4888 = vmatpush1.bf16.msra.mxu1 %v4887_v49  ;;  %v2770_v49 = vld [vmem:[#allocation22 + $0x3f8] sm:$0xff] }
 0xb89   :  { %4890 = vmatprep.subr.bf16.mxu1 %v4889_v4  ;;  %v4923_v4 = vpack.c.bf16 %v2765_v54, %v2763_v47  ;;  %v4925_v50 = vpack.c.bf16 %v2770_v49, %v2768_v48  ;;  %v2802_v47 = vld [vmem:[#allocation22 + $0x4f8] sm:$0xff]  ;;  %v2799_v49 = vld [vmem:[#allocation22 + $0x4e0] sm:$0xff] }
 0xb8c   :  { %4892 = vmatpush1.bf16.msra.mxu1 %v4891_v53  ;;  %v2772_v53 = vld [vmem:[#allocation22 + $0x408] sm:$0xff] }
 0xb8d   :  { %4894 = vmatprep.subr.bf16.mxu1 %v4893_v40  ;;  %v2774_v40 = vld [vmem:[#allocation22 + $0x418] sm:$0xff] }
 0xb8e   :  { %v4929_v57 = vpack.c.bf16 %v2774_v40, %v2772_v53  ;;  %v2803_v53 = vld [vmem:[#allocation22 + $0x500] sm:$0xff]  ;;  %v2805_v40 = vld [vmem:[#allocation22 + $0x510] sm:$0xff] }
 0xb90   :  { %4896 = vmatpush1.bf16.msra.mxu1 %v4895_v2  ;;  %v2773_v2 = vld [vmem:[#allocation22 + $0x410] sm:$0xff] }
 0xb91   :  { %4898 = vmatprep.subr.bf16.mxu1 %v4897_v60  ;;  %v6465_v60 = vadd.s32 640, %v6429_v39  ;;  %v4931_v22 = vpack.c.bf16 %v2773_v2, %v2771_v59  ;;  %v2807_v2 = vld [vmem:[#allocation22 + $0x520] sm:$0xff] }
 0xb93   :  { %v2568_v31 = vshra.s32 %v6465_v60, 8 }
 0xb94   :  { %4900 = vmatpush1.bf16.msra.mxu1 %v4899_v34  ;;  %v2775_v34 = vld [vmem:[#allocation22 + $0x420] sm:$0xff] }
 0xb95   :  { %4902 = vmatprep.subr.bf16.mxu1 %v4901_v3  ;;  %v2777_v3 = vld [vmem:[#allocation22 + $0x430] sm:$0xff]  ;;  %vm2584_vm12 = vcmp.eq.s32.totalorder %v2568_v31, %v6249_v8  ;;  %vm2600_vm14 = vcmp.eq.s32.totalorder %v2568_v31, %v6258_v20  ;;  %v2843_v31 = vld [vmem:[#allocation22 + $0x640] sm:$0xff] }
 0xb96   :  { %v4935_v7 = vpack.c.bf16 %v2777_v3, %v2775_v34  ;;  %v2811_v3 = vld [vmem:[#allocation22 + $0x540] sm:$0xff] }
 0xb98   :  { %4904 = vmatpush1.bf16.msra.mxu1 %v4903_v9  ;;  %v2781_v9 = vld [vmem:[#allocation22 + $0x450] sm:$0xff] }
 0xb99   :  { %4906 = vmatprep.subr.bf16.mxu1 %v4905_v14  ;;  %v2784_v14 = vld [vmem:[#allocation22 + $0x468] sm:$0xff]  ;;  %v4939_v12 = vpack.c.bf16 %v2781_v9, %v2779_v23  ;;  %v2815_v9 = vld [vmem:[#allocation22 + $0x560] sm:$0xff] }
 0xb9a   :  { %v4941_v63 = vpack.c.bf16 %v2786_v11, %v2784_v14  ;;  %v2817_v14 = vld [vmem:[#allocation22 + $0x570] sm:$0xff]  ;;  %v2820_v11 = vld [vmem:[#allocation22 + $0x588] sm:$0xff] }
 0xb9c   :  { %4908 = vmatpush1.bf16.msra.mxu1 %v4907_v16  ;;  %v2785_v16 = vld [vmem:[#allocation22 + $0x470] sm:$0xff] }
 0xb9d   :  { %4910 = vmatprep.subr.bf16.mxu1 %v4909_v25  ;;  %v2788_v25 = vld [vmem:[#allocation22 + $0x488] sm:$0xff]  ;;  %v4943_v30 = vpack.c.bf16 %v2785_v16, %v2783_v18  ;;  %v2819_v16 = vld [vmem:[#allocation22 + $0x580] sm:$0xff] }
 0xb9e   :  { %v4945_v32 = vpack.c.bf16 %v2790_v29, %v2788_v25  ;;  %v2821_v25 = vld [vmem:[#allocation22 + $0x590] sm:$0xff]  ;;  %v2824_v29 = vld [vmem:[#allocation22 + $0x5a8] sm:$0xff] }
 0xba0   :  { %4912 = vmatpush1.bf16.msra.mxu1 %v4911_v17  ;;  %v2789_v17 = vld [vmem:[#allocation22 + $0x490] sm:$0xff] }
 0xba1   :  { %4914 = vmatprep.subr.bf16.mxu1 %v4913_v35  ;;  %v2792_v35 = vld [vmem:[#allocation22 + $0x4a8] sm:$0xff]  ;;  %v4947_v62 = vpack.c.bf16 %v2789_v17, %v2787_v33  ;;  %v2823_v17 = vld [vmem:[#allocation22 + $0x5a0] sm:$0xff] }
 0xba2   :  { %v4949_v37 = vpack.c.bf16 %v2794_v51, %v2792_v35  ;;  %v2825_v35 = vld [vmem:[#allocation22 + $0x5b0] sm:$0xff]  ;;  %v2828_v51 = vld [vmem:[#allocation22 + $0x5c8] sm:$0xff] }
 0xba4   :  { %4916 = vmatpush1.bf16.msra.mxu1 %v4915_v42  ;;  %v2793_v42 = vld [vmem:[#allocation22 + $0x4b0] sm:$0xff] }
 0xba5   :  { %4918 = vmatprep.subr.bf16.mxu1 %v4917_v43  ;;  %v2796_v43 = vld [vmem:[#allocation22 + $0x4c8] sm:$0xff]  ;;  %v4951_v44 = vpack.c.bf16 %v2793_v42, %v2791_v41  ;;  %v2827_v42 = vld [vmem:[#allocation22 + $0x5c0] sm:$0xff] }
 0xba6   :  { %v4953_v21 = vpack.c.bf16 %v2798_v10, %v2796_v43  ;;  %v2829_v43 = vld [vmem:[#allocation22 + $0x5d0] sm:$0xff]  ;;  %v2832_v10 = vld [vmem:[#allocation22 + $0x5e8] sm:$0xff] }
 0xba8   :  { %4920 = vmatpush1.bf16.msra.mxu1 %v4919_v45  ;;  %v2797_v45 = vld [vmem:[#allocation22 + $0x4d0] sm:$0xff] }
 0xba9   :  { %4922 = vmatprep.subr.bf16.mxu1 %v4921_v46  ;;  %v2800_v46 = vld [vmem:[#allocation22 + $0x4e8] sm:$0xff]  ;;  %v4955_v54 = vpack.c.bf16 %v2797_v45, %v2795_v58  ;;  %v2551_v58 = vadd.s32 512, %v6429_v39 }
 0xbaa   :  { %v4957_v48 = vpack.c.bf16 %v2802_v47, %v2800_v46  ;;  %v2831_v46 = vld [vmem:[#allocation22 + $0x5e0] sm:$0xff]  ;;  %v2833_v47 = vld [vmem:[#allocation22 + $0x5f0] sm:$0xff] }
 0xbac   :  { %4924 = vmatpush1.bf16.msra.mxu1 %v4923_v4  ;;  %v2801_v4 = vld [vmem:[#allocation22 + $0x4f0] sm:$0xff] }
 0xbad   :  { %4926 = vmatprep.subr.bf16.mxu1 %v4925_v50  ;;  %v2806_v50 = vld [vmem:[#allocation22 + $0x518] sm:$0xff]  ;;  %v4959_v52 = vpack.c.bf16 %v2801_v4, %v2799_v49  ;;  %v4991_v49 = vpack.c.bf16 %v2833_v47, %v2831_v46  ;;  %v2567_v4 = vshra.s32 %v2551_v58, 8  ;;  %v2868_v58 = vld [vmem:[#allocation22 + $0x708] sm:$0xff] }
 0xbae   :  { %v4961_v61 = vpack.c.bf16 %v2806_v50, %v2804_v19  ;;  %v2835_v50 = vld [vmem:[#allocation22 + $0x600] sm:$0xff] }
 0xbaf   :  { %vm2583_vm13 = vcmp.eq.s32.totalorder %v2567_v4, %v6249_v8  ;;  %vm2599_vm15 = vcmp.eq.s32.totalorder %v2567_v4, %v6258_v20  ;;  %v2874_v4 = vld [vmem:[#allocation22 + $0x738] sm:$0xff] }
 0xbb0   :  { %4928 = vmatpush1.bf16.msra.mxu1 %v4927_v55  ;;  %v2808_v55 = vld [vmem:[#allocation22 + $0x528] sm:$0xff] }
 0xbb1   :  { %4930 = vmatprep.subr.bf16.mxu1 %v4929_v57  ;;  %v4963_v57 = vpack.c.bf16 %v2805_v40, %v2803_v53  ;;  %v4965_v59 = vpack.c.bf16 %v2810_v56, %v2808_v55  ;;  %v2840_v53 = vld [vmem:[#allocation22 + $0x628] sm:$0xff]  ;;  %v2842_v40 = vld [vmem:[#allocation22 + $0x638] sm:$0xff] }
 0xbb2   :  { %v4997_v56 = vpack.c.bf16 %v2842_v40, %v2840_v53  ;;  %v2873_v53 = vld [vmem:[#allocation22 + $0x730] sm:$0xff]  ;;  %v2876_v40 = vld [vmem:[#allocation22 + $0x748] sm:$0xff] }
 0xbb3   :  { %4028 = vmatmul.mubr.msk.f32.vlgmr.msra.gmra.mrb[10].mxu1 %vm2581_vm9, %v6444_v36 }
 0xbb4   :  { %4029 = vmatprep.mubr.msk.f32.mxu1 %vm2598_vm10, %v6451_v27  ;;  %4932 = vmatpush1.bf16.msra.mxu1 %v4931_v22  ;;  %v2814_v22 = vld [vmem:[#allocation22 + $0x558] sm:$0xff] }
 0xbb5   :  { %4934 = vmatprep.subr.bf16.mxu1 %v4933_v15  ;;  %v4967_v15 = vpack.c.bf16 %v2809_v28, %v2807_v2  ;;  %v4969_v34 = vpack.c.bf16 %v2814_v22, %v2812_v0  ;;  %v2844_v28 = vld [vmem:[#allocation22 + $0x648] sm:$0xff]  ;;  %v2846_v0 = vld [vmem:[#allocation22 + $0x658] sm:$0xff] }
 0xbb6   :  { %v5001_v60 = vpack.c.bf16 %v2846_v0, %v2844_v28  ;;  %v2877_v28 = vld [vmem:[#allocation22 + $0x750] sm:$0xff]  ;;  %v2880_v0 = vld [vmem:[#allocation22 + $0x768] sm:$0xff] }
 0xbb7   :  { %4030 = vmatmul.mubr.msk.f32.gmra.mrb[12].mxu1 %vm2597_vm11, %v6455_v13 }
 0xbb8   :  { %4936 = vmatpush1.bf16.msra.mxu1 %v4935_v7  ;;  %4031 = vmatprep.mubr.msk.f32.mxu1 %vm2584_vm12, %v6440_v38  ;;  %v2818_v7 = vld [vmem:[#allocation22 + $0x578] sm:$0xff] }
 0xbb9   :  { %4938 = vmatprep.subr.bf16.mxu1 %v4937_v1  ;;  %v4971_v1 = vpack.c.bf16 %v2813_v5, %v2811_v3  ;;  %v4973_v23 = vpack.c.bf16 %v2818_v7, %v2816_v6  ;;  %v2850_v3 = vld [vmem:[#allocation22 + $0x678] sm:$0xff]  ;;  %v2847_v7 = vld [vmem:[#allocation22 + $0x660] sm:$0xff] }
 0xbbc   :  { %4940 = vmatpush1.bf16.msra.mxu1 %v4939_v12  ;;  %v2822_v12 = vld [vmem:[#allocation22 + $0x598] sm:$0xff] }
 0xbbd   :  { %4942 = vmatprep.subr.bf16.mxu1 %v4941_v63  ;;  %v4975_v63 = vpack.c.bf16 %v2817_v14, %v2815_v9  ;;  %v4977_v18 = vpack.c.bf16 %v2822_v12, %v2820_v11  ;;  %v2854_v9 = vld [vmem:[#allocation22 + $0x698] sm:$0xff]  ;;  %v2851_v12 = vld [vmem:[#allocation22 + $0x680] sm:$0xff] }
 0xbc0   :  { %4944 = vmatpush1.bf16.msra.mxu1 %v4943_v30  ;;  %v2826_v30 = vld [vmem:[#allocation22 + $0x5b8] sm:$0xff] }
 0xbc1   :  { %4946 = vmatprep.subr.bf16.mxu1 %v4945_v32  ;;  %v4979_v32 = vpack.c.bf16 %v2821_v25, %v2819_v16  ;;  %v4981_v33 = vpack.c.bf16 %v2826_v30, %v2824_v29  ;;  %v2858_v16 = vld [vmem:[#allocation22 + $0x6b8] sm:$0xff]  ;;  %v2855_v30 = vld [vmem:[#allocation22 + $0x6a0] sm:$0xff] }
 0xbc4   :  { %4948 = vmatpush1.bf16.msra.mxu1 %v4947_v62  ;;  %v2830_v62 = vld [vmem:[#allocation22 + $0x5d8] sm:$0xff] }
 0xbc5   :  { %4950 = vmatprep.subr.bf16.mxu1 %v4949_v37  ;;  %v4983_v37 = vpack.c.bf16 %v2825_v35, %v2823_v17  ;;  %v4985_v41 = vpack.c.bf16 %v2830_v62, %v2828_v51  ;;  %v2862_v17 = vld [vmem:[#allocation22 + $0x6d8] sm:$0xff]  ;;  %v2859_v62 = vld [vmem:[#allocation22 + $0x6c0] sm:$0xff] }
 0xbc8   :  { %4952 = vmatpush1.bf16.msra.mxu1 %v4951_v44  ;;  %v2834_v44 = vld [vmem:[#allocation22 + $0x5f8] sm:$0xff] }
 0xbc9   :  { %4954 = vmatprep.subr.bf16.mxu1 %v4953_v21  ;;  %v4987_v21 = vpack.c.bf16 %v2829_v43, %v2827_v42  ;;  %v4989_v45 = vpack.c.bf16 %v2834_v44, %v2832_v10  ;;  %v2866_v42 = vld [vmem:[#allocation22 + $0x6f8] sm:$0xff]  ;;  %v2863_v44 = vld [vmem:[#allocation22 + $0x6e0] sm:$0xff] }
 0xbcc   :  { %4956 = vmatpush1.bf16.msra.mxu1 %v4955_v54  ;;  %v2836_v54 = vld [vmem:[#allocation22 + $0x608] sm:$0xff] }
 0xbcd   :  { %4958 = vmatprep.subr.bf16.mxu1 %v4957_v48  ;;  %v2838_v48 = vld [vmem:[#allocation22 + $0x618] sm:$0xff] }
 0xbce   :  { %v4993_v19 = vpack.c.bf16 %v2838_v48, %v2836_v54  ;;  %v2867_v54 = vld [vmem:[#allocation22 + $0x700] sm:$0xff]  ;;  %v2869_v48 = vld [vmem:[#allocation22 + $0x710] sm:$0xff] }
 0xbd0   :  { %4960 = vmatpush1.bf16.msra.mxu1 %v4959_v52  ;;  %v2837_v52 = vld [vmem:[#allocation22 + $0x610] sm:$0xff] }
 0xbd1   :  { %4962 = vmatprep.subr.bf16.mxu1 %v4961_v61  ;;  %v6482_v61 = vadd.s32 896, %v6429_v39  ;;  %v4995_v55 = vpack.c.bf16 %v2837_v52, %v2835_v50  ;;  %v2871_v52 = vld [vmem:[#allocation22 + $0x720] sm:$0xff] }
 0xbd3   :  { %v2570_v2 = vshra.s32 %v6482_v61, 8 }
 0xbd4   :  { %4964 = vmatpush1.bf16.msra.mxu1 %v4963_v57  ;;  %v2839_v57 = vld [vmem:[#allocation22 + $0x620] sm:$0xff] }
 0xbd5   :  { %4966 = vmatprep.subr.bf16.mxu1 %v4965_v59  ;;  %v2841_v59 = vld [vmem:[#allocation22 + $0x630] sm:$0xff]  ;;  %vm2586_vm0 = vcmp.eq.s32.totalorder %v2570_v2, %v6249_v8  ;;  %vm2602_vm2 = vcmp.eq.s32.totalorder %v2570_v2, %v6258_v20  ;;  %v2907_v2 = vld [vmem:[#allocation22 + $0x840] sm:$0xff] }
 0xbd6   :  { %v4999_v22 = vpack.c.bf16 %v2841_v59, %v2839_v57  ;;  %v2875_v59 = vld [vmem:[#allocation22 + $0x740] sm:$0xff] }
 0xbd8   :  { %4968 = vmatpush1.bf16.msra.mxu1 %v4967_v15  ;;  %v2845_v15 = vld [vmem:[#allocation22 + $0x650] sm:$0xff] }
 0xbd9   :  { %4970 = vmatprep.subr.bf16.mxu1 %v4969_v34  ;;  %v2848_v34 = vld [vmem:[#allocation22 + $0x668] sm:$0xff]  ;;  %v5003_v5 = vpack.c.bf16 %v2845_v15, %v2843_v31  ;;  %v2879_v15 = vld [vmem:[#allocation22 + $0x760] sm:$0xff] }
 0xbda   :  { %v5005_v6 = vpack.c.bf16 %v2850_v3, %v2848_v34  ;;  %v2881_v34 = vld [vmem:[#allocation22 + $0x770] sm:$0xff]  ;;  %v2884_v3 = vld [vmem:[#allocation22 + $0x788] sm:$0xff] }
 0xbdc   :  { %4972 = vmatpush1.bf16.msra.mxu1 %v4971_v1  ;;  %v2849_v1 = vld [vmem:[#allocation22 + $0x670] sm:$0xff] }
 0xbdd   :  { %4974 = vmatprep.subr.bf16.mxu1 %v4973_v23  ;;  %v2852_v23 = vld [vmem:[#allocation22 + $0x688] sm:$0xff]  ;;  %v5007_v14 = vpack.c.bf16 %v2849_v1, %v2847_v7  ;;  %v2883_v1 = vld [vmem:[#allocation22 + $0x780] sm:$0xff] }
 0xbde   :  { %v5009_v11 = vpack.c.bf16 %v2854_v9, %v2852_v23  ;;  %v2885_v23 = vld [vmem:[#allocation22 + $0x790] sm:$0xff]  ;;  %v2888_v9 = vld [vmem:[#allocation22 + $0x7a8] sm:$0xff] }
 0xbe0   :  { %4976 = vmatpush1.bf16.msra.mxu1 %v4975_v63  ;;  %v2853_v63 = vld [vmem:[#allocation22 + $0x690] sm:$0xff] }
 0xbe1   :  { %4978 = vmatprep.subr.bf16.mxu1 %v4977_v18  ;;  %v2856_v18 = vld [vmem:[#allocation22 + $0x6a8] sm:$0xff]  ;;  %v5011_v25 = vpack.c.bf16 %v2853_v63, %v2851_v12  ;;  %v2887_v63 = vld [vmem:[#allocation22 + $0x7a0] sm:$0xff] }
 0xbe2   :  { %v5013_v29 = vpack.c.bf16 %v2858_v16, %v2856_v18  ;;  %v2889_v18 = vld [vmem:[#allocation22 + $0x7b0] sm:$0xff]  ;;  %v2892_v16 = vld [vmem:[#allocation22 + $0x7c8] sm:$0xff] }
 0xbe4   :  { %4980 = vmatpush1.bf16.msra.mxu1 %v4979_v32  ;;  %v2857_v32 = vld [vmem:[#allocation22 + $0x6b0] sm:$0xff] }
 0xbe5   :  { %4982 = vmatprep.subr.bf16.mxu1 %v4981_v33  ;;  %v2860_v33 = vld [vmem:[#allocation22 + $0x6c8] sm:$0xff]  ;;  %v5015_v35 = vpack.c.bf16 %v2857_v32, %v2855_v30  ;;  %v2891_v32 = vld [vmem:[#allocation22 + $0x7c0] sm:$0xff] }
 0xbe6   :  { %v5017_v51 = vpack.c.bf16 %v2862_v17, %v2860_v33  ;;  %v2893_v33 = vld [vmem:[#allocation22 + $0x7d0] sm:$0xff]  ;;  %v2896_v17 = vld [vmem:[#allocation22 + $0x7e8] sm:$0xff] }
 0xbe8   :  { %4984 = vmatpush1.bf16.msra.mxu1 %v4983_v37  ;;  %v2861_v37 = vld [vmem:[#allocation22 + $0x6d0] sm:$0xff] }
 0xbe9   :  { %4986 = vmatprep.subr.bf16.mxu1 %v4985_v41  ;;  %v2864_v41 = vld [vmem:[#allocation22 + $0x6e8] sm:$0xff]  ;;  %v5019_v43 = vpack.c.bf16 %v2861_v37, %v2859_v62  ;;  %v2553_v62 = vadd.s32 768, %v6429_v39 }
 0xbea   :  { %v5021_v10 = vpack.c.bf16 %v2866_v42, %v2864_v41  ;;  %v2895_v41 = vld [vmem:[#allocation22 + $0x7e0] sm:$0xff]  ;;  %v2897_v42 = vld [vmem:[#allocation22 + $0x7f0] sm:$0xff] }
 0xbec   :  { %4988 = vmatpush1.bf16.msra.mxu1 %v4987_v21  ;;  %v2865_v21 = vld [vmem:[#allocation22 + $0x6f0] sm:$0xff] }
 0xbed   :  { %4990 = vmatprep.subr.bf16.mxu1 %v4989_v45  ;;  %v2870_v45 = vld [vmem:[#allocation22 + $0x718] sm:$0xff]  ;;  %v5023_v46 = vpack.c.bf16 %v2865_v21, %v2863_v44  ;;  %v5055_v44 = vpack.c.bf16 %v2897_v42, %v2895_v41  ;;  %v2569_v21 = vshra.s32 %v2553_v62, 8  ;;  %v2932_v62 = vld [vmem:[#allocation22 + $0x908] sm:$0xff] }
 0xbee   :  { %v5025_v47 = vpack.c.bf16 %v2870_v45, %v2868_v58  ;;  %v2899_v45 = vld [vmem:[#allocation22 + $0x800] sm:$0xff] }
 0xbef   :  { %vm2585_vm1 = vcmp.eq.s32.totalorder %v2569_v21, %v6249_v8  ;;  %vm2601_vm4 = vcmp.eq.s32.totalorder %v2569_v21, %v6258_v20  ;;  %v2938_v21 = vld [vmem:[#allocation22 + $0x938] sm:$0xff] }
 0xbf0   :  { %4992 = vmatpush1.bf16.msra.mxu1 %v4991_v49  ;;  %v2872_v49 = vld [vmem:[#allocation22 + $0x728] sm:$0xff] }
 0xbf1   :  { %4994 = vmatprep.subr.bf16.mxu1 %v4993_v19  ;;  %v5027_v19 = vpack.c.bf16 %v2869_v48, %v2867_v54  ;;  %v5029_v50 = vpack.c.bf16 %v2874_v4, %v2872_v49  ;;  %v2904_v54 = vld [vmem:[#allocation22 + $0x828] sm:$0xff]  ;;  %v2906_v48 = vld [vmem:[#allocation22 + $0x838] sm:$0xff] }
 0xbf2   :  { %v5061_v4 = vpack.c.bf16 %v2906_v48, %v2904_v54  ;;  %v2937_v54 = vld [vmem:[#allocation22 + $0x930] sm:$0xff]  ;;  %v2940_v48 = vld [vmem:[#allocation22 + $0x948] sm:$0xff] }
 0xbf3   :  { %4032 = vmatmul.mubr.msk.f32.vlgmr.msra.gmra.mrb[10].mxu1 %vm2583_vm13, %v6444_v36 }
 0xbf4   :  { %4033 = vmatprep.mubr.msk.f32.mxu1 %vm2600_vm14, %v6451_v27  ;;  %4996 = vmatpush1.bf16.msra.mxu1 %v4995_v55  ;;  %v2878_v55 = vld [vmem:[#allocation22 + $0x758] sm:$0xff] }
 0xbf5   :  { %4998 = vmatprep.subr.bf16.mxu1 %v4997_v56  ;;  %v5031_v56 = vpack.c.bf16 %v2873_v53, %v2871_v52  ;;  %v5033_v57 = vpack.c.bf16 %v2878_v55, %v2876_v40  ;;  %v2908_v53 = vld [vmem:[#allocation22 + $0x848] sm:$0xff]  ;;  %v2910_v40 = vld [vmem:[#allocation22 + $0x858] sm:$0xff] }
 0xbf6   :  { %v5065_v61 = vpack.c.bf16 %v2910_v40, %v2908_v53  ;;  %v2941_v53 = vld [vmem:[#allocation22 + $0x950] sm:$0xff]  ;;  %v2944_v40 = vld [vmem:[#allocation22 + $0x968] sm:$0xff] }
 0xbf7   :  { %4034 = vmatmul.mubr.msk.f32.gmra.mrb[12].mxu1 %vm2599_vm15, %v6455_v13 }
 0xbf8   :  { %5000 = vmatpush1.bf16.msra.mxu1 %v4999_v22  ;;  %4035 = vmatprep.mubr.msk.f32.mxu1 %vm2586_vm0, %v6440_v38  ;;  %v2882_v22 = vld [vmem:[#allocation22 + $0x778] sm:$0xff] }
 0xbf9   :  { %5002 = vmatprep.subr.bf16.mxu1 %v5001_v60  ;;  %v5035_v60 = vpack.c.bf16 %v2877_v28, %v2875_v59  ;;  %v5037_v31 = vpack.c.bf16 %v2882_v22, %v2880_v0  ;;  %v2914_v59 = vld [vmem:[#allocation22 + $0x878] sm:$0xff]  ;;  %v2911_v22 = vld [vmem:[#allocation22 + $0x860] sm:$0xff] }
 0xbfc   :  { %5004 = vmatpush1.bf16.msra.mxu1 %v5003_v5  ;;  %v2886_v5 = vld [vmem:[#allocation22 + $0x798] sm:$0xff] }
 0xbfd   :  { %5006 = vmatprep.subr.bf16.mxu1 %v5005_v6  ;;  %v5039_v6 = vpack.c.bf16 %v2881_v34, %v2879_v15  ;;  %v5041_v7 = vpack.c.bf16 %v2886_v5, %v2884_v3  ;;  %v2918_v15 = vld [vmem:[#allocation22 + $0x898] sm:$0xff]  ;;  %v2915_v5 = vld [vmem:[#allocation22 + $0x880] sm:$0xff] }
 0xc00   :  { %5008 = vmatpush1.bf16.msra.mxu1 %v5007_v14  ;;  %v2890_v14 = vld [vmem:[#allocation22 + $0x7b8] sm:$0xff] }
 0xc01   :  { %5010 = vmatprep.subr.bf16.mxu1 %v5009_v11  ;;  %v5043_v11 = vpack.c.bf16 %v2885_v23, %v2883_v1  ;;  %v5045_v12 = vpack.c.bf16 %v2890_v14, %v2888_v9  ;;  %v2922_v1 = vld [vmem:[#allocation22 + $0x8b8] sm:$0xff]  ;;  %v2919_v14 = vld [vmem:[#allocation22 + $0x8a0] sm:$0xff] }
 0xc04   :  { %5012 = vmatpush1.bf16.msra.mxu1 %v5011_v25  ;;  %v2894_v25 = vld [vmem:[#allocation22 + $0x7d8] sm:$0xff] }
 0xc05   :  { %5014 = vmatprep.subr.bf16.mxu1 %v5013_v29  ;;  %v5047_v29 = vpack.c.bf16 %v2889_v18, %v2887_v63  ;;  %v5049_v30 = vpack.c.bf16 %v2894_v25, %v2892_v16  ;;  %v2926_v63 = vld [vmem:[#allocation22 + $0x8d8] sm:$0xff]  ;;  %v2923_v25 = vld [vmem:[#allocation22 + $0x8c0] sm:$0xff] }
 0xc08   :  { %5016 = vmatpush1.bf16.msra.mxu1 %v5015_v35  ;;  %v2898_v35 = vld [vmem:[#allocation22 + $0x7f8] sm:$0xff] }
 0xc09   :  { %5018 = vmatprep.subr.bf16.mxu1 %v5017_v51  ;;  %v5051_v51 = vpack.c.bf16 %v2893_v33, %v2891_v32  ;;  %v5053_v37 = vpack.c.bf16 %v2898_v35, %v2896_v17  ;;  %v2930_v32 = vld [vmem:[#allocation22 + $0x8f8] sm:$0xff]  ;;  %v2927_v35 = vld [vmem:[#allocation22 + $0x8e0] sm:$0xff] }
 0xc0c   :  { %5020 = vmatpush1.bf16.msra.mxu1 %v5019_v43  ;;  %v2900_v43 = vld [vmem:[#allocation22 + $0x808] sm:$0xff] }
 0xc0d   :  { %5022 = vmatprep.subr.bf16.mxu1 %v5021_v10  ;;  %v2902_v10 = vld [vmem:[#allocation22 + $0x818] sm:$0xff] }
 0xc0e   :  { %v5057_v58 = vpack.c.bf16 %v2902_v10, %v2900_v43  ;;  %v2931_v43 = vld [vmem:[#allocation22 + $0x900] sm:$0xff]  ;;  %v2933_v10 = vld [vmem:[#allocation22 + $0x910] sm:$0xff] }
 0xc10   :  { %5024 = vmatpush1.bf16.msra.mxu1 %v5023_v46  ;;  %v2901_v46 = vld [vmem:[#allocation22 + $0x810] sm:$0xff] }
 0xc11   :  { %5026 = vmatprep.subr.bf16.mxu1 %v5025_v47  ;;  %v6499_v47 = vadd.s32 1152, %v6429_v39  ;;  %v5059_v49 = vpack.c.bf16 %v2901_v46, %v2899_v45  ;;  %v2935_v46 = vld [vmem:[#allocation22 + $0x920] sm:$0xff] }
 0xc13   :  { %v2572_v52 = vshra.s32 %v6499_v47, 8 }
 0xc14   :  { %5028 = vmatpush1.bf16.msra.mxu1 %v5027_v19  ;;  %v2903_v19 = vld [vmem:[#allocation22 + $0x820] sm:$0xff] }
 0xc15   :  { %5030 = vmatprep.subr.bf16.mxu1 %v5029_v50  ;;  %v2905_v50 = vld [vmem:[#allocation22 + $0x830] sm:$0xff]  ;;  %vm2588_vm5 = vcmp.eq.s32.totalorder %v2572_v52, %v6249_v8  ;;  %vm2604_vm7 = vcmp.eq.s32.totalorder %v2572_v52, %v6258_v20  ;;  %v2971_v52 = vld [vmem:[#allocation22 + $0xa40] sm:$0xff] }
 0xc16   :  { %v5063_v55 = vpack.c.bf16 %v2905_v50, %v2903_v19  ;;  %v2939_v50 = vld [vmem:[#allocation22 + $0x940] sm:$0xff] }
 0xc18   :  { %5032 = vmatpush1.bf16.msra.mxu1 %v5031_v56  ;;  %v2909_v56 = vld [vmem:[#allocation22 + $0x850] sm:$0xff] }
 0xc19   :  { %5034 = vmatprep.subr.bf16.mxu1 %v5033_v57  ;;  %v2912_v57 = vld [vmem:[#allocation22 + $0x868] sm:$0xff]  ;;  %v5067_v28 = vpack.c.bf16 %v2909_v56, %v2907_v2  ;;  %v2943_v56 = vld [vmem:[#allocation22 + $0x960] sm:$0xff] }
 0xc1a   :  { %v5069_v0 = vpack.c.bf16 %v2914_v59, %v2912_v57  ;;  %v2945_v57 = vld [vmem:[#allocation22 + $0x970] sm:$0xff]  ;;  %v2948_v59 = vld [vmem:[#allocation22 + $0x988] sm:$0xff] }
 0xc1c   :  { %5036 = vmatpush1.bf16.msra.mxu1 %v5035_v60  ;;  %v2913_v60 = vld [vmem:[#allocation22 + $0x870] sm:$0xff] }
 0xc1d   :  { %5038 = vmatprep.subr.bf16.mxu1 %v5037_v31  ;;  %v2916_v31 = vld [vmem:[#allocation22 + $0x888] sm:$0xff]  ;;  %v5071_v34 = vpack.c.bf16 %v2913_v60, %v2911_v22  ;;  %v2947_v60 = vld [vmem:[#allocation22 + $0x980] sm:$0xff] }
 0xc1e   :  { %v5073_v3 = vpack.c.bf16 %v2918_v15, %v2916_v31  ;;  %v2949_v31 = vld [vmem:[#allocation22 + $0x990] sm:$0xff]  ;;  %v2952_v15 = vld [vmem:[#allocation22 + $0x9a8] sm:$0xff] }
 0xc20   :  { %5040 = vmatpush1.bf16.msra.mxu1 %v5039_v6  ;;  %v2917_v6 = vld [vmem:[#allocation22 + $0x890] sm:$0xff] }
 0xc21   :  { %5042 = vmatprep.subr.bf16.mxu1 %v5041_v7  ;;  %v2920_v7 = vld [vmem:[#allocation22 + $0x8a8] sm:$0xff]  ;;  %v5075_v23 = vpack.c.bf16 %v2917_v6, %v2915_v5  ;;  %v2951_v6 = vld [vmem:[#allocation22 + $0x9a0] sm:$0xff] }
 0xc22   :  { %v5077_v9 = vpack.c.bf16 %v2922_v1, %v2920_v7  ;;  %v2953_v7 = vld [vmem:[#allocation22 + $0x9b0] sm:$0xff]  ;;  %v2956_v1 = vld [vmem:[#allocation22 + $0x9c8] sm:$0xff] }
 0xc24   :  { %5044 = vmatpush1.bf16.msra.mxu1 %v5043_v11  ;;  %v2921_v11 = vld [vmem:[#allocation22 + $0x8b0] sm:$0xff] }
 0xc25   :  { %5046 = vmatprep.subr.bf16.mxu1 %v5045_v12  ;;  %v2924_v12 = vld [vmem:[#allocation22 + $0x8c8] sm:$0xff]  ;;  %v5079_v18 = vpack.c.bf16 %v2921_v11, %v2919_v14  ;;  %v2955_v11 = vld [vmem:[#allocation22 + $0x9c0] sm:$0xff] }
 0xc26   :  { %v5081_v16 = vpack.c.bf16 %v2926_v63, %v2924_v12  ;;  %v2957_v12 = vld [vmem:[#allocation22 + $0x9d0] sm:$0xff]  ;;  %v2960_v63 = vld [vmem:[#allocation22 + $0x9e8] sm:$0xff] }
 0xc28   :  { %5048 = vmatpush1.bf16.msra.mxu1 %v5047_v29  ;;  %v2925_v29 = vld [vmem:[#allocation22 + $0x8d0] sm:$0xff] }
 0xc29   :  { %5050 = vmatprep.subr.bf16.mxu1 %v5049_v30  ;;  %v2928_v30 = vld [vmem:[#allocation22 + $0x8e8] sm:$0xff]  ;;  %v5083_v33 = vpack.c.bf16 %v2925_v29, %v2923_v25  ;;  %v2555_v25 = vadd.s32 1024, %v6429_v39 }
 0xc2a   :  { %v5085_v17 = vpack.c.bf16 %v2930_v32, %v2928_v30  ;;  %v2959_v30 = vld [vmem:[#allocation22 + $0x9e0] sm:$0xff]  ;;  %v2961_v32 = vld [vmem:[#allocation22 + $0x9f0] sm:$0xff] }
 0xc2c   :  { %5052 = vmatpush1.bf16.msra.mxu1 %v5051_v51  ;;  %v2929_v51 = vld [vmem:[#allocation22 + $0x8f0] sm:$0xff] }
 0xc2d   :  { %5054 = vmatprep.subr.bf16.mxu1 %v5053_v37  ;;  %v2934_v37 = vld [vmem:[#allocation22 + $0x918] sm:$0xff]  ;;  %v5087_v41 = vpack.c.bf16 %v2929_v51, %v2927_v35  ;;  %v5119_v35 = vpack.c.bf16 %v2961_v32, %v2959_v30  ;;  %v2571_v51 = vshra.s32 %v2555_v25, 8  ;;  %v2996_v25 = vld [vmem:[#allocation22 + $0xb08] sm:$0xff] }
 0xc2e   :  { %v5089_v42 = vpack.c.bf16 %v2934_v37, %v2932_v62  ;;  %v2963_v37 = vld [vmem:[#allocation22 + $0xa00] sm:$0xff] }
 0xc2f   :  { %vm2587_vm6 = vcmp.eq.s32.totalorder %v2571_v51, %v6249_v8  ;;  %vm2603_vm8 = vcmp.eq.s32.totalorder %v2571_v51, %v6258_v20  ;;  %v3002_v51 = vld [vmem:[#allocation22 + $0xb38] sm:$0xff] }
 0xc30   :  { %5056 = vmatpush1.bf16.msra.mxu1 %v5055_v44  ;;  %v2936_v44 = vld [vmem:[#allocation22 + $0x928] sm:$0xff] }
 0xc31   :  { %5058 = vmatprep.subr.bf16.mxu1 %v5057_v58  ;;  %v5091_v58 = vpack.c.bf16 %v2933_v10, %v2931_v43  ;;  %v5093_v45 = vpack.c.bf16 %v2938_v21, %v2936_v44  ;;  %v2968_v43 = vld [vmem:[#allocation22 + $0xa28] sm:$0xff]  ;;  %v2970_v10 = vld [vmem:[#allocation22 + $0xa38] sm:$0xff] }
 0xc32   :  { %v5125_v21 = vpack.c.bf16 %v2970_v10, %v2968_v43  ;;  %v3001_v43 = vld [vmem:[#allocation22 + $0xb30] sm:$0xff]  ;;  %v3004_v10 = vld [vmem:[#allocation22 + $0xb48] sm:$0xff] }
 0xc33   :  { %4036 = vmatmul.mubr.msk.f32.vlgmr.msra.gmra.mrb[10].mxu1 %vm2585_vm1, %v6444_v36 }
 0xc34   :  { %4037 = vmatprep.mubr.msk.f32.mxu1 %vm2602_vm2, %v6451_v27  ;;  %5060 = vmatpush1.bf16.msra.mxu1 %v5059_v49  ;;  %v2942_v49 = vld [vmem:[#allocation22 + $0x958] sm:$0xff] }
 0xc35   :  { %5062 = vmatprep.subr.bf16.mxu1 %v5061_v4  ;;  %v5095_v4 = vpack.c.bf16 %v2937_v54, %v2935_v46  ;;  %v5097_v19 = vpack.c.bf16 %v2942_v49, %v2940_v48  ;;  %v2972_v54 = vld [vmem:[#allocation22 + $0xa48] sm:$0xff]  ;;  %v2974_v48 = vld [vmem:[#allocation22 + $0xa58] sm:$0xff] }
 0xc36   :  { %v5129_v47 = vpack.c.bf16 %v2974_v48, %v2972_v54  ;;  %v3005_v54 = vld [vmem:[#allocation22 + $0xb50] sm:$0xff]  ;;  %v3008_v48 = vld [vmem:[#allocation22 + $0xb68] sm:$0xff] }
 0xc37   :  { %4038 = vmatmul.mubr.msk.f32.gmra.mrb[12].mxu1 %vm2601_vm4, %v6455_v13 }
 0xc38   :  { %5064 = vmatpush1.bf16.msra.mxu1 %v5063_v55  ;;  %4039 = vmatprep.mubr.msk.f32.mxu1 %vm2588_vm5, %v6440_v38  ;;  %v2946_v55 = vld [vmem:[#allocation22 + $0x978] sm:$0xff] }
 0xc39   :  { %5066 = vmatprep.subr.bf16.mxu1 %v5065_v61  ;;  %v5099_v61 = vpack.c.bf16 %v2941_v53, %v2939_v50  ;;  %v5101_v2 = vpack.c.bf16 %v2946_v55, %v2944_v40  ;;  %v2978_v50 = vld [vmem:[#allocation22 + $0xa78] sm:$0xff]  ;;  %v2975_v55 = vld [vmem:[#allocation22 + $0xa60] sm:$0xff] }
 0xc3c   :  { %5068 = vmatpush1.bf16.msra.mxu1 %v5067_v28  ;;  %v2950_v28 = vld [vmem:[#allocation22 + $0x998] sm:$0xff] }
 0xc3d   :  { %5070 = vmatprep.subr.bf16.mxu1 %v5069_v0  ;;  %v5103_v0 = vpack.c.bf16 %v2945_v57, %v2943_v56  ;;  %v5105_v22 = vpack.c.bf16 %v2950_v28, %v2948_v59  ;;  %v2982_v56 = vld [vmem:[#allocation22 + $0xa98] sm:$0xff]  ;;  %v2979_v28 = vld [vmem:[#allocation22 + $0xa80] sm:$0xff] }
 0xc40   :  { %5072 = vmatpush1.bf16.msra.mxu1 %v5071_v34  ;;  %v2954_v34 = vld [vmem:[#allocation22 + $0x9b8] sm:$0xff] }
 0xc41   :  { %5074 = vmatprep.subr.bf16.mxu1 %v5073_v3  ;;  %v5107_v3 = vpack.c.bf16 %v2949_v31, %v2947_v60  ;;  %v5109_v5 = vpack.c.bf16 %v2954_v34, %v2952_v15  ;;  %v2986_v60 = vld [vmem:[#allocation22 + $0xab8] sm:$0xff]  ;;  %v2983_v34 = vld [vmem:[#allocation22 + $0xaa0] sm:$0xff] }
 0xc44   :  { %5076 = vmatpush1.bf16.msra.mxu1 %v5075_v23  ;;  %v2958_v23 = vld [vmem:[#allocation22 + $0x9d8] sm:$0xff] }
 0xc45   :  { %5078 = vmatprep.subr.bf16.mxu1 %v5077_v9  ;;  %v5111_v9 = vpack.c.bf16 %v2953_v7, %v2951_v6  ;;  %v5113_v14 = vpack.c.bf16 %v2958_v23, %v2956_v1  ;;  %v2990_v6 = vld [vmem:[#allocation22 + $0xad8] sm:$0xff]  ;;  %v2987_v23 = vld [vmem:[#allocation22 + $0xac0] sm:$0xff] }
 0xc48   :  { %5080 = vmatpush1.bf16.msra.mxu1 %v5079_v18  ;;  %v2962_v18 = vld [vmem:[#allocation22 + $0x9f8] sm:$0xff] }
 0xc49   :  { %5082 = vmatprep.subr.bf16.mxu1 %v5081_v16  ;;  %v5115_v16 = vpack.c.bf16 %v2957_v12, %v2955_v11  ;;  %v5117_v29 = vpack.c.bf16 %v2962_v18, %v2960_v63  ;;  %v2994_v11 = vld [vmem:[#allocation22 + $0xaf8] sm:$0xff]  ;;  %v2991_v18 = vld [vmem:[#allocation22 + $0xae0] sm:$0xff] }
 0xc4c   :  { %5084 = vmatpush1.bf16.msra.mxu1 %v5083_v33  ;;  %v2964_v33 = vld [vmem:[#allocation22 + $0xa08] sm:$0xff] }
 0xc4d   :  { %5086 = vmatprep.subr.bf16.mxu1 %v5085_v17  ;;  %v2966_v17 = vld [vmem:[#allocation22 + $0xa18] sm:$0xff] }
 0xc4e   :  { %v5121_v62 = vpack.c.bf16 %v2966_v17, %v2964_v33  ;;  %v2995_v33 = vld [vmem:[#allocation22 + $0xb00] sm:$0xff]  ;;  %v2997_v17 = vld [vmem:[#allocation22 + $0xb10] sm:$0xff] }
 0xc50   :  { %5088 = vmatpush1.bf16.msra.mxu1 %v5087_v41  ;;  %v2965_v41 = vld [vmem:[#allocation22 + $0xa10] sm:$0xff] }
 0xc51   :  { %5090 = vmatprep.subr.bf16.mxu1 %v5089_v42  ;;  %v6516_v42 = vadd.s32 1408, %v6429_v39  ;;  %v5123_v44 = vpack.c.bf16 %v2965_v41, %v2963_v37  ;;  %v2999_v41 = vld [vmem:[#allocation22 + $0xb20] sm:$0xff] }
 0xc53   :  { %v2574_v46 = vshra.s32 %v6516_v42, 8 }
 0xc54   :  { %5092 = vmatpush1.bf16.msra.mxu1 %v5091_v58  ;;  %v2967_v58 = vld [vmem:[#allocation22 + $0xa20] sm:$0xff] }
 0xc55   :  { %5094 = vmatprep.subr.bf16.mxu1 %v5093_v45  ;;  %v2969_v45 = vld [vmem:[#allocation22 + $0xa30] sm:$0xff]  ;;  %vm2590_vm9 = vcmp.eq.s32.totalorder %v2574_v46, %v6249_v8  ;;  %vm2606_vm11 = vcmp.eq.s32.totalorder %v2574_v46, %v6258_v20  ;;  %v3035_v46 = vld [vmem:[#allocation22 + $0xc40] sm:$0xff] }
 0xc56   :  { %v5127_v49 = vpack.c.bf16 %v2969_v45, %v2967_v58  ;;  %v3003_v45 = vld [vmem:[#allocation22 + $0xb40] sm:$0xff] }
 0xc58   :  { %5096 = vmatpush1.bf16.msra.mxu1 %v5095_v4  ;;  %v2973_v4 = vld [vmem:[#allocation22 + $0xa50] sm:$0xff] }
 0xc59   :  { %5098 = vmatprep.subr.bf16.mxu1 %v5097_v19  ;;  %v2976_v19 = vld [vmem:[#allocation22 + $0xa68] sm:$0xff]  ;;  %v5131_v53 = vpack.c.bf16 %v2973_v4, %v2971_v52  ;;  %v3007_v4 = vld [vmem:[#allocation22 + $0xb60] sm:$0xff] }
 0xc5a   :  { %v5133_v40 = vpack.c.bf16 %v2978_v50, %v2976_v19  ;;  %v3009_v19 = vld [vmem:[#allocation22 + $0xb70] sm:$0xff]  ;;  %v3012_v50 = vld [vmem:[#allocation22 + $0xb88] sm:$0xff] }
 0xc5c   :  { %5100 = vmatpush1.bf16.msra.mxu1 %v5099_v61  ;;  %v2977_v61 = vld [vmem:[#allocation22 + $0xa70] sm:$0xff] }
 0xc5d   :  { %5102 = vmatprep.subr.bf16.mxu1 %v5101_v2  ;;  %v2980_v2 = vld [vmem:[#allocation22 + $0xa88] sm:$0xff]  ;;  %v5135_v57 = vpack.c.bf16 %v2977_v61, %v2975_v55  ;;  %v3011_v61 = vld [vmem:[#allocation22 + $0xb80] sm:$0xff] }
 0xc5e   :  { %v5137_v59 = vpack.c.bf16 %v2982_v56, %v2980_v2  ;;  %v3013_v2 = vld [vmem:[#allocation22 + $0xb90] sm:$0xff]  ;;  %v3016_v56 = vld [vmem:[#allocation22 + $0xba8] sm:$0xff] }
 0xc60   :  { %5104 = vmatpush1.bf16.msra.mxu1 %v5103_v0  ;;  %v2981_v0 = vld [vmem:[#allocation22 + $0xa90] sm:$0xff] }
 0xc61   :  { %5106 = vmatprep.subr.bf16.mxu1 %v5105_v22  ;;  %v2984_v22 = vld [vmem:[#allocation22 + $0xaa8] sm:$0xff]  ;;  %v5139_v31 = vpack.c.bf16 %v2981_v0, %v2979_v28  ;;  %v3015_v0 = vld [vmem:[#allocation22 + $0xba0] sm:$0xff] }
 0xc62   :  { %v5141_v15 = vpack.c.bf16 %v2986_v60, %v2984_v22  ;;  %v3017_v22 = vld [vmem:[#allocation22 + $0xbb0] sm:$0xff]  ;;  %v3020_v60 = vld [vmem:[#allocation22 + $0xbc8] sm:$0xff] }
 0xc64   :  { %5108 = vmatpush1.bf16.msra.mxu1 %v5107_v3  ;;  %v2985_v3 = vld [vmem:[#allocation22 + $0xab0] sm:$0xff] }
 0xc65   :  { %5110 = vmatprep.subr.bf16.mxu1 %v5109_v5  ;;  %v2988_v5 = vld [vmem:[#allocation22 + $0xac8] sm:$0xff]  ;;  %v5143_v7 = vpack.c.bf16 %v2985_v3, %v2983_v34  ;;  %v3019_v3 = vld [vmem:[#allocation22 + $0xbc0] sm:$0xff] }
 0xc66   :  { %v5145_v1 = vpack.c.bf16 %v2990_v6, %v2988_v5  ;;  %v3021_v5 = vld [vmem:[#allocation22 + $0xbd0] sm:$0xff]  ;;  %v3024_v6 = vld [vmem:[#allocation22 + $0xbe8] sm:$0xff] }
 0xc68   :  { %5112 = vmatpush1.bf16.msra.mxu1 %v5111_v9  ;;  %v2989_v9 = vld [vmem:[#allocation22 + $0xad0] sm:$0xff] }
 0xc69   :  { %5114 = vmatprep.subr.bf16.mxu1 %v5113_v14  ;;  %v2992_v14 = vld [vmem:[#allocation22 + $0xae8] sm:$0xff]  ;;  %v5147_v12 = vpack.c.bf16 %v2989_v9, %v2987_v23  ;;  %v2557_v23 = vadd.s32 1280, %v6429_v39 }
 0xc6a   :  { %v5149_v63 = vpack.c.bf16 %v2994_v11, %v2992_v14  ;;  %v3023_v14 = vld [vmem:[#allocation22 + $0xbe0] sm:$0xff]  ;;  %v3025_v11 = vld [vmem:[#allocation22 + $0xbf0] sm:$0xff] }
 0xc6c   :  { %5116 = vmatpush1.bf16.msra.mxu1 %v5115_v16  ;;  %v2993_v16 = vld [vmem:[#allocation22 + $0xaf0] sm:$0xff] }
 0xc6d   :  { %5118 = vmatprep.subr.bf16.mxu1 %v5117_v29  ;;  %v2998_v29 = vld [vmem:[#allocation22 + $0xb18] sm:$0xff]  ;;  %v5151_v30 = vpack.c.bf16 %v2993_v16, %v2991_v18  ;;  %v5183_v18 = vpack.c.bf16 %v3025_v11, %v3023_v14  ;;  %v2573_v16 = vshra.s32 %v2557_v23, 8 }
 0xc6e   :  { %v5153_v32 = vpack.c.bf16 %v2998_v29, %v2996_v25  ;;  %v3027_v29 = vld [vmem:[#allocation22 + $0xc00] sm:$0xff]  ;;  %v3829_v23 = vld [vmem:[#allocation23 + $0x78] sm:$0xff] }
 0xc6f   :  { %vm2589_vm10 = vcmp.eq.s32.totalorder %v2573_v16, %v6249_v8  ;;  %vm2605_vm12 = vcmp.eq.s32.totalorder %v2573_v16, %v6258_v20  ;;  %v3050_v14 = vld [vmem:[#allocation22 + $0xcb8] sm:$0xff]  ;;  %v3826_v16 = vld [vmem:[#allocation23 + $0x60] sm:$0xff] }
 0xc70   :  { %5120 = vmatpush1.bf16.msra.mxu1 %v5119_v35  ;;  %v3000_v35 = vld [vmem:[#allocation22 + $0xb28] sm:$0xff] }
 0xc71   :  { %5122 = vmatprep.subr.bf16.mxu1 %v5121_v62  ;;  %v5155_v62 = vpack.c.bf16 %v2997_v17, %v2995_v33  ;;  %v5157_v37 = vpack.c.bf16 %v3002_v51, %v3000_v35  ;;  %v3032_v33 = vld [vmem:[#allocation22 + $0xc28] sm:$0xff]  ;;  %v3034_v17 = vld [vmem:[#allocation22 + $0xc38] sm:$0xff] }
 0xc72   :  { %v5189_v51 = vpack.c.bf16 %v3034_v17, %v3032_v33  ;;  %v3831_v33 = vld [vmem:[#allocation23 + $0x88] sm:$0xff]  ;;  %v3833_v17 = vld [vmem:[#allocation23 + $0x98] sm:$0xff] }
 0xc73   :  { %4040 = vmatmul.mubr.msk.f32.vlgmr.msra.gmra.mrb[10].mxu1 %vm2587_vm6, %v6444_v36 }
 0xc74   :  { %4041 = vmatprep.mubr.msk.f32.mxu1 %vm2604_vm7, %v6451_v27  ;;  %5124 = vmatpush1.bf16.msra.mxu1 %v5123_v44  ;;  %v3006_v44 = vld [vmem:[#allocation22 + $0xb58] sm:$0xff]  ;;  %vm3965_vm7 = vcmask 1041408  }
 0xc75   :  { %5126 = vmatprep.subr.bf16.mxu1 %v5125_v21  ;;  %v5159_v21 = vpack.c.bf16 %v3001_v43, %v2999_v41  ;;  %v5161_v58 = vpack.c.bf16 %v3006_v44, %v3004_v10  ;;  %v3036_v43 = vld [vmem:[#allocation22 + $0xc48] sm:$0xff]  ;;  %v3038_v10 = vld [vmem:[#allocation22 + $0xc58] sm:$0xff] }
 0xc76   :  { %v5193_v42 = vpack.c.bf16 %v3038_v10, %v3036_v43  ;;  %v3051_v43 = vld [vmem:[#allocation22 + $0xcc0] sm:$0xff]  ;;  %v5329_v10 = vpack.c.bf16 %v3833_v17, %v3831_v33 }
 0xc77   :  { %4042 = vmatmul.mubr.msk.f32.gmra.mrb[12].mxu1 %vm2603_vm8, %v6455_v13  ;;  %v3067_v17 = vld [vmem:[#allocation22 + $0xd40] sm:$0xff] }
 0xc78   :  { %5128 = vmatpush1.bf16.msra.mxu1 %v5127_v49  ;;  %4043 = vmatprep.mubr.msk.f32.mxu1 %vm2590_vm9, %v6440_v38  ;;  %v3010_v49 = vld [vmem:[#allocation22 + $0xb78] sm:$0xff] }
 0xc79   :  { %5130 = vmatprep.subr.bf16.mxu1 %v5129_v47  ;;  %v5163_v47 = vpack.c.bf16 %v3005_v54, %v3003_v45  ;;  %v5165_v52 = vpack.c.bf16 %v3010_v49, %v3008_v48  ;;  %v3042_v45 = vld [vmem:[#allocation22 + $0xc78] sm:$0xff]  ;;  %v3039_v54 = vld [vmem:[#allocation22 + $0xc60] sm:$0xff]  ;;  %v3041_v48 = vld [vmem:[#allocation22 + $0xc70] sm:$0xff] }
 0xc7a   :  { %v3815_v49 = vld [vmem:[#allocation23 + $0x8] sm:$0xff] }
 0xc7c   :  { %5132 = vmatpush1.bf16.msra.mxu1 %v5131_v53  ;;  %v3014_v53 = vld [vmem:[#allocation22 + $0xb98] sm:$0xff] }
 0xc7d   :  { %5134 = vmatprep.subr.bf16.mxu1 %v5133_v40  ;;  %v5167_v40 = vpack.c.bf16 %v3009_v19, %v3007_v4  ;;  %v5169_v55 = vpack.c.bf16 %v3014_v53, %v3012_v50  ;;  %v3816_v50 = vld [vmem:[#allocation23 + $0x10] sm:$0xff]  ;;  %v3819_v53 = vld [vmem:[#allocation23 + $0x28] sm:$0xff] }
 0xc80   :  { %5136 = vmatpush1.bf16.msra.mxu1 %v5135_v57  ;;  %v3018_v57 = vld [vmem:[#allocation22 + $0xbb8] sm:$0xff] }
 0xc81   :  { %5138 = vmatprep.subr.bf16.mxu1 %v5137_v59  ;;  %v5171_v59 = vpack.c.bf16 %v3013_v2, %v3011_v61  ;;  %v5173_v28 = vpack.c.bf16 %v3018_v57, %v3016_v56  ;;  %v3818_v56 = vld [vmem:[#allocation23 + $0x20] sm:$0xff]  ;;  %v3820_v57 = vld [vmem:[#allocation23 + $0x30] sm:$0xff] }
 0xc84   :  { %5140 = vmatpush1.bf16.msra.mxu1 %v5139_v31  ;;  %v3022_v31 = vld [vmem:[#allocation22 + $0xbd8] sm:$0xff] }
 0xc85   :  { %5142 = vmatprep.subr.bf16.mxu1 %v5141_v15  ;;  %v5175_v15 = vpack.c.bf16 %v3017_v22, %v3015_v0  ;;  %v5177_v34 = vpack.c.bf16 %v3022_v31, %v3020_v60  ;;  %v3046_v0 = vld [vmem:[#allocation22 + $0xc98] sm:$0xff]  ;;  %v5319_v60 = vpack.c.bf16 %v3820_v57, %v3818_v56  ;;  %v5199_v31 = vpack.c.bf16 %v3041_v48, %v3039_v54  ;;  %v3056_v54 = vld [vmem:[#allocation22 + $0xce8] sm:$0xff] }
 0xc86   :  { %v3825_v22 = vld [vmem:[#allocation23 + $0x58] sm:$0xff] }
 0xc87   :  { %v3058_v48 = vld [vmem:[#allocation22 + $0xcf8] sm:$0xff] }
 0xc88   :  { %5144 = vmatpush1.bf16.msra.mxu1 %v5143_v7  ;;  %v3026_v7 = vld [vmem:[#allocation22 + $0xbf8] sm:$0xff] }
 0xc89   :  { %5146 = vmatprep.subr.bf16.mxu1 %v5145_v1  ;;  %v5179_v1 = vpack.c.bf16 %v3021_v5, %v3019_v3  ;;  %v5181_v9 = vpack.c.bf16 %v3026_v7, %v3024_v6  ;;  %v3822_v3 = vld [vmem:[#allocation23 + $0x40] sm:$0xff]  ;;  %v3824_v5 = vld [vmem:[#allocation23 + $0x50] sm:$0xff]  ;;  %v3062_v56 = vld [vmem:[#allocation22 + $0xd18] sm:$0xff] }
 0xc8a   :  { %v3045_v7 = vld [vmem:[#allocation22 + $0xc90] sm:$0xff]  ;;  %v5323_v11 = vpack.c.bf16 %v3824_v5, %v3822_v3  ;;  %v3845_v3 = vld [vmem:[#allocation23 + $0xf8] sm:$0xff]  ;;  %v3064_v5 = vld [vmem:[#allocation22 + $0xd28] sm:$0xff] }
 0xc8c   :  { %5148 = vmatpush1.bf16.msra.mxu1 %v5147_v12  ;;  %v3028_v12 = vld [vmem:[#allocation22 + $0xc08] sm:$0xff] }
 0xc8d   :  { %5150 = vmatprep.subr.bf16.mxu1 %v5149_v63  ;;  %v3030_v63 = vld [vmem:[#allocation22 + $0xc18] sm:$0xff] }
 0xc8e   :  { %v5185_v25 = vpack.c.bf16 %v3030_v63, %v3028_v12  ;;  %v3047_v63 = vld [vmem:[#allocation22 + $0xca0] sm:$0xff] }
 0xc90   :  { %5152 = vmatpush1.bf16.msra.mxu1 %v5151_v30  ;;  %v3029_v30 = vld [vmem:[#allocation22 + $0xc10] sm:$0xff] }
 0xc91   :  { %5154 = vmatprep.subr.bf16.mxu1 %v5153_v32  ;;  %v6533_v32 = vadd.s32 1664, %v6429_v39  ;;  %v5187_v35 = vpack.c.bf16 %v3029_v30, %v3027_v29  ;;  %v3049_v30 = vld [vmem:[#allocation22 + $0xcb0] sm:$0xff] }
 0xc93   :  { %v2576_v41 = vshra.s32 %v6533_v32, 8 }
 0xc94   :  { %5156 = vmatpush1.bf16.msra.mxu1 %v5155_v62  ;;  %v3031_v62 = vld [vmem:[#allocation22 + $0xc20] sm:$0xff] }
 0xc95   :  { %5158 = vmatprep.subr.bf16.mxu1 %v5157_v37  ;;  %v3033_v37 = vld [vmem:[#allocation22 + $0xc30] sm:$0xff]  ;;  %vm2592_vm13 = vcmp.eq.s32.totalorder %v2576_v41, %v6249_v8  ;;  %vm2608_vm15 = vcmp.eq.s32.totalorder %v2576_v41, %v6258_v20  ;;  %v3099_v41 = vld [vmem:[#allocation22 + $0xe40] sm:$0xff] }
 0xc96   :  { %v5191_v44 = vpack.c.bf16 %v3033_v37, %v3031_v62  ;;  %v5207_v37 = vpack.c.bf16 %v3049_v30, %v3047_v63  ;;  %v3065_v63 = vld [vmem:[#allocation22 + $0xd30] sm:$0xff] }
 0xc98   :  { %5160 = vmatpush1.bf16.msra.mxu1 %v5159_v21  ;;  %v3037_v21 = vld [vmem:[#allocation22 + $0xc50] sm:$0xff] }
 0xc99   :  { %5162 = vmatprep.subr.bf16.mxu1 %v5161_v58  ;;  %v3040_v58 = vld [vmem:[#allocation22 + $0xc68] sm:$0xff]  ;;  %v5195_v4 = vpack.c.bf16 %v3037_v21, %v3035_v46  ;;  %v3053_v21 = vld [vmem:[#allocation22 + $0xcd0] sm:$0xff] }
 0xc9c   :  { %5164 = vmatpush1.bf16.msra.mxu1 %v5163_v47  ;;  %v3817_v47 = vld [vmem:[#allocation23 + $0x18] sm:$0xff] }
 0xc9d   :  { %5166 = vmatprep.subr.bf16.mxu1 %v5165_v52  ;;  %v3814_v52 = vld [vmem:[#allocation23] sm:$0xff]  ;;  %v5313_v19 = vpack.c.bf16 %v3817_v47, %v3815_v49  ;;  %v5211_v47 = vpack.c.bf16 %v3053_v21, %v3051_v43  ;;  %v3069_v43 = vld [vmem:[#allocation22 + $0xd50] sm:$0xff] }
 0xc9e   :  { %v5315_v61 = vpack.c.bf16 %v3816_v50, %v3814_v52  ;;  %v3055_v52 = vld [vmem:[#allocation22 + $0xce0] sm:$0xff]  ;;  %v3836_v50 = vld [vmem:[#allocation23 + $0xb0] sm:$0xff] }
 0xc9f   :  { %5314 = vmatprep.subr.bf16.mxu0 %v5313_v19  ;;  %v3834_v19 = vld [vmem:[#allocation23 + $0xa0] sm:$0xff] }
 0xca0   :  { %5168 = vmatpush1.bf16.msra.mxu1 %v5167_v40  ;;  %v3821_v40 = vld [vmem:[#allocation23 + $0x38] sm:$0xff]  ;;  %5316 = vmatpush1.bf16.msra.mxu0 %v5315_v61  ;;  %v5335_v57 = vpack.c.bf16 %v3836_v50, %v3834_v19 }
 0xca1   :  { %5170 = vmatprep.subr.bf16.mxu1 %v5169_v55  ;;  %v5197_v55 = vpack.c.bf16 %v3042_v45, %v3040_v58  ;;  %v5317_v2 = vpack.c.bf16 %v3821_v40, %v3819_v53  ;;  %v3835_v58 = vld [vmem:[#allocation23 + $0xa8] sm:$0xff]  ;;  %v3837_v45 = vld [vmem:[#allocation23 + $0xb8] sm:$0xff]  ;;  %v5213_v53 = vpack.c.bf16 %v3058_v48, %v3056_v54  ;;  %v3057_v40 = vld [vmem:[#allocation22 + $0xcf0] sm:$0xff] }
 0xca2   :  { %v3841_v61 = vld [vmem:[#allocation23 + $0xd8] sm:$0xff]  ;;  %v3850_v54 = vld [vmem:[#allocation23 + $0x120] sm:$0xff]  ;;  %v3852_v48 = vld [vmem:[#allocation23 + $0x130] sm:$0xff] }
 0xca3   :  { %5318 = vmatprep.subr.bf16.mxu0 %v5317_v2  ;;  %v3060_v2 = vld [vmem:[#allocation22 + $0xd08] sm:$0xff]  ;;  %v3078_v19 = vld [vmem:[#allocation22 + $0xd98] sm:$0xff]  ;;  %v5351_v50 = vpack.c.bf16 %v3852_v48, %v3850_v54  ;;  %v3103_v48 = vld [vmem:[#allocation22 + $0xe60] sm:$0xff] }
 0xca4   :  { %5172 = vmatpush1.bf16.msra.mxu1 %v5171_v59  ;;  %v3823_v59 = vld [vmem:[#allocation23 + $0x48] sm:$0xff]  ;;  %5320 = vmatpush1.bf16.msra.mxu0 %v5319_v60  ;;  %v3840_v60 = vld [vmem:[#allocation23 + $0xd0] sm:$0xff] }
 0xca5   :  { %5174 = vmatprep.subr.bf16.mxu1 %v5173_v28  ;;  %v3044_v28 = vld [vmem:[#allocation22 + $0xc88] sm:$0xff] }
 0xca6   :  { %v5201_v6 = vpack.c.bf16 %v3046_v0, %v3044_v28  ;;  %v3059_v28 = vld [vmem:[#allocation22 + $0xd00] sm:$0xff] }
 0xca8   :  { %5176 = vmatpush1.bf16.msra.mxu1 %v5175_v15  ;;  %v3043_v15 = vld [vmem:[#allocation22 + $0xc80] sm:$0xff] }
 0xca9   :  { %5178 = vmatprep.subr.bf16.mxu1 %v5177_v34  ;;  %v5321_v34 = vpack.c.bf16 %v3825_v22, %v3823_v59  ;;  %v5203_v12 = vpack.c.bf16 %v3045_v7, %v3043_v15  ;;  %v5215_v59 = vpack.c.bf16 %v3057_v40, %v3055_v52  ;;  %v3838_v22 = vld [vmem:[#allocation23 + $0xc0] sm:$0xff]  ;;  %v3061_v15 = vld [vmem:[#allocation22 + $0xd10] sm:$0xff] }
 0xcaa   :  { %v5339_v7 = vpack.c.bf16 %v3840_v60, %v3838_v22  ;;  %v3073_v52 = vld [vmem:[#allocation22 + $0xd70] sm:$0xff]  ;;  %v3084_v22 = vld [vmem:[#allocation22 + $0xdc8] sm:$0xff]  ;;  %v3086_v60 = vld [vmem:[#allocation22 + $0xdd8] sm:$0xff] }
 0xcab   :  { %5322 = vmatprep.subr.bf16.mxu0 %v5321_v34  ;;  %v3843_v34 = vld [vmem:[#allocation23 + $0xe8] sm:$0xff] }
 0xcac   :  { %5180 = vmatpush1.bf16.msra.mxu1 %v5179_v1  ;;  %v3827_v1 = vld [vmem:[#allocation23 + $0x68] sm:$0xff]  ;;  %5324 = vmatpush1.bf16.msra.mxu0 %v5323_v11  ;;  %v3844_v11 = vld [vmem:[#allocation23 + $0xf0] sm:$0xff] }
 0xcad   :  { %5182 = vmatprep.subr.bf16.mxu1 %v5181_v9  ;;  %v3048_v9 = vld [vmem:[#allocation22 + $0xca8] sm:$0xff] }
 0xcae   :  { %v5205_v29 = vpack.c.bf16 %v3050_v14, %v3048_v9  ;;  %v5341_v9 = vpack.c.bf16 %v3845_v3, %v3843_v34  ;;  %v3842_v14 = vld [vmem:[#allocation23 + $0xe0] sm:$0xff]  ;;  %v3085_v3 = vld [vmem:[#allocation22 + $0xdd0] sm:$0xff] }
 0xcaf   :  { %v5343_v30 = vpack.c.bf16 %v3844_v11, %v3842_v14  ;;  %v3083_v34 = vld [vmem:[#allocation22 + $0xdc0] sm:$0xff]  ;;  %v3089_v14 = vld [vmem:[#allocation22 + $0xdf0] sm:$0xff]  ;;  %v3092_v11 = vld [vmem:[#allocation22 + $0xe08] sm:$0xff] }
 0xcb0   :  { %5184 = vmatpush1.bf16.msra.mxu1 %v5183_v18  ;;  %v5325_v18 = vpack.c.bf16 %v3829_v23, %v3827_v1  ;;  %v5219_v1 = vpack.c.bf16 %v3061_v15, %v3059_v28  ;;  %v3063_v23 = vld [vmem:[#allocation22 + $0xd20] sm:$0xff]  ;;  %v5241_v15 = vpack.c.bf16 %v3086_v60, %v3084_v22  ;;  %v3117_v60 = vld [vmem:[#allocation22 + $0xed0] sm:$0xff] }
 0xcb1   :  { %5186 = vmatprep.subr.bf16.mxu1 %v5185_v25  ;;  %v3828_v25 = vld [vmem:[#allocation23 + $0x70] sm:$0xff]  ;;  %v5223_v33 = vpack.c.bf16 %v3065_v63, %v3063_v23  ;;  %v3079_v28 = vld [vmem:[#allocation22 + $0xda0] sm:$0xff] }
 0xcb2   :  { %v5327_v62 = vpack.c.bf16 %v3828_v25, %v3826_v16  ;;  %5326 = vmatprep.subr.bf16.mxu0 %v5325_v18  ;;  %v3847_v18 = vld [vmem:[#allocation23 + $0x108] sm:$0xff]  ;;  %v3849_v16 = vld [vmem:[#allocation23 + $0x118] sm:$0xff]  ;;  %v3115_v22 = vld [vmem:[#allocation22 + $0xec0] sm:$0xff] }
 0xcb3   :  { %4044 = vmatmul.mubr.msk.f32.vlgmr.msra.gmra.mrb[10].mxu1 %vm2589_vm10, %v6444_v36  ;;  %v3068_v25 = vld [vmem:[#allocation22 + $0xd48] sm:$0xff] }
 0xcb4   :  { %4045 = vmatprep.mubr.msk.f32.mxu1 %vm2606_vm11, %v6451_v27  ;;  %5188 = vmatpush1.bf16.msra.mxu1 %v5187_v35  ;;  %v3052_v35 = vld [vmem:[#allocation22 + $0xcc8] sm:$0xff] }
 0xcb5   :  { %5190 = vmatprep.subr.bf16.mxu1 %v5189_v51  ;;  %v3054_v51 = vld [vmem:[#allocation22 + $0xcd8] sm:$0xff]  ;;  %5328 = vmatpush1.bf16.msra.mxu0 %v5327_v62  ;;  %v3848_v62 = vld [vmem:[#allocation23 + $0x110] sm:$0xff] }
 0xcb6   :  { %v5209_v46 = vpack.c.bf16 %v3054_v51, %v3052_v35  ;;  %5330 = vmatprep.subr.bf16.mxu0 %v5329_v10  ;;  %v5345_v35 = vpack.c.bf16 %v3849_v16, %v3847_v18  ;;  %v3846_v51 = vld [vmem:[#allocation23 + $0x100] sm:$0xff]  ;;  %v3851_v10 = vld [vmem:[#allocation23 + $0x128] sm:$0xff] }
 0xcb7   :  { %4046 = vmatmul.mubr.msk.f32.gmra.mrb[12].mxu1 %vm2605_vm12, %v6455_v13  ;;  %v5347_v21 = vpack.c.bf16 %v3848_v62, %v3846_v51  ;;  %v3095_v62 = vld [vmem:[#allocation22 + $0xe20] sm:$0xff] }
 0xcb8   :  { %5192 = vmatpush1.bf16.msra.mxu1 %v5191_v44  ;;  %4047 = vmatprep.mubr.msk.f32.mxu1 %vm2592_vm13, %v6440_v38  ;;  %v3830_v44 = vld [vmem:[#allocation23 + $0x80] sm:$0xff] }
 0xcb9   :  { %5194 = vmatprep.subr.bf16.mxu1 %v5193_v42  ;;  %v3832_v42 = vld [vmem:[#allocation23 + $0x90] sm:$0xff] }
 0xcba   :  { %v5331_v49 = vpack.c.bf16 %v3832_v42, %v3830_v44  ;;  %v3853_v44 = vld [vmem:[#allocation23 + $0x138] sm:$0xff]  ;;  %v3072_v42 = vld [vmem:[#allocation22 + $0xd68] sm:$0xff] }
 0xcbc   :  { %5196 = vmatpush1.bf16.msra.mxu1 %v5195_v4  ;;  %v5333_v4 = vpack.c.bf16 %v3837_v45, %v3835_v58  ;;  %5332 = vmatpush1.bf16.msra.mxu0 %v5331_v49  ;;  %v5227_v58 = vpack.c.bf16 %v3069_v43, %v3067_v17  ;;  %v5349_v45 = vpack.c.bf16 %v3853_v44, %v3851_v10  ;;  %v3098_v17 = vld [vmem:[#allocation22 + $0xe38] sm:$0xff]  ;;  %v3100_v10 = vld [vmem:[#allocation22 + $0xe48] sm:$0xff] }
 0xcbd   :  { %5198 = vmatprep.subr.bf16.mxu1 %v5197_v55  ;;  %v3839_v55 = vld [vmem:[#allocation23 + $0xc8] sm:$0xff]  ;;  %v3102_v44 = vld [vmem:[#allocation22 + $0xe58] sm:$0xff] }
 0xcbe   :  { %5334 = vmatprep.subr.bf16.mxu0 %v5333_v4  ;;  %v5337_v0 = vpack.c.bf16 %v3841_v61, %v3839_v55  ;;  %v3076_v4 = vld [vmem:[#allocation22 + $0xd88] sm:$0xff]  ;;  %v3075_v55 = vld [vmem:[#allocation22 + $0xd80] sm:$0xff]  ;;  %v3077_v61 = vld [vmem:[#allocation22 + $0xd90] sm:$0xff]  ;;  %v5257_v32 = vpack.c.bf16 %v3102_v44, %v3100_v10 }
 0xcbf   :  { %v5233_v40 = vpack.c.bf16 %v3078_v19, %v3076_v4  ;;  %v3136_v10 = vld [vmem:[#allocation22 + $0xf68] sm:$0xff]  ;;  %v3138_v44 = vld [vmem:[#allocation22 + $0xf78] sm:$0xff] }
 0xcc0   :  { %5200 = vmatpush1.bf16.msra.mxu1 %v5199_v31  ;;  %v5217_v31 = vpack.c.bf16 %v3062_v56, %v3060_v2  ;;  %5336 = vmatpush1.bf16.msra.mxu0 %v5335_v57  ;;  %v3080_v2 = vld [vmem:[#allocation22 + $0xda8] sm:$0xff]  ;;  %v3082_v56 = vld [vmem:[#allocation22 + $0xdb8] sm:$0xff]  ;;  %v5235_v57 = vpack.c.bf16 %v3077_v61, %v3075_v55 }
 0xcc1   :  { %5202 = vmatprep.subr.bf16.mxu1 %v5201_v6  ;;  %v3066_v6 = vld [vmem:[#allocation22 + $0xd38] sm:$0xff]  ;;  %5338 = vmatprep.subr.bf16.mxu0 %v5337_v0  ;;  %v3081_v0 = vld [vmem:[#allocation22 + $0xdb0] sm:$0xff] }
 0xcc2   :  { %v3114_v55 = vld [vmem:[#allocation22 + $0xeb8] sm:$0xff] }
 0xcc4   :  { %5204 = vmatpush1.bf16.msra.mxu1 %v5203_v12  ;;  %v5221_v12 = vpack.c.bf16 %v3066_v6, %v3064_v5  ;;  %5340 = vmatpush1.bf16.msra.mxu0 %v5339_v7  ;;  %v3088_v5 = vld [vmem:[#allocation22 + $0xde8] sm:$0xff]  ;;  %v3090_v6 = vld [vmem:[#allocation22 + $0xdf8] sm:$0xff]  ;;  %v5243_v7 = vpack.c.bf16 %v3085_v3, %v3083_v34  ;;  %v5275_v34 = vpack.c.bf16 %v3117_v60, %v3115_v22  ;;  %v3151_v60 = vld [vmem:[#allocation22 + $0xfe0] sm:$0xff] }
 0xcc5   :  { %5206 = vmatprep.subr.bf16.mxu1 %v5205_v29  ;;  %v3070_v29 = vld [vmem:[#allocation22 + $0xd58] sm:$0xff]  ;;  %5342 = vmatprep.subr.bf16.mxu0 %v5341_v9  ;;  %v5245_v23 = vpack.c.bf16 %v3090_v6, %v3088_v5  ;;  %v3087_v9 = vld [vmem:[#allocation22 + $0xde0] sm:$0xff]  ;;  %v3121_v6 = vld [vmem:[#allocation22 + $0xef0] sm:$0xff] }
 0xcc6   :  { %v5247_v63 = vpack.c.bf16 %v3089_v14, %v3087_v9  ;;  %v3119_v5 = vld [vmem:[#allocation22 + $0xee0] sm:$0xff] }
 0xcc7   :  { %v3123_v14 = vld [vmem:[#allocation22 + $0xf00] sm:$0xff] }
 0xcc8   :  { %5208 = vmatpush1.bf16.msra.mxu1 %v5207_v37  ;;  %v5225_v37 = vpack.c.bf16 %v3070_v29, %v3068_v25  ;;  %5344 = vmatpush1.bf16.msra.mxu0 %v5343_v30  ;;  %v3091_v25 = vld [vmem:[#allocation22 + $0xe00] sm:$0xff]  ;;  %v3093_v29 = vld [vmem:[#allocation22 + $0xe10] sm:$0xff]  ;;  %v6550_v30 = vadd.s32 1920, %v6429_v39 }
 0xcc9   :  { %5210 = vmatprep.subr.bf16.mxu1 %v5209_v46  ;;  %v3074_v46 = vld [vmem:[#allocation22 + $0xd78] sm:$0xff]  ;;  %5346 = vmatprep.subr.bf16.mxu0 %v5345_v35  ;;  %v5251_v35 = vpack.c.bf16 %v3093_v29, %v3091_v25  ;;  %v3127_v25 = vld [vmem:[#allocation22 + $0xf20] sm:$0xff]  ;;  %v3129_v29 = vld [vmem:[#allocation22 + $0xf30] sm:$0xff] }
 0xcca   :  { %v5229_v49 = vpack.c.bf16 %v3074_v46, %v3072_v42  ;;  %v2578_v43 = vshra.s32 %v6550_v30, 8  ;;  %v3101_v46 = vld [vmem:[#allocation22 + $0xe50] sm:$0xff] }
 0xccc   :  { %5212 = vmatpush1.bf16.msra.mxu1 %v5211_v47  ;;  %v3071_v47 = vld [vmem:[#allocation22 + $0xd60] sm:$0xff]  ;;  %5348 = vmatpush1.bf16.msra.mxu0 %v5347_v21  ;;  %vm2594_vm1 = vcmp.eq.s32.totalorder %v2578_v43, %v6249_v8  ;;  %v3104_v21 = vld [vmem:[#allocation22 + $0xe68] sm:$0xff]  ;;  %vm2610_vm4 = vcmp.eq.s32.totalorder %v2578_v43, %v6258_v20 }
 0xccd   :  { %5214 = vmatprep.subr.bf16.mxu1 %v5213_v53  ;;  %v5231_v53 = vpack.c.bf16 %v3073_v52, %v3071_v47  ;;  %5350 = vmatprep.subr.bf16.mxu0 %v5349_v45  ;;  %v5259_v45 = vpack.c.bf16 %v3101_v46, %v3099_v41  ;;  %v3108_v47 = vld [vmem:[#allocation22 + $0xe88] sm:$0xff]  ;;  %v3110_v52 = vld [vmem:[#allocation22 + $0xe98] sm:$0xff]  ;;  %v3135_v41 = vld [vmem:[#allocation22 + $0xf60] sm:$0xff] }
 0xcce   :  { %v5265_v19 = vpack.c.bf16 %v3110_v52, %v3108_v47  ;;  %v3137_v46 = vld [vmem:[#allocation22 + $0xf70] sm:$0xff]  ;;  %v3144_v47 = vld [vmem:[#allocation22 + $0xfa8] sm:$0xff]  ;;  %v3146_v52 = vld [vmem:[#allocation22 + $0xfb8] sm:$0xff] }
 0xccf   :  { %v3858_v43 = vld [vmem:[#allocation23 + $0x160] sm:$0xff] }
 0xcd0   :  { %5216 = vmatpush1.bf16.msra.mxu1 %v5215_v59  ;;  %5352 = vmatpush1.bf16.msra.mxu0 %v5351_v50  ;;  %v5237_v59 = vpack.c.bf16 %v3082_v56, %v3080_v2  ;;  %v3107_v50 = vld [vmem:[#allocation22 + $0xe80] sm:$0xff]  ;;  %v3113_v56 = vld [vmem:[#allocation22 + $0xeb0] sm:$0xff] }
 0xcd1   :  { %5218 = vmatprep.subr.bf16.mxu1 %v5217_v31  ;;  %v5239_v31 = vpack.c.bf16 %v3081_v0, %v3079_v28 }
 0xcd4   :  { %5220 = vmatpush1.bf16.msra.mxu1 %v5219_v1  ;;  %v2559_v1 = vadd.s32 1536, %v6429_v39 }
 0xcd5   :  { %5222 = vmatprep.subr.bf16.mxu1 %v5221_v12  ;;  %v3094_v12 = vld [vmem:[#allocation22 + $0xe18] sm:$0xff] }
 0xcd6   :  { %v2575_v18 = vshra.s32 %v2559_v1, 8  ;;  %v5249_v16 = vpack.c.bf16 %v3094_v12, %v3092_v11  ;;  %v3126_v1 = vld [vmem:[#allocation22 + $0xf18] sm:$0xff]  ;;  %v3125_v11 = vld [vmem:[#allocation22 + $0xf10] sm:$0xff]  ;;  %v3128_v12 = vld [vmem:[#allocation22 + $0xf28] sm:$0xff] }
 0xcd8   :  { %5224 = vmatpush1.bf16.msra.mxu1 %v5223_v33  ;;  %v3096_v33 = vld [vmem:[#allocation22 + $0xe28] sm:$0xff]  ;;  %vm2591_vm14 = vcmp.eq.s32.totalorder %v2575_v18, %v6249_v8  ;;  %vm2607_vm0 = vcmp.eq.s32.totalorder %v2575_v18, %v6258_v20  ;;  %v5283_v18 = vpack.c.bf16 %v3125_v11, %v3123_v14  ;;  %v3864_v11 = vld [vmem:[#allocation23 + $0x190] sm:$0xff] }
 0xcd9   :  { %5226 = vmatprep.subr.bf16.mxu1 %v5225_v37  ;;  %v5253_v51 = vpack.c.bf16 %v3098_v17, %v3096_v33  ;;  %v3097_v37 = vld [vmem:[#allocation22 + $0xe30] sm:$0xff]  ;;  %v3132_v33 = vld [vmem:[#allocation22 + $0xf48] sm:$0xff]  ;;  %v3134_v17 = vld [vmem:[#allocation22 + $0xf58] sm:$0xff] }
 0xcda   :  { %v5255_v42 = vpack.c.bf16 %v3097_v37, %v3095_v62  ;;  %v3131_v62 = vld [vmem:[#allocation22 + $0xf40] sm:$0xff]  ;;  %v3133_v37 = vld [vmem:[#allocation22 + $0xf50] sm:$0xff] }
 0xcdc   :  { %5228 = vmatpush1.bf16.msra.mxu1 %v5227_v58  ;;  %v3106_v58 = vld [vmem:[#allocation22 + $0xe78] sm:$0xff] }
 0xcdd   :  { %5230 = vmatprep.subr.bf16.mxu1 %v5229_v49  ;;  %v5261_v54 = vpack.c.bf16 %v3106_v58, %v3104_v21  ;;  %v3105_v49 = vld [vmem:[#allocation22 + $0xe70] sm:$0xff]  ;;  %v3140_v21 = vld [vmem:[#allocation22 + $0xf88] sm:$0xff]  ;;  %v3142_v58 = vld [vmem:[#allocation22 + $0xf98] sm:$0xff] }
 0xcde   :  { %v5263_v4 = vpack.c.bf16 %v3105_v49, %v3103_v48  ;;  %v3139_v48 = vld [vmem:[#allocation22 + $0xf80] sm:$0xff]  ;;  %v3141_v49 = vld [vmem:[#allocation22 + $0xf90] sm:$0xff] }
 0xce0   :  { %5232 = vmatpush1.bf16.msra.mxu1 %v5231_v53  ;;  %v3109_v53 = vld [vmem:[#allocation22 + $0xe90] sm:$0xff] }
 0xce1   :  { %5234 = vmatprep.subr.bf16.mxu1 %v5233_v40  ;;  %v3112_v40 = vld [vmem:[#allocation22 + $0xea8] sm:$0xff]  ;;  %v5267_v61 = vpack.c.bf16 %v3109_v53, %v3107_v50  ;;  %v3143_v50 = vld [vmem:[#allocation22 + $0xfa0] sm:$0xff]  ;;  %v3145_v53 = vld [vmem:[#allocation22 + $0xfb0] sm:$0xff] }
 0xce2   :  { %v5269_v2 = vpack.c.bf16 %v3114_v55, %v3112_v40  ;;  %v3148_v40 = vld [vmem:[#allocation22 + $0xfc8] sm:$0xff]  ;;  %v3150_v55 = vld [vmem:[#allocation22 + $0xfd8] sm:$0xff] }
 0xce4   :  { %5236 = vmatpush1.bf16.msra.mxu1 %v5235_v57  ;;  %v3116_v57 = vld [vmem:[#allocation22 + $0xec8] sm:$0xff] }
 0xce5   :  { %5238 = vmatprep.subr.bf16.mxu1 %v5237_v59  ;;  %v3118_v59 = vld [vmem:[#allocation22 + $0xed8] sm:$0xff] }
 0xce6   :  { %v5273_v0 = vpack.c.bf16 %v3118_v59, %v3116_v57  ;;  %v3152_v57 = vld [vmem:[#allocation22 + $0xfe8] sm:$0xff]  ;;  %v3154_v59 = vld [vmem:[#allocation22 + $0xff8] sm:$0xff] }
 0xce7   :  { %v5309_v22 = vpack.c.bf16 %v3154_v59, %v3152_v57 }
 0xce8   :  { %5240 = vmatpush1.bf16.msra.mxu1 %v5239_v31  ;;  %v3120_v31 = vld [vmem:[#allocation22 + $0xee8] sm:$0xff] }
 0xce9   :  { %5242 = vmatprep.subr.bf16.mxu1 %v5241_v15  ;;  %v3122_v15 = vld [vmem:[#allocation22 + $0xef8] sm:$0xff] }
 0xcea   :  { %v5277_v3 = vpack.c.bf16 %v3122_v15, %v3120_v31  ;;  %v3153_v31 = vld [vmem:[#allocation22 + $0xff0] sm:$0xff] }
 0xceb   :  { %v5311_v15 = vpack.c.bf16 %v3153_v31, %v3151_v60 }
 0xcec   :  { %5244 = vmatpush1.bf16.msra.mxu1 %v5243_v7  ;;  %v3124_v7 = vld [vmem:[#allocation22 + $0xf08] sm:$0xff] }
 0xced   :  { %5246 = vmatprep.subr.bf16.mxu1 %v5245_v23  ;;  %v5279_v23 = vpack.c.bf16 %v3121_v6, %v3119_v5  ;;  %v5281_v9 = vpack.c.bf16 %v3126_v1, %v3124_v7  ;;  %v3854_v6 = vld [vmem:[#allocation23 + $0x140] sm:$0xff]  ;;  %v3856_v7 = vld [vmem:[#allocation23 + $0x150] sm:$0xff] }
 0xcee   :  { %v5355_v1 = vpack.c.bf16 %v3856_v7, %v3854_v6 }
 0xcf0   :  { %5248 = vmatpush1.bf16.msra.mxu1 %v5247_v63  ;;  %v3130_v63 = vld [vmem:[#allocation22 + $0xf38] sm:$0xff] }
 0xcf1   :  { %5250 = vmatprep.subr.bf16.mxu1 %v5249_v16  ;;  %v5285_v16 = vpack.c.bf16 %v3130_v63, %v3128_v12  ;;  %v3867_v63 = vld [vmem:[#allocation23 + $0x1a8] sm:$0xff] }
 0xcf3   :  { %4048 = vmatmul.mubr.msk.f32.vlgmr.msra.gmra.mrb[10].mxu1 %vm2591_vm14, %v6444_v36 }
 0xcf4   :  { %4049 = vmatprep.mubr.msk.f32.mxu1 %vm2608_vm15, %v6451_v27  ;;  %5252 = vmatpush1.bf16.msra.mxu1 %v5251_v35  ;;  %v5287_v35 = vpack.c.bf16 %v3129_v29, %v3127_v25  ;;  %v3866_v25 = vld [vmem:[#allocation23 + $0x1a0] sm:$0xff]  ;;  %v3868_v29 = vld [vmem:[#allocation23 + $0x1b0] sm:$0xff] }
 0xcf5   :  { %5254 = vmatprep.subr.bf16.mxu1 %v5253_v51  ;;  %v5289_v51 = vpack.c.bf16 %v3134_v17, %v3132_v33  ;;  %v5367_v33 = vpack.c.bf16 %v3868_v29, %v3866_v25  ;;  %v3871_v17 = vld [vmem:[#allocation23 + $0x1c8] sm:$0xff] }
 0xcf7   :  { %4050 = vmatmul.mubr.msk.f32.gmra.mrb[12].mxu1 %vm2607_vm0, %v6455_v13 }
 0xcf8   :  { %5256 = vmatpush1.bf16.msra.mxu1 %v5255_v42  ;;  %4051 = vmatprep.mubr.msk.f32.mxu1 %vm2594_vm1, %v6440_v38  ;;  %v3111_v38 = vld [vmem:[#allocation22 + $0xea0] sm:$0xff]  ;;  %v5291_v42 = vpack.c.bf16 %v3133_v37, %v3131_v62  ;;  %v3872_v37 = vld [vmem:[#allocation23 + $0x1d0] sm:$0xff] }
 0xcf9   :  { %5258 = vmatprep.subr.bf16.mxu1 %v5257_v32  ;;  %v5271_v28 = vpack.c.bf16 %v3113_v56, %v3111_v38  ;;  %v5293_v32 = vpack.c.bf16 %v3138_v44, %v3136_v10  ;;  %v3147_v38 = vld [vmem:[#allocation22 + $0xfc0] sm:$0xff]  ;;  %v3149_v56 = vld [vmem:[#allocation22 + $0xfd0] sm:$0xff]  ;;  %v3875_v44 = vld [vmem:[#allocation23 + $0x1e8] sm:$0xff] }
 0xcfa   :  { %v3870_v62 = vld [vmem:[#allocation23 + $0x1c0] sm:$0xff] }
 0xcfb   :  { %v5371_v10 = vpack.c.bf16 %v3872_v37, %v3870_v62 }
 0xcfc   :  { %5260 = vmatpush1.bf16.msra.mxu1 %v5259_v45  ;;  %v5295_v45 = vpack.c.bf16 %v3137_v46, %v3135_v41  ;;  %v3876_v46 = vld [vmem:[#allocation23 + $0x1f0] sm:$0xff] }
 0xcfd   :  { %5262 = vmatprep.subr.bf16.mxu1 %v5261_v54  ;;  %v5297_v54 = vpack.c.bf16 %v3142_v58, %v3140_v21 }
 0xd00   :  { %5264 = vmatpush1.bf16.msra.mxu1 %v5263_v4  ;;  %v5299_v4 = vpack.c.bf16 %v3141_v49, %v3139_v48 }
 0xd01   :  { %5266 = vmatprep.subr.bf16.mxu1 %v5265_v19  ;;  %v5301_v19 = vpack.c.bf16 %v3146_v52, %v3144_v47 }
 0xd04   :  { %5268 = vmatpush1.bf16.msra.mxu1 %v5267_v61  ;;  %v5303_v61 = vpack.c.bf16 %v3145_v53, %v3143_v50 }
 0xd05   :  { %5270 = vmatprep.subr.bf16.mxu1 %v5269_v2  ;;  %v5305_v2 = vpack.c.bf16 %v3150_v55, %v3148_v40 }
 0xd08   :  { %5272 = vmatpush1.bf16.msra.mxu1 %v5271_v28  ;;  %v5307_v28 = vpack.c.bf16 %v3149_v56, %v3147_v38 }
 0xd09   :  { %5274 = vmatprep.subr.bf16.mxu1 %v5273_v0  ;;  %v2561_v0 = vadd.s32 1792, %v6429_v39  ;;  %v3855_v39 = vld [vmem:[#allocation23 + $0x148] sm:$0xff] }
 0xd0c   :  { %5276 = vmatpush1.bf16.msra.mxu1 %v5275_v34  ;;  %v2577_v34 = vshra.s32 %v2561_v0, 8  ;;  %v3798_v0 = vld [vmem:[#allocation25 + $0x25] ss:$8 sm:$0x3] }
 0xd0d   :  { %5278 = vmatprep.subr.bf16.mxu1 %v5277_v3  ;;  %v3857_v3 = vld [vmem:[#allocation23 + $0x158] sm:$0xff] }
 0xd0e   :  { %vm2593_vm2 = vcmp.eq.s32.totalorder %v2577_v34, %v6249_v8  ;;  %vm2609_vm5 = vcmp.eq.s32.totalorder %v2577_v34, %v6258_v20  ;;  %v5353_v5 = vpack.c.bf16 %v3857_v3, %v3855_v39  ;;  %v3859_v8 = vld [vmem:[#allocation23 + $0x168] sm:$0xff]  ;;  %v3865_v20 = vld [vmem:[#allocation23 + $0x198] sm:$0xff]  ;;  %v3803_v34 = vrot.slane %v3798_v0, %v6234_v24 }
 0xd10   :  { %5280 = vmatpush1.bf16.msra.mxu1 %v5279_v23  ;;  %5354 = vmatprep.subr.bf16.mxu0 %v5353_v5  ;;  %v3861_v23 = vld [vmem:[#allocation23 + $0x178] sm:$0xff]  ;;  %v3807_v5 = vrot.slane %v3798_v0, %v6237_v26 }
 0xd11   :  { %5282 = vmatprep.subr.bf16.mxu1 %v5281_v9  ;;  %5356 = vmatpush1.bf16.msra.mxu0 %v5355_v1  ;;  %v5357_v30 = vpack.c.bf16 %v3861_v23, %v3859_v8  ;;  %v3860_v9 = vld [vmem:[#allocation23 + $0x170] sm:$0xff] }
 0xd13   :  { %5358 = vmatprep.subr.bf16.mxu0 %v5357_v30 }
 0xd14   :  { %5284 = vmatpush1.bf16.msra.mxu1 %v5283_v18  ;;  %v3869_v18 = vld [vmem:[#allocation23 + $0x1b8] sm:$0xff] }
 0xd15   :  { %5286 = vmatprep.subr.bf16.mxu1 %v5285_v16  ;;  %v5365_v16 = vpack.c.bf16 %v3869_v18, %v3867_v63 }
 0xd18   :  { %5288 = vmatpush1.bf16.msra.mxu1 %v5287_v35  ;;  %v3873_v35 = vld [vmem:[#allocation23 + $0x1d8] sm:$0xff] }
 0xd19   :  { %5290 = vmatprep.subr.bf16.mxu1 %v5289_v51  ;;  %v5369_v51 = vpack.c.bf16 %v3873_v35, %v3871_v17 }
 0xd1c   :  { %5292 = vmatpush1.bf16.msra.mxu1 %v5291_v42  ;;  %v3877_v42 = vld [vmem:[#allocation23 + $0x1f8] sm:$0xff] }
 0xd1d   :  { %5294 = vmatprep.subr.bf16.mxu1 %v5293_v32  ;;  %v3874_v32 = vld [vmem:[#allocation23 + $0x1e0] sm:$0xff]  ;;  %v5373_v41 = vpack.c.bf16 %v3877_v42, %v3875_v44 }
 0xd1e   :  { %v5375_v21 = vpack.c.bf16 %v3876_v46, %v3874_v32 }
 0xd20   :  { %5296 = vmatpush1.bf16.msra.mxu1 %v5295_v45 }
 0xd21   :  { %5298 = vmatprep.subr.bf16.mxu1 %v5297_v54 }
 0xd24   :  { %5300 = vmatpush1.bf16.msra.mxu1 %v5299_v4 }
 0xd25   :  { %5302 = vmatprep.subr.bf16.mxu1 %v5301_v19 }
 0xd28   :  { %5304 = vmatpush1.bf16.msra.mxu1 %v5303_v61 }
 0xd29   :  { %5306 = vmatprep.subr.bf16.mxu1 %v5305_v2 }
 0xd2c   :  { %5308 = vmatpush1.bf16.msra.mxu1 %v5307_v28 }
 0xd2d   :  { %5310 = vmatprep.subr.bf16.mxu1 %v5309_v22 }
 0xd30   :  { %5312 = vmatpush1.bf16.msra.mxu1 %v5311_v15 }
 0xd33   :  { %4052 = vmatmul.mubr.msk.f32.vlgmr.msra.gmra.mrb[10].mxu1 %vm2593_vm2, %v6444_v36  ;;  %v5359_v36 = vpack.c.bf16 %v3860_v9, %v3858_v43 }
 0xd34   :  { %4053 = vmatprep.mubr.msk.f32.mxu1 %vm2610_vm4, %v6451_v27  ;;  %v3863_v27 = vld [vmem:[#allocation23 + $0x188] sm:$0xff] }
 0xd35   :  { %5360 = vmatpush1.bf16.msra.mxu0 %v5359_v36  ;;  %v5361_v14 = vpack.c.bf16 %v3865_v20, %v3863_v27  ;;  %v3879_v36 = vld [vmem:[#allocation25 + $0x26] ss:$8 sm:$0x3] }
 0xd36   :  { %v3884_v27 = vrot.slane %v3879_v36, %v6234_v24  ;;  %v3962_v20 = vld [vmem:[#allocation5] sm:$0x3] }
 0xd37   :  { %4054 = vmatmul.mubr.msk.f32.gmra.mrb[12].mxu1 %vm2609_vm5, %v6455_v13  ;;  %v3862_v13 = vld [vmem:[#allocation23 + $0x180] sm:$0xff]  ;;  %5362 = vmatprep.subr.bf16.mxu0 %v5361_v14  ;;  %v3888_v14 = vrot.slane %v3879_v36, %v6237_v26  ;;  %vm3963_vm6 = vcmp.ne.s32.totalorder %v3962_v20, 0 }
 0xd38   :  { %v5363_v12 = vpack.c.bf16 %v3864_v11, %v3862_v13 }
 0xd3a   :  { %5364 = vmatpush1.bf16.msra.mxu0 %v5363_v12 }
 0xd3b   :  { %5366 = vmatprep.subr.bf16.mxu0 %v5365_v16 }
 0xd3e   :  { %5368 = vmatpush1.bf16.msra.mxu0 %v5367_v33 }
 0xd3f   :  { %5370 = vmatprep.subr.bf16.mxu0 %v5369_v51 }
 0xd42   :  { %5372 = vmatpush1.bf16.msra.mxu0 %v5371_v10 }
 0xd43   :  { %5374 = vmatprep.subr.bf16.mxu0 %v5373_v41 }
 0xd46   :  { %5376 = vmatpush1.bf16.msra.mxu0 %v5375_v21 }
 0xe06   :  { %v3760_v58 = vpop.f32.mrb[10].mxu1 }
 0xe07   :  { %v3771_v45 = vrot.slane %v3760_v58, 4  ;;  %v3762_v54 = vpop.f32.mrb[11].mxu1 }
 0xe08   :  { %v3777_v48 = vrot.slane %v3762_v54, 4 }
 0xe09   :  { %v3772_v49 = vadd.f32 %v3771_v45, %v3760_v58 }
 0xe0a   :  { %v3778_v47 = vadd.f32 %v3777_v48, %v3762_v54  ;;  %v3766_v52 = vpop.f32.mrb[12].mxu1 }
 0xe0b   :  { %v3773_v4 = vrot.slane %v3772_v49, 2  ;;  %v3783_v19 = vrot.slane %v3766_v52, 4  ;;  %v3768_v50 = vpop.f32.mrb[13].mxu1 }
 0xe0c   :  { %v3779_v53 = vrot.slane %v3778_v47, 2  ;;  %v3789_v40 = vrot.slane %v3768_v50, 4 }
 0xe0d   :  { %v3774_v55 = vadd.f32 %v3773_v4, %v3772_v49  ;;  %v3784_v61 = vadd.f32 %v3783_v19, %v3766_v52 }
 0xe0e   :  { %v3780_v2 = vadd.f32 %v3779_v53, %v3778_v47  ;;  %v3790_v38 = vadd.f32 %v3789_v40, %v3768_v50 }
 0xe0f   :  { %v3785_v56 = vrot.slane %v3784_v61, 2  ;;  %v3775_v59 = vrot.slane %v3774_v55, 1 }
 0xe10   :  { %v3791_v57 = vrot.slane %v3790_v38, 2  ;;  %v3781_v22 = vrot.slane %v3780_v2, 1 }
 0xe11   :  { %v3786_v28 = vadd.f32 %v3785_v56, %v3784_v61  ;;  %v3776_v39 = vadd.f32 %v3775_v59, %v3774_v55 }
 0xe12   :  { %v3792_v60 = vadd.f32 %v3791_v57, %v3790_v38  ;;  %v3782_v6 = vadd.f32 %v3781_v22, %v3780_v2 }
 0xe13   :  { %v3787_v31 = vrot.slane %v3786_v28, 1 }
 0xe14   :  { %v3793_v15 = vrot.slane %v3792_v60, 1 }
 0xe15   :  { %v3788_v3 = vadd.f32 %v3787_v31, %v3786_v28 }
 0xe16   :  { %v3794_v7 = vadd.f32 %v3793_v15, %v3792_v60 }
 0xe17   :  { %v3795_v1 = vsel %vm634_vm3, %v3776_v39, %v3788_v3 }
 0xe18   :  { %v3796_v8 = vsel %vm634_vm3, %v3782_v6, %v3794_v7  ;;  %v3810_v23 = vadd.f32 %v3803_v34, %v3795_v1 }
 0xe19   :  { %v3811_v30 = vadd.f32 %v3807_v5, %v3796_v8 }
 0xe1a   :  { %v3812_v9 = vmax.f32 %v3810_v23, 0.0 }
 0xe1b   :  { %v3813_v43 = vmax.f32 %v3811_v30, 0.0 }
 0xe1d   :  { %3955 = vmatprep.mubr.f32.mxu0 %v3813_v43 }
 0xe1e   :  { %3956 = vmatmul.mubr.f32.vlgmr.msra.gmra.mrb[34].mxu0 %v3812_v9 }
 0xef1   :  { %v3957_v13 = vpop.f32.mrb[34].mxu0 }
 0xef2   :  { %v3958_v11 = vadd.f32 %v3957_v13, %v3884_v27  ;;  %v3959_v12 = vpop.f32.mrb[35].mxu0 }
 0xef3   :  { %v3960_v63 = vadd.f32 %v3959_v12, %v3888_v14 }
 0xef4   :  { %v3964_v18 = vsel %vm3963_vm6, %v3958_v11, -1e+08 }
 0xef5   :  { %5441 = vtanh.f32 %v3960_v63  ;;  %v3966_v16 = vsel %vm3965_vm7, %v3964_v18, -inf }
 0xef6   :  { %3967 = vmax.xlane.f32.xlu0 %v3966_v16 }
 0xeff   :  { %v5442_v25 = vpop.eup %5441 }
 0xf00   :  { %3980 = vst [vmem:[#allocation27] sm:$0x3] %v5442_v25 }
 0xf83   :  { %v3968_v29 = vpop.xlane.xlu0 %3967 }
 0xf84   :  { %v3969_v33 = vsub.f32 %v3964_v18, %v3968_v29 }
 0xf86   :  { %v3970_v17 = vmul.f32 1.442695, %v3969_v33 }
 0xf88   :  { %5443 = vpow2.f32 %v3970_v17 }
 0xf92   :  { %v5444_v24 = vpop.eup %5443 }
 0xf93   :  { %v3972_v35 = vsel %vm3965_vm7, %v5444_v24, 0.0 }
 0xf94   :  { %3973 = vadd.xlane.f32.xlu0 %v3972_v35 }
 0xf95   :  { %5788 = shalt.err (!%p5785_p12)
}
 0xf96   :  { %s5789_s7 = scalar_lea.hbm %s6620_s16, 32 }
 0xf97   :  { %p5790_p13 = scmp.ne.s32.totalorder %s6620_s16, %s5789_s7  ;;  %p5793_p0 = scmp.lt.u32.totalorder %s5789_s7, %s6620_s16 }
 0xf99   :  { %p5795_p1 = pnand %p5793_p0, %p5790_p13 }
 0xf9b   :  { %5798 = shalt.err (!%p5795_p1)
}
 0xf9c   :  { %4000 = dma.vmem_to_hbm [thread:$0]  %s3998_s22, 32, %s6620_s16, [#allocation28]  }
 0xf9d   :  { %s5864_s23 = smov [#allocation26]  }
 0xf9e   :  { %s3987_s9 = sshll.u32 %s5864_s23, 4  ;;  %s3988_s9 = int_to_ptr.vmem [resolvable:$true] %s3987_s9 }
 0xf9f   :  { %s5799_s28 = scalar_lea.vmem %s3988_s9, 32  ;;  %p5804_p3 = scmp.lt.s32.totalorder %s3988_s9, %s3988_s9 }
 0xfa0   :  { %p5800_p2 = scmp.ne.s32.totalorder %s3988_s9, %s5799_s28  ;;  %p5805_p4 = scmp.lt.s32.totalorder %s5799_s28, %s5799_s28 }
 0xfa2   :  { %p5806_p5 = por %p5805_p4, %p5804_p3 }
 0xfa4   :  { %p5807_p6 = pnand %p5806_p5, %p5800_p2 }
0x1021   :  { %v3974_v26 = vpop.xlane.xlu0 %3973 }
0x1022   :  { %5445 = vlog2.f32 %v3974_v26 }
0x102c   :  { %v5446_v51 = vpop.eup %5445 }
0x102d   :  { %v3976_v62 = vmul.f32 0.6931472, %v5446_v51 }
0x102f   :  { %v3977_v37 = vsub.f32 %v3969_v33, %v3976_v62 }
0x1031   :  { %3978 = vst [vmem:[#allocation26] sm:$0x3] %v3977_v37 }
0x1032   :  { %5810 = shalt.err (!%p5807_p6)
}
0x1033   :  { %s5811_s16 = scalar_lea.hbm %s6619_s15, 32 }
0x1034   :  { %p5812_p7 = scmp.ne.s32.totalorder %s6619_s15, %s5811_s16  ;;  %p5815_p8 = scmp.lt.u32.totalorder %s5811_s16, %s6619_s15 }
0x1036   :  { %p5817_p9 = pnand %p5815_p8, %p5812_p7 }
0x1038   :  { %5820 = shalt.err (!%p5817_p9)
}
0x1039   :  { %3990 = dma.vmem_to_hbm [thread:$0]  %s3988_s9, 32, %s6619_s15, [#allocation4]  }
0x103a   :  { %5837 = dma.done.wait [#allocation4], 32  }
0x103b   :  { %5838 = vsyncadd [#allocation4], 4294967264 }
0x103c   :  { %5839 = dma.done.wait [#allocation28], 32  }
0x103d   :  { %5840 = vsyncadd [#allocation28], 4294967264 }
0x103e   :  { %4007 = vsyncpa [#allocation3], 1 }
0x103f   :  { %4008 = vsyncpa [#allocation6], 1 }
0x1040   :  { %4009 = vsyncpa [#allocation9], 1 }
0x1041   :  { %4010 = vsyncpa [#allocation12], 1 }
0x1042   :  { %4011 = vsyncpa [#allocation15], 1 }
0x1043   :  { %4012 = vsyncpa [#allocation18], 1 }
0x1044   :  { %4013 = vsyncpa [#allocation21], 1 }
0x1045   :  { %4014 = vsyncpa [#allocation24], 1 }
0x1046   :  { %4015 = vsyncpa [#allocation4], 1 }
0x1047   :  { %4016 = vsyncpa [#allocation28], 1 }

</bundles_post_ra>
